<compile_context>
chip_gen: v6e
topology: v6e:2x2x1
jax: 0.10.0
libtpu: 0.0.40
codegen_flags: <defaults>
</compile_context>

<pallas_src>
import functools

import jax
import jax.numpy as jnp
from jax.experimental import pallas as pl
from jax.experimental.pallas import tpu as pltpu


def _round_up(x, m):
    return (x + m - 1) // m * m


def fop_q_kernel(
    s_ref, a_ref,
    w1, b1, w2, b2, w3, b3, w4, b4,           # stateNet
    wa, ba,                                    # actionNet
    wq1s, wq1a, bq1, wq2, bq2, wq3p, bq3p,     # QNet (layer1 split-K, layer3 lane-padded)
    out_ref,
):
    dot = functools.partial(jnp.dot, preferred_element_type=jnp.float32)

    def dense_relu(x_f32, w_ref, b_ref):
        # MXU in bf16, accumulate in f32; bias + ReLU on the VPU in f32.
        y = dot(x_f32.astype(jnp.bfloat16), w_ref[...]) + b_ref[...]
        return jnp.maximum(y, 0.0)

    # stateNet: in -> 1024 -> 512 -> 256 -> 128 (ReLU after each)
    h = dense_relu(s_ref[...], w1, b1)
    h = dense_relu(h, w2, b2)
    h = dense_relu(h, w3, b3)
    hs = dense_relu(h, w4, b4)

    # actionNet: in -> 128 (ReLU)
    ha = dense_relu(a_ref[...], wa, ba)

    # QNet layer 1 on cat([hs, ha], dim=1): 256 -> 512, done as split-K so the
    # (TM, 256) concat never materializes in VMEM.
    q = (dot(hs.astype(jnp.bfloat16), wq1s[...])
         + dot(ha.astype(jnp.bfloat16), wq1a[...])
         + bq1[...])
    q = jnp.maximum(q, 0.0)

    # QNet layer 2: 512 -> 512 (ReLU)
    q = dense_relu(q, wq2, bq2)

    # QNet layer 3: 512 -> 1, padded to 128 output lanes for an unmasked store.
    out_ref[...] = dot(q.astype(jnp.bfloat16), wq3p[...]) + bq3p[...]


def fop_q_forward(state, action, params, *, block_m=256):
    """state: (B, input_shape*n_agents) f32, action: (B, n_action*n_agents) f32 -> (B, 1) f32."""
    B, state_dim = state.shape
    action_dim = action.shape[1]

    # Batch tile: multiple of 16 (bf16 sublane packing), capped at block_m.
    tm = min(block_m, max(16, _round_up(B, 16)))
    b_pad = _round_up(B, tm)
    if b_pad != B:
        state = jnp.pad(state, ((0, b_pad - B), (0, 0)))
        action = jnp.pad(action, ((0, b_pad - B), (0, 0)))

    grid = (b_pad // tm,)

    # Batch-tiled operands.
    in_specs = [
        pl.BlockSpec((tm, state_dim), lambda i: (i, 0)),
        pl.BlockSpec((tm, action_dim), lambda i: (i, 0)),
    ]
    # Weights / biases: full-array blocks, constant index_map -> resident in VMEM.
    for p in params:
        in_specs.append(pl.BlockSpec(p.shape, lambda i: (0, 0)))

    out_specs = pl.BlockSpec((tm, 128), lambda i: (i, 0))
    out_shape = jax.ShapeDtypeStruct((b_pad, 128), jnp.float32)

    # Cost estimate: 2 * M * sum(K*N) flops; bytes = weights + activations I/O.
    flops_per_row = 2 * (
        state_dim * 1024 + 1024 * 512 + 512 * 256 + 256 * 128
        + action_dim * 128 + 256 * 512 + 512 * 512 + 512 * 128
    )
    weight_bytes = sum(int(p.size) * p.dtype.itemsize for p in params)
    io_bytes = b_pad * (state_dim + action_dim + 128) * 4
    cost = pl.CostEstimate(
        flops=flops_per_row * b_pad,
        transcendentals=0,
        bytes_accessed=weight_bytes + io_bytes,
    )

    out = pl.pallas_call(
        fop_q_kernel,
        out_shape=out_shape,
        grid=grid,
        in_specs=in_specs,
        out_specs=out_specs,
        compiler_params=pltpu.CompilerParams(
            dimension_semantics=("parallel",),
            vmem_limit_bytes=32 * 1024 * 1024,
        ),
        cost_estimate=cost,
    )(state, action, *params)

    return out[:B, :1]


def init_params(key, state_in, action_in):
    """PyTorch-Linear-style init. Weights stored as bf16 (in, out); biases f32 (1, out)."""
    state_layers = [(state_in, 1024), (1024, 512), (512, 256), (256, 128)]
    action_layers = [(action_in, 128)]
    q_layers = [(256, 512), (512, 512), (512, 1)]

    def make_linear(k, fan_in, fan_out):
        kw, kb = jax.random.split(k)
        bound = 1.0 / jnp.sqrt(fan_in)
        w = jax.random.uniform(kw, (fan_in, fan_out), jnp.float32, -bound, bound)
        b = jax.random.uniform(kb, (1, fan_out), jnp.float32, -bound, bound)
        return w.astype(jnp.bfloat16), b

    keys = jax.random.split(key, len(state_layers) + len(action_layers) + len(q_layers))
    ki = iter(keys)
    sw = [make_linear(next(ki), i, o) for i, o in state_layers]
    aw = [make_linear(next(ki), i, o) for i, o in action_layers]
    qw = [make_linear(next(ki), i, o) for i, o in q_layers]

    (w1, b1), (w2, b2), (w3, b3), (w4, b4) = sw
    (wa, ba), = aw
    (wq1, bq1), (wq2, bq2), (wq3, bq3) = qw

    # Split the QNet first-layer weight along K (rows 0:128 act on stateNet
    # output, rows 128:256 on actionNet output).
    wq1s = wq1[:128]
    wq1a = wq1[128:]

    # Pad the final (512, 1) layer to (512, 128) output lanes (column 0 is real).
    wq3p = jnp.zeros((512, 128), jnp.bfloat16).at[:, :1].set(wq3)
    bq3p = jnp.zeros((1, 128), jnp.float32).at[:, :1].set(bq3)

    return (w1, b1, w2, b2, w3, b3, w4, b4,
            wa, ba,
            wq1s, wq1a, bq1, wq2, bq2, wq3p, bq3p)


def fop_q_reference(state, action, params):
    """Pure-JAX reference mirroring the kernel's bf16-matmul / f32-accumulate precision."""
    (w1, b1, w2, b2, w3, b3, w4, b4,
     wa, ba,
     wq1s, wq1a, bq1, wq2, bq2, wq3p, bq3p) = params

    def dense(x, w, b):
        return jnp.dot(x.astype(jnp.bfloat16), w, preferred_element_type=jnp.float32) + b

    relu = lambda x: jnp.maximum(x, 0.0)
    h = relu(dense(state, w1, b1))
    h = relu(dense(h, w2, b2))
    h = relu(dense(h, w3, b3))
    hs = relu(dense(h, w4, b4))
    ha = relu(dense(action, wa, ba))
    q = relu(dense(hs, wq1s, bq1) + jnp.dot(ha.astype(jnp.bfloat16), wq1a,
                                            preferred_element_type=jnp.float32))
    q = relu(dense(q, wq2, bq2))
    return dense(q, wq3p, bq3p)[:, :1]


if __name__ == "__main__":
    # Small deterministic problem consistent with the module:
    #   input_shape=16, n_agents=2 -> state dim  = 32
    #   n_actions=8,   n_agents=2 -> action dim = 16
    batch = 8
    input_shape, n_agents, n_actions = 16, 2, 8
    state_in = input_shape * n_agents
    action_in = n_actions * n_agents

    key = jax.random.PRNGKey(0)
    kp, ks, ka = jax.random.split(key, 3)
    params = init_params(kp, state_in, action_in)
    state = jax.random.normal(ks, (batch, state_in), jnp.float32)
    action = jax.random.normal(ka, (batch, action_in), jnp.float32)

    out = fop_q_forward(state, action, params)
    out = jax.block_until_ready(out)

    ref = fop_q_reference(state, action, params)
    assert out.shape == (batch, 1)
    assert jnp.allclose(out, ref, atol=2e-3, rtol=2e-3), (out, ref)
    print("KERNEL_OK")
</pallas_src>

<mosaic_0001>
module attributes {stable_mosaic.version = 11 : i64} {
  func.func @fop_q_kernel(%arg0: i32, %arg1: memref<16x32xf32, #tpu.memory_space<vmem>>, %arg2: memref<16x16xf32, #tpu.memory_space<vmem>>, %arg3: memref<32x1024xbf16, #tpu.memory_space<vmem>>, %arg4: memref<1x1024xf32, #tpu.memory_space<vmem>>, %arg5: memref<1024x512xbf16, #tpu.memory_space<vmem>>, %arg6: memref<1x512xf32, #tpu.memory_space<vmem>>, %arg7: memref<512x256xbf16, #tpu.memory_space<vmem>>, %arg8: memref<1x256xf32, #tpu.memory_space<vmem>>, %arg9: memref<256x128xbf16, #tpu.memory_space<vmem>>, %arg10: memref<1x128xf32, #tpu.memory_space<vmem>>, %arg11: memref<16x128xbf16, #tpu.memory_space<vmem>>, %arg12: memref<1x128xf32, #tpu.memory_space<vmem>>, %arg13: memref<128x512xbf16, #tpu.memory_space<vmem>>, %arg14: memref<128x512xbf16, #tpu.memory_space<vmem>>, %arg15: memref<1x512xf32, #tpu.memory_space<vmem>>, %arg16: memref<512x512xbf16, #tpu.memory_space<vmem>>, %arg17: memref<1x512xf32, #tpu.memory_space<vmem>>, %arg18: memref<512x128xbf16, #tpu.memory_space<vmem>>, %arg19: memref<1x128xf32, #tpu.memory_space<vmem>>, %arg20: memref<16x128xf32, #tpu.memory_space<vmem>>) attributes {dimension_semantics = [#tpu.dimension_semantics<parallel>], iteration_bounds = array<i64: 1>, scalar_prefetch = 0 : i64, scratch_operands = 0 : i64, tpu.core_type = #tpu.core_type<tc>, window_params = [{transform_indices = @transform_0, window_bounds = array<i64: 16, 32>}, {transform_indices = @transform_1, window_bounds = array<i64: 16, 16>}, {pipeline_mode = #tpu.pipeline_mode<synchronous>, transform_indices = @transform_2, window_bounds = array<i64: 32, 1024>}, {pipeline_mode = #tpu.pipeline_mode<synchronous>, transform_indices = @transform_3, window_bounds = array<i64: 1, 1024>}, {pipeline_mode = #tpu.pipeline_mode<synchronous>, transform_indices = @transform_4, window_bounds = array<i64: 1024, 512>}, {pipeline_mode = #tpu.pipeline_mode<synchronous>, transform_indices = @transform_5, window_bounds = array<i64: 1, 512>}, {pipeline_mode = #tpu.pipeline_mode<synchronous>, transform_indices = @transform_6, window_bounds = array<i64: 512, 256>}, {pipeline_mode = #tpu.pipeline_mode<synchronous>, transform_indices = @transform_7, window_bounds = array<i64: 1, 256>}, {pipeline_mode = #tpu.pipeline_mode<synchronous>, transform_indices = @transform_8, window_bounds = array<i64: 256, 128>}, {pipeline_mode = #tpu.pipeline_mode<synchronous>, transform_indices = @transform_9, window_bounds = array<i64: 1, 128>}, {pipeline_mode = #tpu.pipeline_mode<synchronous>, transform_indices = @transform_10, window_bounds = array<i64: 16, 128>}, {pipeline_mode = #tpu.pipeline_mode<synchronous>, transform_indices = @transform_11, window_bounds = array<i64: 1, 128>}, {pipeline_mode = #tpu.pipeline_mode<synchronous>, transform_indices = @transform_12, window_bounds = array<i64: 128, 512>}, {pipeline_mode = #tpu.pipeline_mode<synchronous>, transform_indices = @transform_13, window_bounds = array<i64: 128, 512>}, {pipeline_mode = #tpu.pipeline_mode<synchronous>, transform_indices = @transform_14, window_bounds = array<i64: 1, 512>}, {pipeline_mode = #tpu.pipeline_mode<synchronous>, transform_indices = @transform_15, window_bounds = array<i64: 512, 512>}, {pipeline_mode = #tpu.pipeline_mode<synchronous>, transform_indices = @transform_16, window_bounds = array<i64: 1, 512>}, {pipeline_mode = #tpu.pipeline_mode<synchronous>, transform_indices = @transform_17, window_bounds = array<i64: 512, 128>}, {pipeline_mode = #tpu.pipeline_mode<synchronous>, transform_indices = @transform_18, window_bounds = array<i64: 1, 128>}, {transform_indices = @transform_19, window_bounds = array<i64: 16, 128>}]} {
    %c0 = arith.constant 0 : index
    %c0_0 = arith.constant 0 : index
    %0 = vector.load %arg1[%c0, %c0_0] : memref<16x32xf32, #tpu.memory_space<vmem>>, vector<16x32xf32>
    %1 = arith.truncf %0 : vector<16x32xf32> to vector<16x32xbf16>
    %c0_1 = arith.constant 0 : index
    %c0_2 = arith.constant 0 : index
    %2 = vector.load %arg3[%c0_1, %c0_2] : memref<32x1024xbf16, #tpu.memory_space<vmem>>, vector<32x1024xbf16>
    %cst = arith.constant dense<0.000000e+00> : vector<16x1024xf32>
    %3 = tpu.matmul %1, %2, %cst {dimension_numbers = #tpu.dot_dimension_numbers<[1], [0], [0], [1], [0, 0, 1, 1], [], []>} : vector<16x32xbf16>, vector<32x1024xbf16>, vector<16x1024xf32> -> vector<16x1024xf32>
    %c0_3 = arith.constant 0 : index
    %c0_4 = arith.constant 0 : index
    %4 = vector.load %arg4[%c0_3, %c0_4] : memref<1x1024xf32, #tpu.memory_space<vmem>>, vector<1x1024xf32>
    %5 = vector.broadcast %4 : vector<1x1024xf32> to vector<16x1024xf32>
    %6 = arith.addf %3, %5 : vector<16x1024xf32>
    %cst_5 = arith.constant 0.000000e+00 : f32
    %7 = vector.broadcast %cst_5 : f32 to vector<16x1024xf32>
    %8 = arith.maximumf %6, %7 : vector<16x1024xf32>
    %9 = arith.truncf %8 : vector<16x1024xf32> to vector<16x1024xbf16>
    %c0_6 = arith.constant 0 : index
    %c0_7 = arith.constant 0 : index
    %10 = vector.load %arg5[%c0_6, %c0_7] : memref<1024x512xbf16, #tpu.memory_space<vmem>>, vector<1024x512xbf16>
    %cst_8 = arith.constant dense<0.000000e+00> : vector<16x512xf32>
    %11 = tpu.matmul %9, %10, %cst_8 {dimension_numbers = #tpu.dot_dimension_numbers<[1], [0], [0], [1], [0, 0, 1, 1], [], []>} : vector<16x1024xbf16>, vector<1024x512xbf16>, vector<16x512xf32> -> vector<16x512xf32>
    %c0_9 = arith.constant 0 : index
    %c0_10 = arith.constant 0 : index
    %12 = vector.load %arg6[%c0_9, %c0_10] : memref<1x512xf32, #tpu.memory_space<vmem>>, vector<1x512xf32>
    %13 = vector.broadcast %12 : vector<1x512xf32> to vector<16x512xf32>
    %14 = arith.addf %11, %13 : vector<16x512xf32>
    %cst_11 = arith.constant 0.000000e+00 : f32
    %15 = vector.broadcast %cst_11 : f32 to vector<16x512xf32>
    %16 = arith.maximumf %14, %15 : vector<16x512xf32>
    %17 = arith.truncf %16 : vector<16x512xf32> to vector<16x512xbf16>
    %c0_12 = arith.constant 0 : index
    %c0_13 = arith.constant 0 : index
    %18 = vector.load %arg7[%c0_12, %c0_13] : memref<512x256xbf16, #tpu.memory_space<vmem>>, vector<512x256xbf16>
    %cst_14 = arith.constant dense<0.000000e+00> : vector<16x256xf32>
    %19 = tpu.matmul %17, %18, %cst_14 {dimension_numbers = #tpu.dot_dimension_numbers<[1], [0], [0], [1], [0, 0, 1, 1], [], []>} : vector<16x512xbf16>, vector<512x256xbf16>, vector<16x256xf32> -> vector<16x256xf32>
    %c0_15 = arith.constant 0 : index
    %c0_16 = arith.constant 0 : index
    %20 = vector.load %arg8[%c0_15, %c0_16] : memref<1x256xf32, #tpu.memory_space<vmem>>, vector<1x256xf32>
    %21 = vector.broadcast %20 : vector<1x256xf32> to vector<16x256xf32>
    %22 = arith.addf %19, %21 : vector<16x256xf32>
    %cst_17 = arith.constant 0.000000e+00 : f32
    %23 = vector.broadcast %cst_17 : f32 to vector<16x256xf32>
    %24 = arith.maximumf %22, %23 : vector<16x256xf32>
    %25 = arith.truncf %24 : vector<16x256xf32> to vector<16x256xbf16>
    %c0_18 = arith.constant 0 : index
    %c0_19 = arith.constant 0 : index
    %26 = vector.load %arg9[%c0_18, %c0_19] : memref<256x128xbf16, #tpu.memory_space<vmem>>, vector<256x128xbf16>
    %cst_20 = arith.constant dense<0.000000e+00> : vector<16x128xf32>
    %27 = tpu.matmul %25, %26, %cst_20 {dimension_numbers = #tpu.dot_dimension_numbers<[1], [0], [0], [1], [0, 0, 1, 1], [], []>} : vector<16x256xbf16>, vector<256x128xbf16>, vector<16x128xf32> -> vector<16x128xf32>
    %c0_21 = arith.constant 0 : index
    %c0_22 = arith.constant 0 : index
    %28 = vector.load %arg10[%c0_21, %c0_22] : memref<1x128xf32, #tpu.memory_space<vmem>>, vector<1x128xf32>
    %29 = vector.broadcast %28 : vector<1x128xf32> to vector<16x128xf32>
    %30 = arith.addf %27, %29 : vector<16x128xf32>
    %cst_23 = arith.constant 0.000000e+00 : f32
    %31 = vector.broadcast %cst_23 : f32 to vector<16x128xf32>
    %32 = arith.maximumf %30, %31 : vector<16x128xf32>
    %c0_24 = arith.constant 0 : index
    %c0_25 = arith.constant 0 : index
    %33 = vector.load %arg2[%c0_24, %c0_25] : memref<16x16xf32, #tpu.memory_space<vmem>>, vector<16x16xf32>
    %34 = arith.truncf %33 : vector<16x16xf32> to vector<16x16xbf16>
    %c0_26 = arith.constant 0 : index
    %c0_27 = arith.constant 0 : index
    %35 = vector.load %arg11[%c0_26, %c0_27] : memref<16x128xbf16, #tpu.memory_space<vmem>>, vector<16x128xbf16>
    %cst_28 = arith.constant dense<0.000000e+00> : vector<16x128xf32>
    %36 = tpu.matmul %34, %35, %cst_28 {dimension_numbers = #tpu.dot_dimension_numbers<[1], [0], [0], [1], [0, 0, 1, 1], [], []>} : vector<16x16xbf16>, vector<16x128xbf16>, vector<16x128xf32> -> vector<16x128xf32>
    %c0_29 = arith.constant 0 : index
    %c0_30 = arith.constant 0 : index
    %37 = vector.load %arg12[%c0_29, %c0_30] : memref<1x128xf32, #tpu.memory_space<vmem>>, vector<1x128xf32>
    %38 = vector.broadcast %37 : vector<1x128xf32> to vector<16x128xf32>
    %39 = arith.addf %36, %38 : vector<16x128xf32>
    %cst_31 = arith.constant 0.000000e+00 : f32
    %40 = vector.broadcast %cst_31 : f32 to vector<16x128xf32>
    %41 = arith.maximumf %39, %40 : vector<16x128xf32>
    %42 = arith.truncf %32 : vector<16x128xf32> to vector<16x128xbf16>
    %c0_32 = arith.constant 0 : index
    %c0_33 = arith.constant 0 : index
    %43 = vector.load %arg13[%c0_32, %c0_33] : memref<128x512xbf16, #tpu.memory_space<vmem>>, vector<128x512xbf16>
    %cst_34 = arith.constant dense<0.000000e+00> : vector<16x512xf32>
    %44 = tpu.matmul %42, %43, %cst_34 {dimension_numbers = #tpu.dot_dimension_numbers<[1], [0], [0], [1], [0, 0, 1, 1], [], []>} : vector<16x128xbf16>, vector<128x512xbf16>, vector<16x512xf32> -> vector<16x512xf32>
    %45 = arith.truncf %41 : vector<16x128xf32> to vector<16x128xbf16>
    %c0_35 = arith.constant 0 : index
    %c0_36 = arith.constant 0 : index
    %46 = vector.load %arg14[%c0_35, %c0_36] : memref<128x512xbf16, #tpu.memory_space<vmem>>, vector<128x512xbf16>
    %cst_37 = arith.constant dense<0.000000e+00> : vector<16x512xf32>
    %47 = tpu.matmul %45, %46, %cst_37 {dimension_numbers = #tpu.dot_dimension_numbers<[1], [0], [0], [1], [0, 0, 1, 1], [], []>} : vector<16x128xbf16>, vector<128x512xbf16>, vector<16x512xf32> -> vector<16x512xf32>
    %48 = arith.addf %44, %47 : vector<16x512xf32>
    %c0_38 = arith.constant 0 : index
    %c0_39 = arith.constant 0 : index
    %49 = vector.load %arg15[%c0_38, %c0_39] : memref<1x512xf32, #tpu.memory_space<vmem>>, vector<1x512xf32>
    %50 = vector.broadcast %49 : vector<1x512xf32> to vector<16x512xf32>
    %51 = arith.addf %48, %50 : vector<16x512xf32>
    %cst_40 = arith.constant 0.000000e+00 : f32
    %52 = vector.broadcast %cst_40 : f32 to vector<16x512xf32>
    %53 = arith.maximumf %51, %52 : vector<16x512xf32>
    %54 = arith.truncf %53 : vector<16x512xf32> to vector<16x512xbf16>
    %c0_41 = arith.constant 0 : index
    %c0_42 = arith.constant 0 : index
    %55 = vector.load %arg16[%c0_41, %c0_42] : memref<512x512xbf16, #tpu.memory_space<vmem>>, vector<512x512xbf16>
    %cst_43 = arith.constant dense<0.000000e+00> : vector<16x512xf32>
    %56 = tpu.matmul %54, %55, %cst_43 {dimension_numbers = #tpu.dot_dimension_numbers<[1], [0], [0], [1], [0, 0, 1, 1], [], []>} : vector<16x512xbf16>, vector<512x512xbf16>, vector<16x512xf32> -> vector<16x512xf32>
    %c0_44 = arith.constant 0 : index
    %c0_45 = arith.constant 0 : index
    %57 = vector.load %arg17[%c0_44, %c0_45] : memref<1x512xf32, #tpu.memory_space<vmem>>, vector<1x512xf32>
    %58 = vector.broadcast %57 : vector<1x512xf32> to vector<16x512xf32>
    %59 = arith.addf %56, %58 : vector<16x512xf32>
    %cst_46 = arith.constant 0.000000e+00 : f32
    %60 = vector.broadcast %cst_46 : f32 to vector<16x512xf32>
    %61 = arith.maximumf %59, %60 : vector<16x512xf32>
    %62 = arith.truncf %61 : vector<16x512xf32> to vector<16x512xbf16>
    %c0_47 = arith.constant 0 : index
    %c0_48 = arith.constant 0 : index
    %63 = vector.load %arg18[%c0_47, %c0_48] : memref<512x128xbf16, #tpu.memory_space<vmem>>, vector<512x128xbf16>
    %cst_49 = arith.constant dense<0.000000e+00> : vector<16x128xf32>
    %64 = tpu.matmul %62, %63, %cst_49 {dimension_numbers = #tpu.dot_dimension_numbers<[1], [0], [0], [1], [0, 0, 1, 1], [], []>} : vector<16x512xbf16>, vector<512x128xbf16>, vector<16x128xf32> -> vector<16x128xf32>
    %c0_50 = arith.constant 0 : index
    %c0_51 = arith.constant 0 : index
    %65 = vector.load %arg19[%c0_50, %c0_51] : memref<1x128xf32, #tpu.memory_space<vmem>>, vector<1x128xf32>
    %66 = vector.broadcast %65 : vector<1x128xf32> to vector<16x128xf32>
    %67 = arith.addf %64, %66 : vector<16x128xf32>
    %c0_52 = arith.constant 0 : index
    %c0_53 = arith.constant 0 : index
    %68 = vector.load %arg20[%c0_52, %c0_53] : memref<16x128xf32, #tpu.memory_space<vmem>>, vector<16x128xf32>
    tpu.vector_store %arg20[%c0_52, %c0_53], %67 {strides = array<i32>} : memref<16x128xf32, #tpu.memory_space<vmem>>, vector<16x128xf32>,
    return
  }
  func.func @transform_0(%arg0: i32) -> (i32, i32) {
    %c0_i32 = arith.constant 0 : i32
    %c0_i32_0 = arith.constant 0 : i32
    return %arg0, %c0_i32 : i32, i32
  }
  func.func @transform_1(%arg0: i32) -> (i32, i32) {
    %c0_i32 = arith.constant 0 : i32
    %c0_i32_0 = arith.constant 0 : i32
    return %arg0, %c0_i32 : i32, i32
  }
  func.func @transform_2(%arg0: i32) -> (i32, i32) {
    %c0_i32 = arith.constant 0 : i32
    %c0_i32_0 = arith.constant 0 : i32
    %c0_i32_1 = arith.constant 0 : i32
    return %c0_i32, %c0_i32_0 : i32, i32
  }
  func.func @transform_3(%arg0: i32) -> (i32, i32) {
    %c0_i32 = arith.constant 0 : i32
    %c0_i32_0 = arith.constant 0 : i32
    %c0_i32_1 = arith.constant 0 : i32
    return %c0_i32, %c0_i32_0 : i32, i32
  }
  func.func @transform_4(%arg0: i32) -> (i32, i32) {
    %c0_i32 = arith.constant 0 : i32
    %c0_i32_0 = arith.constant 0 : i32
    %c0_i32_1 = arith.constant 0 : i32
    return %c0_i32, %c0_i32_0 : i32, i32
  }
  func.func @transform_5(%arg0: i32) -> (i32, i32) {
    %c0_i32 = arith.constant 0 : i32
    %c0_i32_0 = arith.constant 0 : i32
    %c0_i32_1 = arith.constant 0 : i32
    return %c0_i32, %c0_i32_0 : i32, i32
  }
  func.func @transform_6(%arg0: i32) -> (i32, i32) {
    %c0_i32 = arith.constant 0 : i32
    %c0_i32_0 = arith.constant 0 : i32
    %c0_i32_1 = arith.constant 0 : i32
    return %c0_i32, %c0_i32_0 : i32, i32
  }
  func.func @transform_7(%arg0: i32) -> (i32, i32) {
    %c0_i32 = arith.constant 0 : i32
    %c0_i32_0 = arith.constant 0 : i32
    %c0_i32_1 = arith.constant 0 : i32
    return %c0_i32, %c0_i32_0 : i32, i32
  }
  func.func @transform_8(%arg0: i32) -> (i32, i32) {
    %c0_i32 = arith.constant 0 : i32
    %c0_i32_0 = arith.constant 0 : i32
    %c0_i32_1 = arith.constant 0 : i32
    return %c0_i32, %c0_i32_0 : i32, i32
  }
  func.func @transform_9(%arg0: i32) -> (i32, i32) {
    %c0_i32 = arith.constant 0 : i32
    %c0_i32_0 = arith.constant 0 : i32
    %c0_i32_1 = arith.constant 0 : i32
    return %c0_i32, %c0_i32_0 : i32, i32
  }
  func.func @transform_10(%arg0: i32) -> (i32, i32) {
    %c0_i32 = arith.constant 0 : i32
    %c0_i32_0 = arith.constant 0 : i32
    %c0_i32_1 = arith.constant 0 : i32
    return %c0_i32, %c0_i32_0 : i32, i32
  }
  func.func @transform_11(%arg0: i32) -> (i32, i32) {
    %c0_i32 = arith.constant 0 : i32
    %c0_i32_0 = arith.constant 0 : i32
    %c0_i32_1 = arith.constant 0 : i32
    return %c0_i32, %c0_i32_0 : i32, i32
  }
  func.func @transform_12(%arg0: i32) -> (i32, i32) {
    %c0_i32 = arith.constant 0 : i32
    %c0_i32_0 = arith.constant 0 : i32
    %c0_i32_1 = arith.constant 0 : i32
    return %c0_i32, %c0_i32_0 : i32, i32
  }
  func.func @transform_13(%arg0: i32) -> (i32, i32) {
    %c0_i32 = arith.constant 0 : i32
    %c0_i32_0 = arith.constant 0 : i32
    %c0_i32_1 = arith.constant 0 : i32
    return %c0_i32, %c0_i32_0 : i32, i32
  }
  func.func @transform_14(%arg0: i32) -> (i32, i32) {
    %c0_i32 = arith.constant 0 : i32
    %c0_i32_0 = arith.constant 0 : i32
    %c0_i32_1 = arith.constant 0 : i32
    return %c0_i32, %c0_i32_0 : i32, i32
  }
  func.func @transform_15(%arg0: i32) -> (i32, i32) {
    %c0_i32 = arith.constant 0 : i32
    %c0_i32_0 = arith.constant 0 : i32
    %c0_i32_1 = arith.constant 0 : i32
    return %c0_i32, %c0_i32_0 : i32, i32
  }
  func.func @transform_16(%arg0: i32) -> (i32, i32) {
    %c0_i32 = arith.constant 0 : i32
    %c0_i32_0 = arith.constant 0 : i32
    %c0_i32_1 = arith.constant 0 : i32
    return %c0_i32, %c0_i32_0 : i32, i32
  }
  func.func @transform_17(%arg0: i32) -> (i32, i32) {
    %c0_i32 = arith.constant 0 : i32
    %c0_i32_0 = arith.constant 0 : i32
    %c0_i32_1 = arith.constant 0 : i32
    return %c0_i32, %c0_i32_0 : i32, i32
  }
  func.func @transform_18(%arg0: i32) -> (i32, i32) {
    %c0_i32 = arith.constant 0 : i32
    %c0_i32_0 = arith.constant 0 : i32
    %c0_i32_1 = arith.constant 0 : i32
    return %c0_i32, %c0_i32_0 : i32, i32
  }
  func.func @transform_19(%arg0: i32) -> (i32, i32) {
    %c0_i32 = arith.constant 0 : i32
    %c0_i32_0 = arith.constant 0 : i32
    return %arg0, %c0_i32 : i32, i32
  }
}

</mosaic_0001>

<bundles_post_ra>
// kernel: tpu_custom_call.1
= control target key start
LH: loop header
LB: loop body
LE: loop exit
PB: predicated region body
PF: predicated region fallthrough
CT: control target
= control target key end

     0   :  { %s7325_s0 = inlined_call_operand.hbm [shape: f32[16,32], index: 0, kind: input, shape index: {}]   ;;  %s7326_s1 = inlined_call_operand.hbm [shape: f32[16,16], index: 1, kind: input, shape index: {}]   ;;  %s7327_s2 = inlined_call_operand.hbm [shape: bf16[32,1024], index: 2, kind: input, shape index: {}]   ;;  %s7328_s3 = inlined_call_operand.hbm [shape: f32[1,1024], index: 3, kind: input, shape index: {}]   ;;  %s7329_s4 = inlined_call_operand.hbm [shape: bf16[1024,512], index: 4, kind: input, shape index: {}]   ;;  %s7330_s5 = inlined_call_operand.vmem [shape: f32[1,512], index: 5, kind: input, shape index: {}]   ;;  %s7331_s6 = inlined_call_operand.hbm [shape: bf16[512,256], index: 6, kind: input, shape index: {}]   ;;  %s7332_s7 = inlined_call_operand.hbm [shape: f32[1,256], index: 7, kind: input, shape index: {}]   ;;  %s7333_s8 = inlined_call_operand.hbm [shape: bf16[256,128], index: 8, kind: input, shape index: {}]   ;;  %s7334_s9 = inlined_call_operand.hbm [shape: f32[1,128], index: 9, kind: input, shape index: {}]   ;;  %s7335_s10 = inlined_call_operand.vmem [shape: bf16[16,128], index: 10, kind: input, shape index: {}]   ;;  %s7336_s11 = inlined_call_operand.hbm [shape: f32[1,128], index: 11, kind: input, shape index: {}]   ;;  %s7337_s12 = inlined_call_operand.hbm [shape: bf16[128,512], index: 12, kind: input, shape index: {}]   ;;  %s7338_s13 = inlined_call_operand.hbm [shape: bf16[128,512], index: 13, kind: input, shape index: {}]   ;;  %s7339_s14 = inlined_call_operand.vmem [shape: f32[1,512], index: 14, kind: input, shape index: {}]   ;;  %s7340_s15 = inlined_call_operand.hbm [shape: bf16[512,512], index: 15, kind: input, shape index: {}]   ;;  %s7341_s16 = inlined_call_operand.vmem [shape: f32[1,512], index: 16, kind: input, shape index: {}]   ;;  %s7342_s17 = inlined_call_operand.hbm [shape: bf16[512,128], index: 17, kind: input, shape index: {}]   ;;  %s7343_s18 = inlined_call_operand.vmem [shape: f32[1,128], index: 18, kind: input, shape index: {}]   ;;  %s7344_s19 = inlined_call_operand.hbm [shape: f32[16,128], index: 19, kind: output, shape index: {}]  }
   0x1   :  { %7345 = sst [smem:[#allocation35_spill]] %s7325_s0 }
   0x2   :  { %7346 = sst [smem:[#allocation36_spill]] %s7326_s1 }
   0x3   :  { %7347 = sst [smem:[#allocation37_spill]] %s7327_s2 }
   0x4   :  { %7348 = sst [smem:[#allocation38_spill]] %s7328_s3 }
   0x5   :  { %7349 = sst [smem:[#allocation39_spill]] %s7344_s19 }
   0x6   :  { %24 = vsyncpa [#allocation3], 0 }
   0x7   :  { %25 = vsyncpa [#allocation6], 0 }
   0x8   :  { %26 = vsyncpa [#allocation9], 0 }
   0x9   :  { %27 = vsyncpa [#allocation12], 0 }
   0xa   :  { %28 = vsyncpa [#allocation15], 0 }
   0xb   :  { %29 = vsyncpa [#allocation18], 0 }
   0xc   :  { %30 = vsyncpa [#allocation21], 0 }
   0xd   :  { %31 = vsyncpa [#allocation24], 0 }
   0xe   :  { %32 = vsyncpa [#allocation4], 0  ;;  %s6997_s0 = smov [#allocation5]   ;;  %s6998_s20 = smov [#allocation8]  }
   0xf   :  { %s50_s30 = sshll.u32 %s6997_s0, 4  ;;  %s75_s21 = sshll.u32 %s6998_s20, 4  ;;  %s51_s30 = int_to_ptr.vmem [resolvable:$true] %s50_s30  ;;  %s76_s21 = int_to_ptr.vmem [resolvable:$true] %s75_s21 }
  0x10   :  { %s6687_s1 = scalar_lea.vmem %s51_s30, 256  ;;  %p6692_p1 = scmp.lt.s32.totalorder %s51_s30, %s51_s30 }
  0x11   :  { %p6688_p0 = scmp.ne.s32.totalorder %s51_s30, %s6687_s1  ;;  %p6693_p2 = scmp.lt.s32.totalorder %s6687_s1, %s6687_s1 }
  0x13   :  { %p6694_p3 = por %p6693_p2, %p6692_p1 }
  0x15   :  { %p6695_p4 = pnand %p6694_p3, %p6688_p0 }
  0x17   :  { %6698 = shalt.err (!%p6695_p4)
}
  0x18   :  { %s6999_s22 = smov 128   ;;  %s7000_s2 = smov 8  }
  0x19   :  { %s7350_s25 = sld [smem:[#allocation36_spill]]  ;;  %s6707_s3 = scalar_lea.vmem %s76_s21, 128 }
  0x1a   :  { %p6708_p5 = scmp.ne.s32.totalorder %s76_s21, %s6707_s3  ;;  %p6712_p6 = scmp.lt.s32.totalorder %s76_s21, %s76_s21 }
  0x1b   :  { %p6713_p7 = scmp.lt.s32.totalorder %s6707_s3, %s6707_s3 }
  0x1d   :  { %p6714_p8 = por %p6713_p7, %p6712_p6 }
  0x1f   :  { %56 = dma.hbm_to_vmem [thread:$0]  %s7350_s25, 256, %s51_s30, [#allocation6], %s6999_s22, %s6999_s22, %s7000_s2  }
  0x20   :  { %p6715_p9 = pnand %p6714_p8, %p6708_p5 }
  0x22   :  { %6718 = shalt.err (!%p6715_p9)
}
  0x23   :  { %s7351_s28 = sld [smem:[#allocation38_spill]]  ;;  %s7001_s29 = smov [#allocation11]  }
  0x24   :  { %s98_s0 = sshll.u32 %s7001_s29, 4  ;;  %s7002_s20 = smov [#allocation14]   ;;  %s99_s0 = int_to_ptr.vmem [resolvable:$true] %s98_s0 }
  0x25   :  { %s120_s1 = sshll.u32 %s7002_s20, 4  ;;  %s6727_s19 = scalar_lea.vmem %s99_s0, 8192  ;;  %s121_s1 = int_to_ptr.vmem [resolvable:$true] %s120_s1 }
  0x26   :  { %p6728_p10 = scmp.ne.s32.totalorder %s99_s0, %s6727_s19  ;;  %p6732_p11 = scmp.lt.s32.totalorder %s99_s0, %s99_s0 }
  0x27   :  { %p6733_p12 = scmp.lt.s32.totalorder %s6727_s19, %s6727_s19 }
  0x29   :  { %78 = dma.hbm_to_vmem [thread:$0]  %s7351_s28, 128, %s76_s21, [#allocation9]  }
  0x2a   :  { %p6734_p13 = por %p6733_p12, %p6732_p11 }
  0x2c   :  { %p6735_p0 = pnand %p6734_p13, %p6728_p10 }
  0x2e   :  { %6738 = shalt.err (!%p6735_p0)
}
  0x2f   :  { %104 = dma.hbm_to_vmem [thread:$0]  %s7331_s6, 8192, %s99_s0, [#allocation12], %s6999_s22, %s6999_s22, %s7000_s2  }
  0x30   :  { %s6747_s21 = scalar_lea.vmem %s121_s1, 2048  ;;  %p6752_p2 = scmp.lt.s32.totalorder %s121_s1, %s121_s1 }
  0x31   :  { %p6748_p1 = scmp.ne.s32.totalorder %s121_s1, %s6747_s21  ;;  %p6753_p3 = scmp.lt.s32.totalorder %s6747_s21, %s6747_s21 }
  0x33   :  { %p6754_p4 = por %p6753_p3, %p6752_p2 }
  0x35   :  { %p6755_p5 = pnand %p6754_p4, %p6748_p1 }
  0x37   :  { %6758 = shalt.err (!%p6755_p5)
}
  0x38   :  { %s7003_s24 = smov 64   ;;  %s7004_s25 = smov 4  }
  0x39   :  { %126 = dma.hbm_to_vmem [thread:$0]  %s7333_s8, 2048, %s121_s1, [#allocation15], %s7003_s24, %s7003_s24, %s7004_s25  }
  0x3a   :  { %s7005_s26 = smov [#allocation17]  }
  0x3b   :  { %s145_s27 = sshll.u32 %s7005_s26, 4  ;;  %s146_s27 = int_to_ptr.vmem [resolvable:$true] %s145_s27 }
  0x3c   :  { %s6767_s6 = scalar_lea.vmem %s146_s27, 16  ;;  %s6771_s28 = scalar_lea.vmem %s146_s27, 32 }
  0x3d   :  { %p6768_p6 = scmp.ne.s32.totalorder %s146_s27, %s6767_s6  ;;  %p6772_p7 = scmp.lt.s32.totalorder %s146_s27, %s146_s27 }
  0x3e   :  { %p6773_p8 = scmp.lt.s32.totalorder %s6771_s28, %s6767_s6 }
  0x40   :  { %p6774_p9 = por %p6773_p8, %p6772_p7 }
  0x42   :  { %p6775_p10 = pnand %p6774_p9, %p6768_p6 }
  0x44   :  { %6778 = shalt.err (!%p6775_p10)
}
  0x45   :  { %148 = dma.hbm_to_vmem [thread:$0]  %s7336_s11, 16, %s146_s27, [#allocation18]  }
  0x46   :  { %s7006_s20 = smov [#allocation20]   ;;  %s7007_s23 = smov [#allocation2]  }
  0x47   :  { %s166_s30 = sshll.u32 %s7006_s20, 4  ;;  %s38_s8 = sshll.u32 %s7007_s23, 4  ;;  %s167_s30 = int_to_ptr.vmem [resolvable:$true] %s166_s30  ;;  %s39_s8 = int_to_ptr.vmem [resolvable:$true] %s38_s8 }
  0x48   :  { %s6787_s1 = scalar_lea.vmem %s167_s30, 4096  ;;  %p6792_p12 = scmp.lt.s32.totalorder %s167_s30, %s167_s30 }
  0x49   :  { %p6788_p11 = scmp.ne.s32.totalorder %s167_s30, %s6787_s1  ;;  %p6793_p13 = scmp.lt.s32.totalorder %s6787_s1, %s6787_s1 }
  0x4b   :  { %p6794_p0 = por %p6793_p13, %p6792_p12 }
  0x4d   :  { %p6795_p1 = pnand %p6794_p0, %p6788_p11 }
  0x4f   :  { %6798 = shalt.err (!%p6795_p1)
}
  0x50   :  { %s7008_s21 = smov 256   ;;  %s7009_s19 = smov 16  }
  0x51   :  { %172 = dma.hbm_to_vmem [thread:$0]  %s7338_s13, 4096, %s167_s30, [#allocation21], %s7008_s21, %s7008_s21, %s7009_s19  }
  0x52   :  { %s6807_s11 = scalar_lea.vmem %s39_s8, 256  ;;  %p6812_p3 = scmp.lt.s32.totalorder %s39_s8, %s39_s8 }
  0x53   :  { %p6808_p2 = scmp.ne.s32.totalorder %s39_s8, %s6807_s11  ;;  %p6813_p4 = scmp.lt.s32.totalorder %s6807_s11, %s6807_s11 }
  0x55   :  { %p6814_p5 = por %p6813_p4, %p6812_p3 }
  0x57   :  { %p6815_p6 = pnand %p6814_p5, %p6808_p2 }
  0x59   :  { %6818 = shalt.err (!%p6815_p6)
}
  0x5a   :  { %s7352_s28 = sld [smem:[#allocation35_spill]]  ;;  %s7010_s29 = smov [#allocation7]  }
  0x5b   :  { %s62_s0 = sshll.u32 %s7010_s29, 4  ;;  %s63_s0 = int_to_ptr.vmem [resolvable:$true] %s62_s0 }
  0x5c   :  { %s6827_s20 = scalar_lea.vmem %s63_s0, 2048  ;;  %p6832_p8 = scmp.lt.s32.totalorder %s63_s0, %s63_s0 }
  0x5d   :  { %p6828_p7 = scmp.ne.s32.totalorder %s63_s0, %s6827_s20  ;;  %p6833_p9 = scmp.lt.s32.totalorder %s6827_s20, %s6827_s20 }
  0x5f   :  { %p6834_p10 = por %p6833_p9, %p6832_p8 }
  0x60   :  { %44 = dma.hbm_to_vmem [thread:$0]  %s7352_s28, 256, %s39_s8, [#allocation3], %s6999_s22, %s6999_s22, %s7000_s2  }
  0x61   :  { %p6835_p11 = pnand %p6834_p10, %p6828_p7 }
  0x63   :  { %6838 = shalt.err (!%p6835_p11)
}
  0x64   :  { %s7011_s13 = smov 512   ;;  %s7012_s30 = smov 32  }
  0x65   :  { %s7353_s3 = sld [smem:[#allocation37_spill]]  ;;  %s7013_s26 = smov [#allocation10]  }
  0x66   :  { %s84_s11 = sshll.u32 %s7013_s26, 4  ;;  %s7014_s27 = smov [#allocation13]   ;;  %s85_s11 = int_to_ptr.vmem [resolvable:$true] %s84_s11 }
  0x67   :  { %s111_s8 = sshll.u32 %s7014_s27, 4  ;;  %s6847_s6 = scalar_lea.vmem %s85_s11, 32768  ;;  %s112_s8 = int_to_ptr.vmem [resolvable:$true] %s111_s8 }
  0x68   :  { %p6848_p12 = scmp.ne.s32.totalorder %s85_s11, %s6847_s6  ;;  %p6852_p13 = scmp.lt.s32.totalorder %s85_s11, %s85_s11 }
  0x69   :  { %p6853_p0 = scmp.lt.s32.totalorder %s6847_s6, %s6847_s6 }
  0x6b   :  { %68 = dma.hbm_to_vmem [thread:$0]  %s7353_s3, 2048, %s63_s0, [#allocation6], %s7011_s13, %s7011_s13, %s7012_s30  }
  0x6c   :  { %p6854_p1 = por %p6853_p0, %p6852_p13 }
  0x6e   :  { %p6855_p2 = pnand %p6854_p1, %p6848_p12 }
  0x70   :  { %6858 = shalt.err (!%p6855_p2)
}
  0x71   :  { %90 = dma.hbm_to_vmem [thread:$0]  %s7329_s4, 32768, %s85_s11, [#allocation9], %s7008_s21, %s7008_s21, %s7009_s19  }
  0x72   :  { %s6867_s0 = scalar_lea.vmem %s112_s8, 32  ;;  %p6872_p4 = scmp.lt.s32.totalorder %s112_s8, %s112_s8 }
  0x73   :  { %p6868_p3 = scmp.ne.s32.totalorder %s112_s8, %s6867_s0  ;;  %p6873_p5 = scmp.lt.s32.totalorder %s6867_s0, %s6867_s0 }
  0x75   :  { %p6874_p6 = por %p6873_p5, %p6872_p4 }
  0x77   :  { %p6875_p7 = pnand %p6874_p6, %p6868_p3 }
  0x79   :  { %6878 = shalt.err (!%p6875_p7)
}
  0x7a   :  { %114 = dma.hbm_to_vmem [thread:$0]  %s7332_s7, 32, %s112_s8, [#allocation12]  }
  0x7b   :  { %s7015_s30 = smov [#allocation16]   ;;  %s7016_s1 = smov [#allocation19]  }
  0x7c   :  { %s133_s23 = sshll.u32 %s7015_s30, 4  ;;  %s154_s3 = sshll.u32 %s7016_s1, 4  ;;  %s134_s23 = int_to_ptr.vmem [resolvable:$true] %s133_s23  ;;  %s155_s3 = int_to_ptr.vmem [resolvable:$true] %s154_s3 }
  0x7d   :  { %s6887_s26 = scalar_lea.vmem %s134_s23, 16  ;;  %s6891_s4 = scalar_lea.vmem %s134_s23, 32 }
  0x7e   :  { %p6888_p8 = scmp.ne.s32.totalorder %s134_s23, %s6887_s26  ;;  %p6892_p9 = scmp.lt.s32.totalorder %s134_s23, %s134_s23 }
  0x7f   :  { %p6893_p10 = scmp.lt.s32.totalorder %s6891_s4, %s6887_s26 }
  0x81   :  { %p6894_p11 = por %p6893_p10, %p6892_p9 }
  0x83   :  { %p6895_p12 = pnand %p6894_p11, %p6888_p8 }
  0x85   :  { %6898 = shalt.err (!%p6895_p12)
}
  0x86   :  { %136 = dma.hbm_to_vmem [thread:$0]  %s7334_s9, 16, %s134_s23, [#allocation15]  }
  0x87   :  { %s6907_s6 = scalar_lea.vmem %s155_s3, 4096  ;;  %p6912_p0 = scmp.lt.s32.totalorder %s155_s3, %s155_s3 }
  0x88   :  { %p6908_p13 = scmp.ne.s32.totalorder %s155_s3, %s6907_s6  ;;  %p6913_p1 = scmp.lt.s32.totalorder %s6907_s6, %s6907_s6 }
  0x8a   :  { %p6914_p2 = por %p6913_p1, %p6912_p0 }
  0x8c   :  { %p6915_p3 = pnand %p6914_p2, %p6908_p13 }
  0x8e   :  { %6918 = shalt.err (!%p6915_p3)
}
  0x8f   :  { %160 = dma.hbm_to_vmem [thread:$0]  %s7337_s12, 4096, %s155_s3, [#allocation18], %s7008_s21, %s7008_s21, %s7009_s19  }
  0x90   :  { %s7017_s28 = smov [#allocation22]   ;;  %s7018_s0 = smov [#allocation23]  }
  0x91   :  { %s180_s29 = sshll.u32 %s7017_s28, 4  ;;  %s194_s20 = sshll.u32 %s7018_s0, 4  ;;  %s181_s29 = int_to_ptr.vmem [resolvable:$true] %s180_s29  ;;  %s195_s20 = int_to_ptr.vmem [resolvable:$true] %s194_s20 }
  0x92   :  { %s6927_s9 = scalar_lea.vmem %s181_s29, 16384  ;;  %p6932_p5 = scmp.lt.s32.totalorder %s181_s29, %s181_s29 }
  0x93   :  { %p6928_p4 = scmp.ne.s32.totalorder %s181_s29, %s6927_s9  ;;  %p6933_p6 = scmp.lt.s32.totalorder %s6927_s9, %s6927_s9 }
  0x95   :  { %p6934_p7 = por %p6933_p6, %p6932_p5 }
  0x97   :  { %p6935_p8 = pnand %p6934_p7, %p6928_p4 }
  0x99   :  { %6938 = shalt.err (!%p6935_p8)
}
  0x9a   :  { %186 = dma.hbm_to_vmem [thread:$0]  %s7340_s15, 16384, %s181_s29, [#allocation21], %s7008_s21, %s7008_s21, %s7009_s19  }
  0x9b   :  { %s6947_s12 = scalar_lea.vmem %s195_s20, 4096  ;;  %p6952_p10 = scmp.lt.s32.totalorder %s195_s20, %s195_s20 }
  0x9c   :  { %p6948_p9 = scmp.ne.s32.totalorder %s195_s20, %s6947_s12  ;;  %p6953_p11 = scmp.lt.s32.totalorder %s6947_s12, %s6947_s12 }
  0x9e   :  { %p6954_p12 = por %p6953_p11, %p6952_p10 }
  0xa0   :  { %p6955_p13 = pnand %p6954_p12, %p6948_p9 }
  0xa2   :  { %6958 = shalt.err (!%p6955_p13)
}
  0xa3   :  { %200 = dma.hbm_to_vmem [thread:$0]  %s7342_s17, 4096, %s195_s20, [#allocation24], %s7003_s24, %s7003_s24, %s7004_s25  }
  0xa4   :  { %6979 = dma.done.wait [#allocation3], 256  }
  0xa5   :  { %6980 = vsyncadd [#allocation3], 4294967040 }
  0xa6   :  { %6981 = dma.done.wait [#allocation6], 2304  }
  0xa7   :  { %6982 = vsyncadd [#allocation6], 4294964992 }
  0xa8   :  { %6983 = dma.done.wait [#allocation9], 32896  }
  0xa9   :  { %6984 = vsyncadd [#allocation9], 4294934400 }
  0xaa   :  { %6985 = dma.done.wait [#allocation12], 8224  }
  0xab   :  { %6986 = vsyncadd [#allocation12], 4294959072 }
  0xac   :  { %6987 = dma.done.wait [#allocation15], 2064  }
  0xad   :  { %6988 = vsyncadd [#allocation15], 4294965232 }
  0xae   :  { %6989 = dma.done.wait [#allocation18], 4112  }
  0xaf   :  { %6990 = vsyncadd [#allocation18], 4294963184 }
  0xb0   :  { %6991 = dma.done.wait [#allocation21], 20480  }
  0xb1   :  { %6992 = vsyncadd [#allocation21], 4294946816 }
  0xb2   :  { %6993 = dma.done.wait [#allocation24], 4096  }
  0xb3   :  { %6994 = vsyncadd [#allocation24], 4294963200  ;;  %v7019_v0 = vmov 0   ;;  %v257_v1 = vld [vmem:[#allocation7 + $0x40] sm:$0xff]  ;;  %v258_v8 = vld [vmem:[#allocation7 + $0x48] sm:$0xff]  ;;  %vm387_vm0 = vcmask 261120  }
  0xb4   :  { %423 = vmatprep.mubr.bf16.mxu1 %v7019_v0  ;;  %509 = vmatprep.mubr.bf16.mxu0 %v7019_v0  ;;  %v261_v2 = vld [vmem:[#allocation7 + $0x60] sm:$0xff]  ;;  %v262_v9 = vld [vmem:[#allocation7 + $0x68] sm:$0xff]  ;;  %v259_v11 = vld [vmem:[#allocation7 + $0x50] sm:$0xff]  ;;  %vm7021_vm1 = vmmov 0   ;;  %vm3185_vm2 = vcmask 130048   ;;  %s7022_s3 = smov [#allocation25]  }
  0xb5   :  { %v249_v3 = vld [vmem:[#allocation7] sm:$0xff]  ;;  %v5186_v4 = vcombine.high %v257_v1, %v261_v2  ;;  %v5185_v5 = vcombine.low %v257_v1, %v261_v2  ;;  %v263_v12 = vld [vmem:[#allocation7 + $0x70] sm:$0xff]  ;;  %v247_v14 = vld [vmem:[#allocation2 + $0x8] sm:$0xff]  ;;  %v5188_v19 = vcombine.high %v258_v8, %v262_v9  ;;  %v5187_v25 = vcombine.low %v258_v8, %v262_v9  ;;  %s5158_s26 = sshll.u32 %s7022_s3, 4  ;;  %s5159_s26 = int_to_ptr.vmem [resolvable:$true] %s5158_s26 }
  0xb6   :  { %v253_v6 = vld [vmem:[#allocation7 + $0x20] sm:$0xff]  ;;  %v5190_v15 = vcombine.high %v259_v11, %v263_v12  ;;  %v5189_v16 = vcombine.low %v259_v11, %v263_v12  ;;  %v251_v17 = vld [vmem:[#allocation7 + $0x10] sm:$0xff]  ;;  %v250_v20 = vld [vmem:[#allocation7 + $0x8] sm:$0xff]  ;;  %s6959_s4 = scalar_lea.vmem %s5159_s26, 256  ;;  %p6964_p1 = scmp.lt.s32.totalorder %s5159_s26, %s5159_s26 }
  0xb7   :  { %v5178_v7 = vcombine.high %v249_v3, %v253_v6  ;;  %403 = vmatprep.subr.bf16.mxu1 %v5186_v4  ;;  %v246_v10 = vld [vmem:[#allocation2] sm:$0xff]  ;;  %v5177_v13 = vcombine.low %v249_v3, %v253_v6  ;;  %v255_v18 = vld [vmem:[#allocation7 + $0x30] sm:$0xff]  ;;  %v254_v22 = vld [vmem:[#allocation7 + $0x28] sm:$0xff]  ;;  %p6960_p0 = scmp.ne.s32.totalorder %s5159_s26, %s6959_s4  ;;  %p6965_p2 = scmp.lt.s32.totalorder %s6959_s4, %s6959_s4 }
  0xb8   :  { %404 = vmatpush1.bf16.msra.mxu1 %v5185_v5  ;;  %v5182_v21 = vcombine.high %v251_v17, %v255_v18  ;;  %489 = vmatprep.subr.bf16.mxu0 %v5190_v15  ;;  %v248_v23 = vpack.c.bf16 %v247_v14, %v246_v10  ;;  %v5181_v24 = vcombine.low %v251_v17, %v255_v18  ;;  %v260_v27 = vld [vmem:[#allocation7 + $0x58] sm:$0xff] }
  0xb9   :  { %405 = vmatprep.subr.bf16.mxu1 %v5178_v7  ;;  %490 = vmatpush1.bf16.msra.mxu0 %v5189_v16  ;;  %v5180_v26 = vcombine.high %v250_v20, %v254_v22  ;;  %v5864_v28 = vld [vmem:[#allocation10 + $0xe4] ss:$16 sps:$4 sm:$0xff]   ;;  %v5862_v30 = vld [vmem:[#allocation10 + $0xe0] ss:$16 sps:$4 sm:$0xff]   ;;  %v5179_v31 = vcombine.low %v250_v20, %v254_v22  ;;  %p6966_p3 = por %p6965_p2, %p6964_p1 }
  0xba   :  { %491 = vmatprep.subr.bf16.mxu0 %v5182_v21  ;;  %v264_v29 = vld [vmem:[#allocation7 + $0x78] sm:$0xff] }
  0xbb   :  { %v5867_v32 = vld [vmem:[#allocation10 + $0xc4] ss:$16 sps:$4 sm:$0xff]   ;;  %v5192_v33 = vcombine.high %v260_v27, %v264_v29  ;;  %v5865_v36 = vld [vmem:[#allocation10 + $0xc0] ss:$16 sps:$4 sm:$0xff]   ;;  %v5191_v37 = vcombine.low %v260_v27, %v264_v29  ;;  %p6967_p4 = pnand %p6966_p3, %p6960_p0 }
  0xbc   :  { %406 = vmatpush1.bf16.msra.mxu1 %v5177_v13  ;;  %v252_v34 = vld [vmem:[#allocation7 + $0x18] sm:$0xff] }
  0xbd   :  { %446 = vmatprep.subr.bf16.mxu1 %v5188_v19  ;;  %492 = vmatpush1.bf16.msra.mxu0 %v5181_v24  ;;  %v256_v35 = vld [vmem:[#allocation7 + $0x38] sm:$0xff] }
  0xbe   :  { %2145 = vmatprep.subr.bf16.mxu0 %v5864_v28  ;;  %v5184_v38 = vcombine.high %v252_v34, %v256_v35  ;;  %v5870_v39 = vld [vmem:[#allocation10 + $0xa4] ss:$16 sps:$4 sm:$0xff]   ;;  %v5868_v40 = vld [vmem:[#allocation10 + $0xa0] ss:$16 sps:$4 sm:$0xff]   ;;  %v5183_v41 = vcombine.low %v252_v34, %v256_v35 }
  0xbf   :  { %5193 = vmatmul.mubr.msk.bf16.vlgmr.msra.gmra.mxu1 %vm387_vm0, %v248_v23  ;;  %v5876_v42 = vld [vmem:[#allocation10 + $0x84] ss:$16 sps:$4 sm:$0xff]   ;;  %v5874_v44 = vld [vmem:[#allocation10 + $0x80] ss:$16 sps:$4 sm:$0xff]  }
  0xc0   :  { %447 = vmatpush1.bf16.msra.mxu1 %v5187_v25  ;;  %466 = vmatprep.mubr.bf16.mxu1 %v7019_v0  ;;  %v5873_v43 = vld [vmem:[#allocation10 + $0x2e4] ss:$16 sps:$4 sm:$0xff]   ;;  %v5871_v45 = vld [vmem:[#allocation10 + $0x2e0] ss:$16 sps:$4 sm:$0xff]  }
  0xc1   :  { %448 = vmatprep.subr.bf16.mxu1 %v5180_v26  ;;  %5195 = vmatmul.mubr.msk.bf16.vlgmr.msra.gmra.mxu0 %vm387_vm0, %v248_v23  ;;  %v5882_v46 = vld [vmem:[#allocation10 + $0x64] ss:$16 sps:$4 sm:$0xff]   ;;  %v5880_v48 = vld [vmem:[#allocation10 + $0x60] ss:$16 sps:$4 sm:$0xff]  }
  0xc2   :  { %2146 = vmatpush1.bf16.msra.mxu0 %v5862_v30  ;;  %v5879_v47 = vld [vmem:[#allocation10 + $0x2c4] ss:$16 sps:$4 sm:$0xff]   ;;  %v5877_v49 = vld [vmem:[#allocation10 + $0x2c0] ss:$16 sps:$4 sm:$0xff]  }
  0xc3   :  { %2147 = vmatprep.subr.bf16.mxu0 %v5867_v32  ;;  %v5888_v50 = vld [vmem:[#allocation10 + $0x44] ss:$16 sps:$4 sm:$0xff]   ;;  %v5886_v52 = vld [vmem:[#allocation10 + $0x40] ss:$16 sps:$4 sm:$0xff]  }
  0xc4   :  { %449 = vmatpush1.bf16.msra.mxu1 %v5179_v31  ;;  %v5885_v51 = vld [vmem:[#allocation10 + $0x2a4] ss:$16 sps:$4 sm:$0xff]   ;;  %v5883_v53 = vld [vmem:[#allocation10 + $0x2a0] ss:$16 sps:$4 sm:$0xff]  }
  0xc5   :  { %532 = vmatprep.subr.bf16.mxu1 %v5192_v33  ;;  %v5894_v54 = vld [vmem:[#allocation10 + $0x24] ss:$16 sps:$4 sm:$0xff]   ;;  %v5892_v56 = vld [vmem:[#allocation10 + $0x20] ss:$16 sps:$4 sm:$0xff]  }
  0xc6   :  { %2148 = vmatpush1.bf16.msra.mxu0 %v5865_v36  ;;  %v5891_v55 = vld [vmem:[#allocation10 + $0x284] ss:$16 sps:$4 sm:$0xff]   ;;  %v5889_v57 = vld [vmem:[#allocation10 + $0x280] ss:$16 sps:$4 sm:$0xff]  }
  0xc7   :  { %5194 = vmatmul.mubr.msk.bf16.vlgmr.msra.gmra.mxu1 %vm387_vm0, %v248_v23  ;;  %2149 = vmatprep.subr.bf16.mxu0 %v5870_v39  ;;  %v5900_v58 = vld [vmem:[#allocation10 + $0x4] ss:$16 sps:$4 sm:$0xff]   ;;  %v5898_v60 = vld [vmem:[#allocation10] ss:$16 sps:$4 sm:$0xff]   ;;  %v267_v39 = vlaneseq }
  0xc8   :  { %533 = vmatpush1.bf16.msra.mxu1 %v5191_v37  ;;  %552 = vmatprep.mubr.bf16.mxu1 %v7019_v0  ;;  %v5897_v59 = vld [vmem:[#allocation10 + $0x264] ss:$16 sps:$4 sm:$0xff]   ;;  %v5895_v61 = vld [vmem:[#allocation10 + $0x260] ss:$16 sps:$4 sm:$0xff]  }
  0xc9   :  { %534 = vmatprep.subr.bf16.mxu1 %v5184_v38  ;;  %v5906_v62 = vld [vmem:[#allocation10 + $0x1e4] ss:$16 sps:$4 sm:$0xff]   ;;  %v5904_v1 = vld [vmem:[#allocation10 + $0x1e0] ss:$16 sps:$4 sm:$0xff]  }
  0xca   :  { %2150 = vmatpush1.bf16.msra.mxu0 %v5868_v40  ;;  %v5903_v63 = vld [vmem:[#allocation10 + $0x244] ss:$16 sps:$4 sm:$0xff]   ;;  %v5901_v2 = vld [vmem:[#allocation10 + $0x240] ss:$16 sps:$4 sm:$0xff]   ;;  %v7200_v40 = vshrl.u32 %v267_v39, 7 }
  0xcb   :  { %2151 = vmatprep.subr.bf16.mxu0 %v5876_v42  ;;  %v5912_v3 = vld [vmem:[#allocation10 + $0x1c4] ss:$16 sps:$4 sm:$0xff]   ;;  %v5910_v5 = vld [vmem:[#allocation10 + $0x1c0] ss:$16 sps:$4 sm:$0xff]  }
  0xcc   :  { %535 = vmatpush1.bf16.msra.mxu1 %v5183_v41  ;;  %v5909_v4 = vld [vmem:[#allocation10 + $0x224] ss:$16 sps:$4 sm:$0xff]   ;;  %v5907_v6 = vld [vmem:[#allocation10 + $0x220] ss:$16 sps:$4 sm:$0xff]   ;;  %v285_v41 = vsub.s32 4, %v7200_v40  ;;  %v7204_v42 = vsub.s32 1, %v7200_v40 }
  0xcd   :  { %2188 = vmatprep.subr.bf16.mxu1 %v5873_v43  ;;  %v5918_v7 = vld [vmem:[#allocation10 + $0x1a4] ss:$16 sps:$4 sm:$0xff]   ;;  %v5916_v9 = vld [vmem:[#allocation10 + $0x1a0] ss:$16 sps:$4 sm:$0xff]   ;;  %v7207_v43 = vsub.s32 0, %v7200_v40 }
  0xce   :  { %2152 = vmatpush1.bf16.msra.mxu0 %v5874_v44  ;;  %v5915_v8 = vld [vmem:[#allocation10 + $0x204] ss:$16 sps:$4 sm:$0xff]   ;;  %v5913_v10 = vld [vmem:[#allocation10 + $0x200] ss:$16 sps:$4 sm:$0xff]   ;;  %v289_v44 = vsub.s32 5, %v7200_v40 }
  0xcf   :  { %5196 = vmatmul.mubr.msk.bf16.vlgmr.msra.gmra.mxu1 %vm387_vm0, %v248_v23  ;;  %2153 = vmatprep.subr.bf16.mxu0 %v5882_v46  ;;  %v5924_v11 = vld [vmem:[#allocation10 + $0x184] ss:$16 sps:$4 sm:$0xff]   ;;  %v5922_v13 = vld [vmem:[#allocation10 + $0x180] ss:$16 sps:$4 sm:$0xff]  }
  0xd0   :  { %2189 = vmatpush1.bf16.msra.mxu1 %v5871_v45  ;;  %v5921_v12 = vld [vmem:[#allocation10 + $0x3e4] ss:$16 sps:$4 sm:$0xff]   ;;  %v5919_v14 = vld [vmem:[#allocation10 + $0x3e0] ss:$16 sps:$4 sm:$0xff]   ;;  %v7210_v45 = vld [vmem:[#allocation8] sm:$0xff] }
  0xd1   :  { %2190 = vmatprep.subr.bf16.mxu1 %v5879_v47  ;;  %v5930_v15 = vld [vmem:[#allocation10 + $0x164] ss:$16 sps:$4 sm:$0xff]   ;;  %v5928_v17 = vld [vmem:[#allocation10 + $0x160] ss:$16 sps:$4 sm:$0xff]   ;;  %v286_v47 = vrot.slane %v7210_v45, %v285_v41 }
  0xd2   :  { %2154 = vmatpush1.bf16.msra.mxu0 %v5880_v48  ;;  %v5927_v16 = vld [vmem:[#allocation10 + $0x3c4] ss:$16 sps:$4 sm:$0xff]   ;;  %v5925_v18 = vld [vmem:[#allocation10 + $0x3c0] ss:$16 sps:$4 sm:$0xff]   ;;  %v274_v48 = vrot.slane %v7210_v45, %v7204_v42 }
  0xd3   :  { %2155 = vmatprep.subr.bf16.mxu0 %v5888_v50  ;;  %v5933_v19 = vld [vmem:[#allocation10 + $0x3a4] ss:$16 sps:$4 sm:$0xff]   ;;  %v5931_v20 = vld [vmem:[#allocation10 + $0x3a0] ss:$16 sps:$4 sm:$0xff]  }
  0xd4   :  { %2191 = vmatpush1.bf16.msra.mxu1 %v5877_v49  ;;  %v5936_v21 = vld [vmem:[#allocation10 + $0x144] ss:$16 sps:$4 sm:$0xff]   ;;  %v5934_v23 = vld [vmem:[#allocation10 + $0x140] ss:$16 sps:$4 sm:$0xff]   ;;  %v270_v49 = vrot.slane %v7210_v45, %v7207_v43 }
  0xd5   :  { %2192 = vmatprep.subr.bf16.mxu1 %v5885_v51  ;;  %v5939_v22 = vld [vmem:[#allocation10 + $0x384] ss:$16 sps:$4 sm:$0xff]   ;;  %v5937_v24 = vld [vmem:[#allocation10 + $0x380] ss:$16 sps:$4 sm:$0xff]   ;;  %v290_v51 = vrot.slane %v7210_v45, %v289_v44 }
  0xd6   :  { %2156 = vmatpush1.bf16.msra.mxu0 %v5886_v52  ;;  %v5942_v25 = vld [vmem:[#allocation10 + $0x124] ss:$16 sps:$4 sm:$0xff]   ;;  %v5940_v27 = vld [vmem:[#allocation10 + $0x120] ss:$16 sps:$4 sm:$0xff]  }
  0xd7   :  { %2157 = vmatprep.subr.bf16.mxu0 %v5894_v54  ;;  %v5945_v26 = vld [vmem:[#allocation10 + $0x364] ss:$16 sps:$4 sm:$0xff]   ;;  %v5943_v28 = vld [vmem:[#allocation10 + $0x360] ss:$16 sps:$4 sm:$0xff]  }
  0xd8   :  { %2193 = vmatpush1.bf16.msra.mxu1 %v5883_v53  ;;  %v5948_v29 = vld [vmem:[#allocation10 + $0x104] ss:$16 sps:$4 sm:$0xff]   ;;  %v5946_v31 = vld [vmem:[#allocation10 + $0x100] ss:$16 sps:$4 sm:$0xff]  }
  0xd9   :  { %2194 = vmatprep.subr.bf16.mxu1 %v5891_v55  ;;  %v5951_v30 = vld [vmem:[#allocation10 + $0x344] ss:$16 sps:$4 sm:$0xff]   ;;  %v5949_v32 = vld [vmem:[#allocation10 + $0x340] ss:$16 sps:$4 sm:$0xff]  }
  0xda   :  { %2158 = vmatpush1.bf16.msra.mxu0 %v5892_v56  ;;  %v5954_v33 = vld [vmem:[#allocation10 + $0x324] ss:$16 sps:$4 sm:$0xff]   ;;  %v5952_v35 = vld [vmem:[#allocation10 + $0x320] ss:$16 sps:$4 sm:$0xff]  }
  0xdb   :  { %2159 = vmatprep.subr.bf16.mxu0 %v5900_v58  ;;  %v5957_v34 = vld [vmem:[#allocation10 + $0x4e4] ss:$16 sps:$4 sm:$0xff]   ;;  %v5958_v37 = vld [vmem:[#allocation10 + $0x300] ss:$16 sps:$4 sm:$0xff]   ;;  %v7222_v58 = vsub.s32 3, %v7200_v40 }
  0xdc   :  { %2195 = vmatpush1.bf16.msra.mxu1 %v5889_v57  ;;  %v5960_v36 = vld [vmem:[#allocation10 + $0x304] ss:$16 sps:$4 sm:$0xff]   ;;  %v7219_v57 = vsub.s32 2, %v7200_v40 }
  0xdd   :  { %2196 = vmatprep.subr.bf16.mxu1 %v5897_v59  ;;  %v5969_v38 = vld [vmem:[#allocation10 + $0x6e4] ss:$16 sps:$4 sm:$0xff]  }
  0xde   :  { %2160 = vmatpush1.bf16.msra.mxu0 %v5898_v60  ;;  %v5972_v41 = vld [vmem:[#allocation10 + $0x484] ss:$16 sps:$4 sm:$0xff]  }
  0xdf   :  { %2161 = vmatprep.subr.bf16.mxu0 %v5906_v62  ;;  %v5975_v44 = vld [vmem:[#allocation10 + $0x6c4] ss:$16 sps:$4 sm:$0xff]  }
  0xe0   :  { %2197 = vmatpush1.bf16.msra.mxu1 %v5895_v61 }
  0xe1   :  { %2198 = vmatprep.subr.bf16.mxu1 %v5903_v63 }
  0xe2   :  { %2162 = vmatpush2.bf16.msra.mxu0 %v5904_v1 }
  0xe3   :  { %2163 = vmatprep.subr.bf16.mxu0 %v5912_v3 }
  0xe4   :  { %2199 = vmatpush1.bf16.msra.mxu1 %v5901_v2 }
  0xe5   :  { %2200 = vmatprep.subr.bf16.mxu1 %v5909_v4 }
  0xe6   :  { %2164 = vmatpush2.bf16.msra.mxu0 %v5910_v5 }
  0xe7   :  { %2165 = vmatprep.subr.bf16.mxu0 %v5918_v7 }
  0xe8   :  { %2201 = vmatpush1.bf16.msra.mxu1 %v5907_v6 }
  0xe9   :  { %2202 = vmatprep.subr.bf16.mxu1 %v5915_v8  ;;  %v278_v8 = vrot.slane %v7210_v45, %v7219_v57 }
  0xea   :  { %2166 = vmatpush2.bf16.msra.mxu0 %v5916_v9  ;;  %v282_v9 = vrot.slane %v7210_v45, %v7222_v58 }
  0xeb   :  { %2167 = vmatprep.subr.bf16.mxu0 %v5924_v11 }
  0xec   :  { %2203 = vmatpush1.bf16.msra.mxu1 %v5913_v10  ;;  %v5955_v10 = vld [vmem:[#allocation10 + $0x4e0] ss:$16 sps:$4 sm:$0xff]  }
  0xed   :  { %2204 = vmatprep.subr.bf16.mxu1 %v5921_v12 }
  0xee   :  { %2168 = vmatpush2.bf16.msra.mxu0 %v5922_v13 }
  0xef   :  { %2169 = vmatprep.subr.bf16.mxu0 %v5930_v15 }
  0xf0   :  { %2205 = vmatpush2.bf16.msra.mxu1 %v5919_v14  ;;  %v5963_v14 = vld [vmem:[#allocation10 + $0x4c4] ss:$16 sps:$4 sm:$0xff]  }
  0xf1   :  { %2206 = vmatprep.subr.bf16.mxu1 %v5927_v16 }
  0xf2   :  { %2170 = vmatpush2.bf16.msra.mxu0 %v5928_v17 }
  0xf3   :  { %2171 = vmatprep.subr.bf16.mxu0 %v5936_v21 }
  0xf4   :  { %2207 = vmatpush2.bf16.msra.mxu1 %v5925_v18 }
  0xf5   :  { %2208 = vmatprep.subr.bf16.mxu1 %v5933_v19  ;;  %v297_v19 = vsub.s32 7, %v7200_v40 }
  0xf6   :  { %2172 = vmatpush2.bf16.msra.mxu0 %v5934_v23 }
  0xf7   :  { %2173 = vmatprep.subr.bf16.mxu0 %v5942_v25 }
  0xf8   :  { %2209 = vmatpush2.bf16.msra.mxu1 %v5931_v20 }
  0xf9   :  { %2210 = vmatprep.subr.bf16.mxu1 %v5939_v22 }
  0xfa   :  { %2174 = vmatpush2.bf16.msra.mxu0 %v5940_v27 }
  0xfb   :  { %2175 = vmatprep.subr.bf16.mxu0 %v5948_v29 }
  0xfc   :  { %2211 = vmatpush2.bf16.msra.mxu1 %v5937_v24 }
  0xfd   :  { %2212 = vmatprep.subr.bf16.mxu1 %v5945_v26 }
  0xfe   :  { %2176 = vmatpush2.bf16.msra.mxu0 %v5946_v31  ;;  %v298_v31 = vrot.slane %v7210_v45, %v297_v19  ;;  %v6011_v19 = vld [vmem:[#allocation10 + $0x604] ss:$16 sps:$4 sm:$0xff]  }
  0xff   :  { %2231 = vmatprep.subr.bf16.mxu0 %v5957_v34 }
 0x100   :  { %2213 = vmatpush2.bf16.msra.mxu1 %v5943_v28  ;;  %v5961_v28 = vld [vmem:[#allocation10 + $0x4c0] ss:$16 sps:$4 sm:$0xff]  }
 0x101   :  { %2214 = vmatprep.subr.bf16.mxu1 %v5951_v30 }
 0x104   :  { %2215 = vmatpush2.bf16.msra.mxu1 %v5949_v32 }
 0x105   :  { %2216 = vmatprep.subr.bf16.mxu1 %v5954_v33  ;;  %v5966_v33 = vld [vmem:[#allocation10 + $0x4a4] ss:$16 sps:$4 sm:$0xff]  }
 0x108   :  { %2217 = vmatpush2.bf16.msra.mxu1 %v5952_v35 }
 0x109   :  { %2218 = vmatprep.subr.bf16.mxu1 %v5960_v36 }
 0x10c   :  { %2219 = vmatpush2.bf16.msra.mxu1 %v5958_v37  ;;  %v5964_v37 = vld [vmem:[#allocation10 + $0x4a0] ss:$16 sps:$4 sm:$0xff]  }
 0x10d   :  { %2274 = vmatprep.subr.bf16.mxu1 %v5969_v38  ;;  %v5967_v38 = vld [vmem:[#allocation10 + $0x6e0] ss:$16 sps:$4 sm:$0xff]  }
 0x17f   :  { %v425_v46 = vpop.f32.mrf.mxu1 }
 0x180   :  { %v426_v60 = vadd.f32 %v425_v46, %v270_v49 }
 0x181   :  { %v427_v50 = vpop.f32.mrf.mxu1  ;;  %v511_v52 = vpop.f32.mrf.mxu0 }
 0x182   :  { %v512_v54 = vadd.f32 %v511_v52, %v286_v47  ;;  %v428_v55 = vadd.f32 %v427_v50, %v274_v48  ;;  %v563_v12 = vmax.f32 %v426_v60, 0.0  ;;  %v5973_v52 = vld [vmem:[#allocation10 + $0x6c0] ss:$16 sps:$4 sm:$0xff]  }
 0x183   :  { %v429_v53 = vpop.f32.mrf.mxu1  ;;  %v513_v59 = vpop.f32.mrf.mxu0 }
 0x184   :  { %v430_v56 = vadd.f32 %v429_v53, %v270_v49  ;;  %v514_v62 = vadd.f32 %v513_v59, %v290_v51  ;;  %v567_v4 = vmax.f32 %v512_v54, 0.0  ;;  %v564_v6 = vmax.f32 %v428_v55, 0.0  ;;  %v5981_v59 = vld [vmem:[#allocation10 + $0x6a4] ss:$16 sps:$4 sm:$0xff]  }
 0x185   :  { %v431_v61 = vpop.f32.mrf.mxu1  ;;  %v515_v1 = vpop.f32.mrf.mxu0 }
 0x186   :  { %v432_v63 = vadd.f32 %v431_v61, %v274_v48  ;;  %v571_v2 = vmax.f32 %v430_v56, 0.0  ;;  %v516_v5 = vadd.f32 %v515_v1, %v286_v47  ;;  %v568_v15 = vmax.f32 %v514_v62, 0.0  ;;  %v5978_v56 = vld [vmem:[#allocation10 + $0x464] ss:$16 sps:$4 sm:$0xff]   ;;  %v5976_v61 = vld [vmem:[#allocation10 + $0x460] ss:$16 sps:$4 sm:$0xff]  }
 0x187   :  { %v468_v3 = vpop.f32.mrf.mxu1  ;;  %v517_v11 = vpop.f32.mrf.mxu0  ;;  %v5979_v62 = vld [vmem:[#allocation10 + $0x6a0] ss:$16 sps:$4 sm:$0xff]   ;;  %v5984_v1 = vld [vmem:[#allocation10 + $0x444] ss:$16 sps:$4 sm:$0xff]  }
 0x188   :  { %v572_v7 = vmax.f32 %v432_v63, 0.0  ;;  %v575_v16 = vmax.f32 %v516_v5, 0.0  ;;  %v518_v17 = vadd.f32 %v517_v11, %v290_v51  ;;  %v7231_v20 = vpack.c.bf16 %v571_v2, %v563_v12  ;;  %v5970_v51 = vld [vmem:[#allocation10 + $0x480] ss:$16 sps:$4 sm:$0xff]   ;;  %v5987_v2 = vld [vmem:[#allocation10 + $0x684] ss:$16 sps:$4 sm:$0xff]  }
 0x189   :  { %v470_v13 = vpop.f32.mrf.mxu1  ;;  %v469_v26 = vadd.f32 %v468_v3, %v278_v8  ;;  %v5982_v3 = vld [vmem:[#allocation10 + $0x440] ss:$16 sps:$4 sm:$0xff]   ;;  %v5990_v5 = vld [vmem:[#allocation10 + $0x424] ss:$16 sps:$4 sm:$0xff]  }
 0x18a   :  { %v7228_v18 = vpack.c.bf16 %v572_v7, %v564_v6  ;;  %v7233_v22 = vpack.c.bf16 %v575_v16, %v567_v4  ;;  %v576_v23 = vmax.f32 %v518_v17, 0.0  ;;  %v471_v24 = vadd.f32 %v470_v13, %v282_v9  ;;  %v5985_v4 = vld [vmem:[#allocation10 + $0x680] ss:$16 sps:$4 sm:$0xff]   ;;  %v5993_v6 = vld [vmem:[#allocation10 + $0x664] ss:$16 sps:$4 sm:$0xff]  }
 0x18b   :  { %v472_v21 = vpop.f32.mrf.mxu1  ;;  %v565_v39 = vmax.f32 %v469_v26, 0.0  ;;  %v5988_v7 = vld [vmem:[#allocation10 + $0x420] ss:$16 sps:$4 sm:$0xff]   ;;  %v6002_v13 = vld [vmem:[#allocation10 + $0x5e4] ss:$16 sps:$4 sm:$0xff]  }
 0x18c   :  { %v473_v25 = vadd.f32 %v472_v21, %v278_v8  ;;  %2177 = vmatprep.mubr.bf16.mxu0 %v7228_v18  ;;  %v7237_v29 = vpack.c.bf16 %v576_v23, %v568_v15  ;;  %v566_v35 = vmax.f32 %v471_v24, 0.0  ;;  %v5991_v8 = vld [vmem:[#allocation10 + $0x660] ss:$16 sps:$4 sm:$0xff]   ;;  %v6008_v17 = vld [vmem:[#allocation10 + $0x5c4] ss:$16 sps:$4 sm:$0xff]  }
 0x18d   :  { %v474_v27 = vpop.f32.mrf.mxu1  ;;  %2178 = vmatmul.mubr.bf16.vlgmr.msra.gmra.mxu0 %v7231_v20  ;;  %v5994_v11 = vld [vmem:[#allocation10 + $0x400] ss:$16 sps:$4 sm:$0xff]   ;;  %v6014_v24 = vld [vmem:[#allocation10 + $0x5a4] ss:$16 sps:$4 sm:$0xff]  }
 0x18e   :  { %v475_v30 = vadd.f32 %v474_v27, %v282_v9  ;;  %2232 = vmatpush1.bf16.msra.mxu0 %v5955_v10  ;;  %v573_v32 = vmax.f32 %v473_v25, 0.0  ;;  %2263 = vmatprep.mubr.bf16.mxu0 %v7237_v29  ;;  %v5996_v9 = vld [vmem:[#allocation10 + $0x404] ss:$16 sps:$4 sm:$0xff]   ;;  %v5997_v12 = vld [vmem:[#allocation10 + $0x640] ss:$16 sps:$4 sm:$0xff]  }
 0x18f   :  { %2233 = vmatprep.subr.bf16.mxu0 %v5963_v14  ;;  %v7240_v34 = vpop.f32.mrf.mxu1  ;;  %v5999_v10 = vld [vmem:[#allocation10 + $0x644] ss:$16 sps:$4 sm:$0xff]   ;;  %v6000_v15 = vld [vmem:[#allocation10 + $0x5e0] ss:$16 sps:$4 sm:$0xff]  }
 0x190   :  { %v574_v36 = vmax.f32 %v475_v30, 0.0  ;;  %v7245_v49 = vpack.c.bf16 %v573_v32, %v565_v39  ;;  %v6005_v14 = vld [vmem:[#allocation10 + $0x624] ss:$16 sps:$4 sm:$0xff]   ;;  %v6003_v16 = vld [vmem:[#allocation10 + $0x620] ss:$16 sps:$4 sm:$0xff]  }
 0x191   :  { %v556_v46 = vpop.f32.mrf.mxu1  ;;  %v6006_v21 = vld [vmem:[#allocation10 + $0x5c0] ss:$16 sps:$4 sm:$0xff]   ;;  %v6017_v25 = vld [vmem:[#allocation10 + $0x7e4] ss:$16 sps:$4 sm:$0xff]  }
 0x192   :  { %v7243_v47 = vpack.c.bf16 %v574_v36, %v566_v35  ;;  %2234 = vmatpush1.bf16.msra.mxu0 %v5961_v28  ;;  %v557_v48 = vadd.f32 %v556_v46, %v298_v31  ;;  %v6009_v23 = vld [vmem:[#allocation10 + $0x600] ss:$16 sps:$4 sm:$0xff]   ;;  %v6020_v28 = vld [vmem:[#allocation10 + $0x584] ss:$16 sps:$4 sm:$0xff]  }
 0x193   :  { %2235 = vmatprep.subr.bf16.mxu0 %v5966_v33  ;;  %v7247_v50 = vpop.f32.mrf.mxu1  ;;  %v6012_v26 = vld [vmem:[#allocation10 + $0x5a0] ss:$16 sps:$4 sm:$0xff]   ;;  %v6023_v30 = vld [vmem:[#allocation10 + $0x7c4] ss:$16 sps:$4 sm:$0xff]  }
 0x194   :  { %2220 = vmatprep.mubr.bf16.mxu1 %v7243_v47  ;;  %v570_v54 = vmax.f32 %v557_v48, 0.0  ;;  %v6015_v27 = vld [vmem:[#allocation10 + $0x7e0] ss:$16 sps:$4 sm:$0xff]   ;;  %v6026_v33 = vld [vmem:[#allocation10 + $0x564] ss:$16 sps:$4 sm:$0xff]  }
 0x195   :  { %2221 = vmatmul.mubr.bf16.vlgmr.msra.gmra.mxu1 %v7245_v49  ;;  %v560_v53 = vpop.f32.mrf.mxu1  ;;  %v6021_v32 = vld [vmem:[#allocation10 + $0x7c0] ss:$16 sps:$4 sm:$0xff]   ;;  %v6029_v35 = vld [vmem:[#allocation10 + $0x7a4] ss:$16 sps:$4 sm:$0xff]  }
 0x196   :  { %2236 = vmatpush1.bf16.msra.mxu0 %v5964_v37  ;;  %2275 = vmatpush1.bf16.msra.mxu1 %v5967_v38  ;;  %v561_v55 = vadd.f32 %v560_v53, %v298_v31  ;;  %v6018_v31 = vld [vmem:[#allocation10 + $0x580] ss:$16 sps:$4 sm:$0xff]   ;;  %v6032_v38 = vld [vmem:[#allocation10 + $0x544] ss:$16 sps:$4 sm:$0xff]  }
 0x197   :  { %2237 = vmatprep.subr.bf16.mxu0 %v5972_v41  ;;  %2276 = vmatprep.subr.bf16.mxu1 %v5975_v44  ;;  %v6024_v36 = vld [vmem:[#allocation10 + $0x560] ss:$16 sps:$4 sm:$0xff]   ;;  %v6035_v39 = vld [vmem:[#allocation10 + $0x784] ss:$16 sps:$4 sm:$0xff]  }
 0x198   :  { %v578_v60 = vmax.f32 %v561_v55, 0.0  ;;  %v6027_v37 = vld [vmem:[#allocation10 + $0x7a0] ss:$16 sps:$4 sm:$0xff]   ;;  %v6038_v46 = vld [vmem:[#allocation10 + $0x524] ss:$16 sps:$4 sm:$0xff]  }
 0x199   :  { %v6030_v41 = vld [vmem:[#allocation10 + $0x540] ss:$16 sps:$4 sm:$0xff]   ;;  %v6041_v48 = vld [vmem:[#allocation10 + $0x764] ss:$16 sps:$4 sm:$0xff]  }
 0x19a   :  { %2238 = vmatpush1.bf16.msra.mxu0 %v5970_v51  ;;  %2277 = vmatpush1.bf16.msra.mxu1 %v5973_v52  ;;  %v7251_v63 = vpack.c.bf16 %v578_v60, %v570_v54  ;;  %v6033_v44 = vld [vmem:[#allocation10 + $0x780] ss:$16 sps:$4 sm:$0xff]   ;;  %v293_v51 = vsub.s32 6, %v7200_v40  ;;  %v6044_v54 = vld [vmem:[#allocation10 + $0x504] ss:$16 sps:$4 sm:$0xff]  }
 0x19b   :  { %2239 = vmatprep.subr.bf16.mxu0 %v5978_v56  ;;  %2278 = vmatprep.subr.bf16.mxu1 %v5981_v59  ;;  %v6036_v52 = vld [vmem:[#allocation10 + $0x520] ss:$16 sps:$4 sm:$0xff]   ;;  %v6047_v55 = vld [vmem:[#allocation10 + $0x744] ss:$16 sps:$4 sm:$0xff]   ;;  %v6051_v40 = vld [vmem:[#allocation10 + $0xe8] ss:$16 sps:$4 sm:$0xff]  }
 0x19c   :  { %2306 = vmatprep.mubr.bf16.mxu1 %v7251_v63  ;;  %v6039_v53 = vld [vmem:[#allocation10 + $0x760] ss:$16 sps:$4 sm:$0xff]   ;;  %v294_v56 = vrot.slane %v7210_v45, %v293_v51  ;;  %v6113_v51 = vld [vmem:[#allocation10 + $0x3ec] ss:$16 sps:$4 sm:$0xff]  }
 0x19d   :  { %v6042_v59 = vld [vmem:[#allocation10 + $0x500] ss:$16 sps:$4 sm:$0xff]  }
 0x19e   :  { %2240 = vmatpush1.bf16.msra.mxu0 %v5976_v61  ;;  %2279 = vmatpush1.bf16.msra.mxu1 %v5979_v62  ;;  %v6045_v60 = vld [vmem:[#allocation10 + $0x740] ss:$16 sps:$4 sm:$0xff]   ;;  %v6050_v61 = vld [vmem:[#allocation10 + $0x724] ss:$16 sps:$4 sm:$0xff]   ;;  %v6053_v62 = vld [vmem:[#allocation10 + $0xec] ss:$16 sps:$4 sm:$0xff]  }
 0x19f   :  { %2241 = vmatprep.subr.bf16.mxu0 %v5984_v1  ;;  %2280 = vmatprep.subr.bf16.mxu1 %v5987_v2  ;;  %v6048_v1 = vld [vmem:[#allocation10 + $0x720] ss:$16 sps:$4 sm:$0xff]   ;;  %v555_v2 = vadd.f32 %v7240_v34, %v294_v56  ;;  %v6060_v34 = vld [vmem:[#allocation10 + $0xa8] ss:$16 sps:$4 sm:$0xff]  }
 0x1a0   :  { %v6054_v45 = vld [vmem:[#allocation10 + $0x700] ss:$16 sps:$4 sm:$0xff]  }
 0x1a2   :  { %2242 = vmatpush1.bf16.msra.mxu0 %v5982_v3  ;;  %2281 = vmatpush1.bf16.msra.mxu1 %v5985_v4  ;;  %v559_v3 = vadd.f32 %v7247_v50, %v294_v56  ;;  %v6056_v4 = vld [vmem:[#allocation10 + $0x704] ss:$16 sps:$4 sm:$0xff]   ;;  %v6063_v50 = vld [vmem:[#allocation10 + $0x2e8] ss:$16 sps:$4 sm:$0xff]  }
 0x1a3   :  { %2243 = vmatprep.subr.bf16.mxu0 %v5990_v5  ;;  %2282 = vmatprep.subr.bf16.mxu1 %v5993_v6  ;;  %v6057_v5 = vld [vmem:[#allocation10 + $0xc8] ss:$16 sps:$4 sm:$0xff]   ;;  %v6059_v6 = vld [vmem:[#allocation10 + $0xcc] ss:$16 sps:$4 sm:$0xff]  }
 0x1a4   :  { %v6114_v56 = vld [vmem:[#allocation10 + $0x188] ss:$16 sps:$4 sm:$0xff]  }
 0x1a6   :  { %2244 = vmatpush1.bf16.msra.mxu0 %v5988_v7  ;;  %2283 = vmatpush1.bf16.msra.mxu1 %v5991_v8  ;;  %v569_v7 = vmax.f32 %v555_v2, 0.0  ;;  %v577_v8 = vmax.f32 %v559_v3, 0.0  ;;  %v6131_v2 = vld [vmem:[#allocation10 + $0x38c] ss:$16 sps:$4 sm:$0xff]   ;;  %v6126_v3 = vld [vmem:[#allocation10 + $0x148] ss:$16 sps:$4 sm:$0xff]  }
 0x1a7   :  { %2245 = vmatprep.subr.bf16.mxu0 %v5996_v9  ;;  %2284 = vmatprep.subr.bf16.mxu1 %v5999_v10  ;;  %v6062_v9 = vld [vmem:[#allocation10 + $0xac] ss:$16 sps:$4 sm:$0xff]  }
 0x1a8   :  { %v6065_v10 = vld [vmem:[#allocation10 + $0x2ec] ss:$16 sps:$4 sm:$0xff]  }
 0x1aa   :  { %2246 = vmatpush1.bf16.msra.mxu0 %v5994_v11  ;;  %2285 = vmatpush1.bf16.msra.mxu1 %v5997_v12  ;;  %v6068_v11 = vld [vmem:[#allocation10 + $0x8c] ss:$16 sps:$4 sm:$0xff]  }
 0x1ab   :  { %2247 = vmatprep.subr.bf16.mxu0 %v6002_v13  ;;  %2286 = vmatprep.subr.bf16.mxu1 %v6005_v14  ;;  %v6071_v12 = vld [vmem:[#allocation10 + $0x2cc] ss:$16 sps:$4 sm:$0xff]   ;;  %v7260_v13 = vpack.c.bf16 %v577_v8, %v569_v7  ;;  %v6066_v14 = vld [vmem:[#allocation10 + $0x88] ss:$16 sps:$4 sm:$0xff]  }
 0x1ac   :  { %v6135_v7 = vld [vmem:[#allocation10 + $0x368] ss:$16 sps:$4 sm:$0xff]   ;;  %v6140_v8 = vld [vmem:[#allocation10 + $0x10c] ss:$16 sps:$4 sm:$0xff]  }
 0x1ae   :  { %2248 = vmatpush2.bf16.msra.mxu0 %v6000_v15  ;;  %2287 = vmatpush1.bf16.msra.mxu1 %v6003_v16  ;;  %v6069_v15 = vld [vmem:[#allocation10 + $0x2c8] ss:$16 sps:$4 sm:$0xff]   ;;  %v6074_v16 = vld [vmem:[#allocation10 + $0x6c] ss:$16 sps:$4 sm:$0xff]  }
 0x1af   :  { %2249 = vmatprep.subr.bf16.mxu0 %v6008_v17  ;;  %2288 = vmatprep.subr.bf16.mxu1 %v6011_v19  ;;  %v6077_v17 = vld [vmem:[#allocation10 + $0x2ac] ss:$16 sps:$4 sm:$0xff]   ;;  %v6075_v19 = vld [vmem:[#allocation10 + $0x2a8] ss:$16 sps:$4 sm:$0xff]  }
 0x1b2   :  { %2250 = vmatpush2.bf16.msra.mxu0 %v6006_v21  ;;  %2289 = vmatpush1.bf16.msra.mxu1 %v6009_v23  ;;  %v6080_v21 = vld [vmem:[#allocation10 + $0x4c] ss:$16 sps:$4 sm:$0xff]  }
 0x1b3   :  { %2251 = vmatprep.subr.bf16.mxu0 %v6014_v24  ;;  %2290 = vmatprep.subr.bf16.mxu1 %v6017_v25  ;;  %v6083_v23 = vld [vmem:[#allocation10 + $0x28c] ss:$16 sps:$4 sm:$0xff]   ;;  %v6078_v24 = vld [vmem:[#allocation10 + $0x48] ss:$16 sps:$4 sm:$0xff]  }
 0x1b4   :  { %v6081_v25 = vld [vmem:[#allocation10 + $0x288] ss:$16 sps:$4 sm:$0xff]  }
 0x1b6   :  { %2252 = vmatpush2.bf16.msra.mxu0 %v6012_v26  ;;  %2291 = vmatpush2.bf16.msra.mxu1 %v6015_v27  ;;  %v6086_v26 = vld [vmem:[#allocation10 + $0x2c] ss:$16 sps:$4 sm:$0xff]  }
 0x1b7   :  { %2253 = vmatprep.subr.bf16.mxu0 %v6020_v28  ;;  %2292 = vmatprep.subr.bf16.mxu1 %v6023_v30  ;;  %v6089_v27 = vld [vmem:[#allocation10 + $0x26c] ss:$16 sps:$4 sm:$0xff]   ;;  %v6087_v28 = vld [vmem:[#allocation10 + $0x268] ss:$16 sps:$4 sm:$0xff]  }
 0x1b8   :  { %v6092_v30 = vld [vmem:[#allocation10 + $0xc] ss:$16 sps:$4 sm:$0xff]  }
 0x1ba   :  { %2254 = vmatpush2.bf16.msra.mxu0 %v6018_v31  ;;  %2293 = vmatpush2.bf16.msra.mxu1 %v6021_v32  ;;  %v6095_v31 = vld [vmem:[#allocation10 + $0x24c] ss:$16 sps:$4 sm:$0xff]   ;;  %v6090_v32 = vld [vmem:[#allocation10 + $0x8] ss:$16 sps:$4 sm:$0xff]  }
 0x1bb   :  { %2255 = vmatprep.subr.bf16.mxu0 %v6026_v33  ;;  %2294 = vmatprep.subr.bf16.mxu1 %v6029_v35  ;;  %v6093_v33 = vld [vmem:[#allocation10 + $0x248] ss:$16 sps:$4 sm:$0xff]   ;;  %v6098_v35 = vld [vmem:[#allocation10 + $0x1ec] ss:$16 sps:$4 sm:$0xff]  }
 0x1be   :  { %2256 = vmatpush2.bf16.msra.mxu0 %v6024_v36  ;;  %2295 = vmatpush2.bf16.msra.mxu1 %v6027_v37  ;;  %v6101_v36 = vld [vmem:[#allocation10 + $0x22c] ss:$16 sps:$4 sm:$0xff]   ;;  %v6096_v37 = vld [vmem:[#allocation10 + $0x1e8] ss:$16 sps:$4 sm:$0xff]  }
 0x1bf   :  { %2257 = vmatprep.subr.bf16.mxu0 %v6032_v38  ;;  %2296 = vmatprep.subr.bf16.mxu1 %v6035_v39  ;;  %v6099_v38 = vld [vmem:[#allocation10 + $0x228] ss:$16 sps:$4 sm:$0xff]   ;;  %v6104_v39 = vld [vmem:[#allocation10 + $0x1cc] ss:$16 sps:$4 sm:$0xff]  }
 0x1c2   :  { %2258 = vmatpush2.bf16.msra.mxu0 %v6030_v41  ;;  %2297 = vmatpush2.bf16.msra.mxu1 %v6033_v44  ;;  %v6107_v41 = vld [vmem:[#allocation10 + $0x20c] ss:$16 sps:$4 sm:$0xff]   ;;  %v6102_v44 = vld [vmem:[#allocation10 + $0x1c8] ss:$16 sps:$4 sm:$0xff]  }
 0x1c3   :  { %2259 = vmatprep.subr.bf16.mxu0 %v6038_v46  ;;  %2298 = vmatprep.subr.bf16.mxu1 %v6041_v48  ;;  %v6105_v46 = vld [vmem:[#allocation10 + $0x208] ss:$16 sps:$4 sm:$0xff]   ;;  %v6110_v48 = vld [vmem:[#allocation10 + $0x1ac] ss:$16 sps:$4 sm:$0xff]  }
 0x1c6   :  { %2260 = vmatpush2.bf16.msra.mxu0 %v6036_v52  ;;  %2299 = vmatpush2.bf16.msra.mxu1 %v6039_v53  ;;  %v6108_v52 = vld [vmem:[#allocation10 + $0x1a8] ss:$16 sps:$4 sm:$0xff]  }
 0x1c7   :  { %2261 = vmatprep.subr.bf16.mxu0 %v6044_v54  ;;  %2300 = vmatprep.subr.bf16.mxu1 %v6047_v55  ;;  %v6111_v53 = vld [vmem:[#allocation10 + $0x3e8] ss:$16 sps:$4 sm:$0xff]   ;;  %v6116_v54 = vld [vmem:[#allocation10 + $0x18c] ss:$16 sps:$4 sm:$0xff]  }
 0x1c8   :  { %v6119_v55 = vld [vmem:[#allocation10 + $0x3cc] ss:$16 sps:$4 sm:$0xff]  }
 0x1ca   :  { %2262 = vmatpush2.bf16.msra.mxu0 %v6042_v59  ;;  %2301 = vmatpush2.bf16.msra.mxu1 %v6045_v60  ;;  %v6117_v59 = vld [vmem:[#allocation10 + $0x3c8] ss:$16 sps:$4 sm:$0xff]   ;;  %v6122_v60 = vld [vmem:[#allocation10 + $0x16c] ss:$16 sps:$4 sm:$0xff]  }
 0x1cb   :  { %2302 = vmatprep.subr.bf16.mxu1 %v6050_v61  ;;  %2317 = vmatprep.subr.bf16.mxu0 %v6053_v62  ;;  %v6125_v61 = vld [vmem:[#allocation10 + $0x3ac] ss:$16 sps:$4 sm:$0xff]   ;;  %v6120_v62 = vld [vmem:[#allocation10 + $0x168] ss:$16 sps:$4 sm:$0xff]  }
 0x1cd   :  { %2264 = vmatmul.mubr.bf16.vlgmr.msra.gmra.mxu0 %v7233_v22 }
 0x1ce   :  { %2303 = vmatpush2.bf16.msra.mxu1 %v6048_v1  ;;  %2318 = vmatpush1.bf16.msra.mxu0 %v6051_v40  ;;  %v6123_v1 = vld [vmem:[#allocation10 + $0x3a8] ss:$16 sps:$4 sm:$0xff]   ;;  %v6128_v40 = vld [vmem:[#allocation10 + $0x14c] ss:$16 sps:$4 sm:$0xff]  }
 0x1cf   :  { %2349 = vmatprep.mubr.bf16.mxu0 %v7228_v18  ;;  %2304 = vmatprep.subr.bf16.mxu1 %v6056_v4  ;;  %v6072_v18 = vld [vmem:[#allocation10 + $0x68] ss:$16 sps:$4 sm:$0xff]  }
 0x1d0   :  { %2319 = vmatprep.subr.bf16.mxu0 %v6059_v6  ;;  %v6129_v4 = vld [vmem:[#allocation10 + $0x388] ss:$16 sps:$4 sm:$0xff]  }
 0x1d1   :  { %v6132_v6 = vld [vmem:[#allocation10 + $0x128] ss:$16 sps:$4 sm:$0xff]  }
 0x1d2   :  { %2305 = vmatpush2.bf16.msra.mxu1 %v6054_v45  ;;  %2320 = vmatpush1.bf16.msra.mxu0 %v6057_v5  ;;  %v6134_v45 = vld [vmem:[#allocation10 + $0x12c] ss:$16 sps:$4 sm:$0xff]  }
 0x1d3   :  { %2321 = vmatprep.subr.bf16.mxu0 %v6062_v9  ;;  %2360 = vmatprep.subr.bf16.mxu1 %v6065_v10  ;;  %v6137_v5 = vld [vmem:[#allocation10 + $0x36c] ss:$16 sps:$4 sm:$0xff]   ;;  %v6138_v10 = vld [vmem:[#allocation10 + $0x108] ss:$16 sps:$4 sm:$0xff]  }
 0x1d4   :  { %v6143_v9 = vld [vmem:[#allocation10 + $0x34c] ss:$16 sps:$4 sm:$0xff]  }
 0x1d5   :  { %2307 = vmatmul.mubr.bf16.vlgmr.msra.gmra.mxu1 %v7260_v13 }
 0x1d6   :  { %2322 = vmatpush1.bf16.msra.mxu0 %v6060_v34  ;;  %2361 = vmatpush1.bf16.msra.mxu1 %v6063_v50  ;;  %v6141_v34 = vld [vmem:[#allocation10 + $0x348] ss:$16 sps:$4 sm:$0xff]   ;;  %v6146_v50 = vld [vmem:[#allocation10 + $0x32c] ss:$16 sps:$4 sm:$0xff]  }
 0x1d7   :  { %2392 = vmatprep.mubr.bf16.mxu1 %v7243_v47  ;;  %2323 = vmatprep.subr.bf16.mxu0 %v6068_v11  ;;  %v6084_v47 = vld [vmem:[#allocation10 + $0x28] ss:$16 sps:$4 sm:$0xff]   ;;  %v6149_v11 = vld [vmem:[#allocation10 + $0x4ec] ss:$16 sps:$4 sm:$0xff]  }
 0x1d8   :  { %2362 = vmatprep.subr.bf16.mxu1 %v6071_v12  ;;  %v6144_v12 = vld [vmem:[#allocation10 + $0x328] ss:$16 sps:$4 sm:$0xff]  }
 0x1da   :  { %2324 = vmatpush1.bf16.msra.mxu0 %v6066_v14  ;;  %2363 = vmatpush1.bf16.msra.mxu1 %v6069_v15  ;;  %v6147_v14 = vld [vmem:[#allocation10 + $0x4e8] ss:$16 sps:$4 sm:$0xff]   ;;  %v6152_v15 = vld [vmem:[#allocation10 + $0x30c] ss:$16 sps:$4 sm:$0xff]  }
 0x1db   :  { %2325 = vmatprep.subr.bf16.mxu0 %v6074_v16  ;;  %2364 = vmatprep.subr.bf16.mxu1 %v6077_v17  ;;  %v6155_v16 = vld [vmem:[#allocation10 + $0x4cc] ss:$16 sps:$4 sm:$0xff]   ;;  %v6150_v17 = vld [vmem:[#allocation10 + $0x308] ss:$16 sps:$4 sm:$0xff]  }
 0x1de   :  { %2326 = vmatpush1.bf16.msra.mxu0 %v6072_v18  ;;  %2365 = vmatpush1.bf16.msra.mxu1 %v6075_v19  ;;  %v6153_v18 = vld [vmem:[#allocation10 + $0x4c8] ss:$16 sps:$4 sm:$0xff]   ;;  %v6158_v19 = vld [vmem:[#allocation10 + $0x4ac] ss:$16 sps:$4 sm:$0xff]  }
 0x1df   :  { %2327 = vmatprep.subr.bf16.mxu0 %v6080_v21  ;;  %2366 = vmatprep.subr.bf16.mxu1 %v6083_v23  ;;  %v6161_v21 = vld [vmem:[#allocation10 + $0x6ec] ss:$16 sps:$4 sm:$0xff]   ;;  %v6156_v23 = vld [vmem:[#allocation10 + $0x4a8] ss:$16 sps:$4 sm:$0xff]  }
 0x1e2   :  { %2328 = vmatpush1.bf16.msra.mxu0 %v6078_v24  ;;  %2367 = vmatpush1.bf16.msra.mxu1 %v6081_v25  ;;  %v6159_v24 = vld [vmem:[#allocation10 + $0x6e8] ss:$16 sps:$4 sm:$0xff]   ;;  %v6164_v25 = vld [vmem:[#allocation10 + $0x48c] ss:$16 sps:$4 sm:$0xff]  }
 0x1e3   :  { %2329 = vmatprep.subr.bf16.mxu0 %v6086_v26  ;;  %2368 = vmatprep.subr.bf16.mxu1 %v6089_v27  ;;  %v6167_v26 = vld [vmem:[#allocation10 + $0x6cc] ss:$16 sps:$4 sm:$0xff]   ;;  %v6165_v27 = vld [vmem:[#allocation10 + $0x6c8] ss:$16 sps:$4 sm:$0xff]  }
 0x1e6   :  { %2330 = vmatpush1.bf16.msra.mxu0 %v6084_v47  ;;  %2369 = vmatpush1.bf16.msra.mxu1 %v6087_v28  ;;  %v6173_v47 = vld [vmem:[#allocation10 + $0x6ac] ss:$16 sps:$4 sm:$0xff]   ;;  %v6168_v28 = vld [vmem:[#allocation10 + $0x468] ss:$16 sps:$4 sm:$0xff]  }
 0x1e7   :  { %2331 = vmatprep.subr.bf16.mxu0 %v6092_v30  ;;  %2370 = vmatprep.subr.bf16.mxu1 %v6095_v31  ;;  %v6171_v30 = vld [vmem:[#allocation10 + $0x6a8] ss:$16 sps:$4 sm:$0xff]   ;;  %v6176_v31 = vld [vmem:[#allocation10 + $0x44c] ss:$16 sps:$4 sm:$0xff]  }
 0x1ea   :  { %2332 = vmatpush1.bf16.msra.mxu0 %v6090_v32  ;;  %2371 = vmatpush1.bf16.msra.mxu1 %v6093_v33  ;;  %v6179_v32 = vld [vmem:[#allocation10 + $0x68c] ss:$16 sps:$4 sm:$0xff]   ;;  %v6177_v33 = vld [vmem:[#allocation10 + $0x688] ss:$16 sps:$4 sm:$0xff]  }
 0x1eb   :  { %2333 = vmatprep.subr.bf16.mxu0 %v6098_v35  ;;  %2372 = vmatprep.subr.bf16.mxu1 %v6101_v36  ;;  %v6182_v35 = vld [vmem:[#allocation10 + $0x42c] ss:$16 sps:$4 sm:$0xff]   ;;  %v6180_v36 = vld [vmem:[#allocation10 + $0x428] ss:$16 sps:$4 sm:$0xff]  }
 0x1ee   :  { %2334 = vmatpush2.bf16.msra.mxu0 %v6096_v37  ;;  %2373 = vmatpush1.bf16.msra.mxu1 %v6099_v38  ;;  %v6183_v37 = vld [vmem:[#allocation10 + $0x668] ss:$16 sps:$4 sm:$0xff]   ;;  %v6188_v38 = vld [vmem:[#allocation10 + $0x40c] ss:$16 sps:$4 sm:$0xff]  }
 0x1ef   :  { %2335 = vmatprep.subr.bf16.mxu0 %v6104_v39  ;;  %2374 = vmatprep.subr.bf16.mxu1 %v6107_v41  ;;  %v6191_v39 = vld [vmem:[#allocation10 + $0x64c] ss:$16 sps:$4 sm:$0xff]   ;;  %v6186_v41 = vld [vmem:[#allocation10 + $0x408] ss:$16 sps:$4 sm:$0xff]  }
 0x1f2   :  { %2336 = vmatpush2.bf16.msra.mxu0 %v6102_v44  ;;  %2375 = vmatpush1.bf16.msra.mxu1 %v6105_v46  ;;  %v6189_v44 = vld [vmem:[#allocation10 + $0x648] ss:$16 sps:$4 sm:$0xff]   ;;  %v6194_v46 = vld [vmem:[#allocation10 + $0x5ec] ss:$16 sps:$4 sm:$0xff]  }
 0x1f3   :  { %2337 = vmatprep.subr.bf16.mxu0 %v6110_v48  ;;  %2376 = vmatprep.subr.bf16.mxu1 %v6113_v51  ;;  %v6197_v48 = vld [vmem:[#allocation10 + $0x62c] ss:$16 sps:$4 sm:$0xff]   ;;  %v6192_v51 = vld [vmem:[#allocation10 + $0x5e8] ss:$16 sps:$4 sm:$0xff]  }
 0x1f6   :  { %2338 = vmatpush2.bf16.msra.mxu0 %v6108_v52  ;;  %2377 = vmatpush2.bf16.msra.mxu1 %v6111_v53  ;;  %v6195_v52 = vld [vmem:[#allocation10 + $0x628] ss:$16 sps:$4 sm:$0xff]   ;;  %v6200_v53 = vld [vmem:[#allocation10 + $0x5cc] ss:$16 sps:$4 sm:$0xff]  }
 0x1f7   :  { %2339 = vmatprep.subr.bf16.mxu0 %v6116_v54  ;;  %2378 = vmatprep.subr.bf16.mxu1 %v6119_v55  ;;  %v6203_v54 = vld [vmem:[#allocation10 + $0x60c] ss:$16 sps:$4 sm:$0xff]   ;;  %v6198_v55 = vld [vmem:[#allocation10 + $0x5c8] ss:$16 sps:$4 sm:$0xff]  }
 0x1fa   :  { %2340 = vmatpush2.bf16.msra.mxu0 %v6114_v56  ;;  %2379 = vmatpush2.bf16.msra.mxu1 %v6117_v59  ;;  %v6201_v56 = vld [vmem:[#allocation10 + $0x608] ss:$16 sps:$4 sm:$0xff]   ;;  %v6206_v59 = vld [vmem:[#allocation10 + $0x5ac] ss:$16 sps:$4 sm:$0xff]  }
 0x1fb   :  { %2341 = vmatprep.subr.bf16.mxu0 %v6122_v60  ;;  %2380 = vmatprep.subr.bf16.mxu1 %v6125_v61  ;;  %v6209_v60 = vld [vmem:[#allocation10 + $0x7ec] ss:$16 sps:$4 sm:$0xff]   ;;  %v6204_v61 = vld [vmem:[#allocation10 + $0x5a8] ss:$16 sps:$4 sm:$0xff]  }
 0x1fe   :  { %2342 = vmatpush2.bf16.msra.mxu0 %v6120_v62  ;;  %2381 = vmatpush2.bf16.msra.mxu1 %v6123_v1  ;;  %v6207_v62 = vld [vmem:[#allocation10 + $0x7e8] ss:$16 sps:$4 sm:$0xff]   ;;  %v6212_v1 = vld [vmem:[#allocation10 + $0x58c] ss:$16 sps:$4 sm:$0xff]  }
 0x1ff   :  { %2343 = vmatprep.subr.bf16.mxu0 %v6128_v40  ;;  %2382 = vmatprep.subr.bf16.mxu1 %v6131_v2  ;;  %v6215_v40 = vld [vmem:[#allocation10 + $0x7cc] ss:$16 sps:$4 sm:$0xff]   ;;  %v6210_v2 = vld [vmem:[#allocation10 + $0x588] ss:$16 sps:$4 sm:$0xff]  }
 0x202   :  { %2344 = vmatpush2.bf16.msra.mxu0 %v6126_v3  ;;  %2383 = vmatpush2.bf16.msra.mxu1 %v6129_v4  ;;  %v6213_v3 = vld [vmem:[#allocation10 + $0x7c8] ss:$16 sps:$4 sm:$0xff]   ;;  %v6218_v4 = vld [vmem:[#allocation10 + $0x56c] ss:$16 sps:$4 sm:$0xff]  }
 0x203   :  { %2345 = vmatprep.subr.bf16.mxu0 %v6134_v45  ;;  %2384 = vmatprep.subr.bf16.mxu1 %v6137_v5  ;;  %v6221_v45 = vld [vmem:[#allocation10 + $0x7ac] ss:$16 sps:$4 sm:$0xff]   ;;  %v6216_v5 = vld [vmem:[#allocation10 + $0x568] ss:$16 sps:$4 sm:$0xff]  }
 0x206   :  { %2346 = vmatpush2.bf16.msra.mxu0 %v6132_v6  ;;  %2385 = vmatpush2.bf16.msra.mxu1 %v6135_v7  ;;  %v6219_v6 = vld [vmem:[#allocation10 + $0x7a8] ss:$16 sps:$4 sm:$0xff]   ;;  %v6224_v7 = vld [vmem:[#allocation10 + $0x54c] ss:$16 sps:$4 sm:$0xff]  }
 0x207   :  { %2347 = vmatprep.subr.bf16.mxu0 %v6140_v8  ;;  %2386 = vmatprep.subr.bf16.mxu1 %v6143_v9  ;;  %v6227_v8 = vld [vmem:[#allocation10 + $0x78c] ss:$16 sps:$4 sm:$0xff]   ;;  %v6222_v9 = vld [vmem:[#allocation10 + $0x548] ss:$16 sps:$4 sm:$0xff]  }
 0x20a   :  { %2348 = vmatpush2.bf16.msra.mxu0 %v6138_v10  ;;  %2387 = vmatpush2.bf16.msra.mxu1 %v6141_v34  ;;  %v6225_v10 = vld [vmem:[#allocation10 + $0x788] ss:$16 sps:$4 sm:$0xff]   ;;  %v6230_v34 = vld [vmem:[#allocation10 + $0x52c] ss:$16 sps:$4 sm:$0xff]  }
 0x20b   :  { %2388 = vmatprep.subr.bf16.mxu1 %v6146_v50  ;;  %2403 = vmatprep.subr.bf16.mxu0 %v6149_v11  ;;  %v6233_v50 = vld [vmem:[#allocation10 + $0x76c] ss:$16 sps:$4 sm:$0xff]   ;;  %v6228_v11 = vld [vmem:[#allocation10 + $0x528] ss:$16 sps:$4 sm:$0xff]  }
 0x20d   :  { %2350 = vmatmul.mubr.bf16.vlgmr.msra.gmra.mxu0 %v7231_v20  ;;  %v6162_v20 = vld [vmem:[#allocation10 + $0x488] ss:$16 sps:$4 sm:$0xff]  }
 0x20e   :  { %2389 = vmatpush2.bf16.msra.mxu1 %v6144_v12  ;;  %2404 = vmatpush1.bf16.msra.mxu0 %v6147_v14  ;;  %v6231_v12 = vld [vmem:[#allocation10 + $0x768] ss:$16 sps:$4 sm:$0xff]   ;;  %v6236_v14 = vld [vmem:[#allocation10 + $0x50c] ss:$16 sps:$4 sm:$0xff]  }
 0x20f   :  { %2435 = vmatprep.mubr.bf16.mxu0 %v7237_v29  ;;  %2390 = vmatprep.subr.bf16.mxu1 %v6152_v15  ;;  %v6170_v29 = vld [vmem:[#allocation10 + $0x46c] ss:$16 sps:$4 sm:$0xff]  }
 0x210   :  { %2405 = vmatprep.subr.bf16.mxu0 %v6155_v16  ;;  %v6239_v15 = vld [vmem:[#allocation10 + $0x74c] ss:$16 sps:$4 sm:$0xff]   ;;  %v6234_v16 = vld [vmem:[#allocation10 + $0x508] ss:$16 sps:$4 sm:$0xff]  }
 0x212   :  { %2391 = vmatpush2.bf16.msra.mxu1 %v6150_v17  ;;  %2406 = vmatpush1.bf16.msra.mxu0 %v6153_v18  ;;  %v6237_v17 = vld [vmem:[#allocation10 + $0x748] ss:$16 sps:$4 sm:$0xff]   ;;  %v6242_v18 = vld [vmem:[#allocation10 + $0x72c] ss:$16 sps:$4 sm:$0xff]  }
 0x213   :  { %2407 = vmatprep.subr.bf16.mxu0 %v6158_v19  ;;  %2446 = vmatprep.subr.bf16.mxu1 %v6161_v21  ;;  %v6248_v19 = vld [vmem:[#allocation11 + $0x74] ss:$8 sps:$4 sm:$0xff]   ;;  %v6240_v21 = vld [vmem:[#allocation10 + $0x728] ss:$16 sps:$4 sm:$0xff]  }
 0x215   :  { %2393 = vmatmul.mubr.bf16.vlgmr.msra.gmra.mxu1 %v7245_v49  ;;  %v6174_v49 = vld [vmem:[#allocation10 + $0x448] ss:$16 sps:$4 sm:$0xff]  }
 0x216   :  { %2408 = vmatpush1.bf16.msra.mxu0 %v6156_v23  ;;  %2447 = vmatpush1.bf16.msra.mxu1 %v6159_v24  ;;  %v6246_v23 = vld [vmem:[#allocation11 + $0x70] ss:$8 sps:$4 sm:$0xff]   ;;  %v6245_v24 = vld [vmem:[#allocation10 + $0x70c] ss:$16 sps:$4 sm:$0xff]  }
 0x217   :  { %2478 = vmatprep.mubr.bf16.mxu1 %v7251_v63  ;;  %2409 = vmatprep.subr.bf16.mxu0 %v6164_v25  ;;  %v6185_v63 = vld [vmem:[#allocation10 + $0x66c] ss:$16 sps:$4 sm:$0xff]  }
 0x218   :  { %2448 = vmatprep.subr.bf16.mxu1 %v6167_v26  ;;  %v6251_v25 = vld [vmem:[#allocation11 + $0x64] ss:$8 sps:$4 sm:$0xff]   ;;  %v6243_v26 = vld [vmem:[#allocation10 + $0x708] ss:$16 sps:$4 sm:$0xff]  }
 0x21a   :  { %2410 = vmatpush1.bf16.msra.mxu0 %v6162_v20  ;;  %2449 = vmatpush1.bf16.msra.mxu1 %v6165_v27  ;;  %v6249_v20 = vld [vmem:[#allocation11 + $0x60] ss:$8 sps:$4 sm:$0xff]   ;;  %v6254_v27 = vld [vmem:[#allocation11 + $0x54] ss:$8 sps:$4 sm:$0xff]  }
 0x21b   :  { %2411 = vmatprep.subr.bf16.mxu0 %v6170_v29  ;;  %2450 = vmatprep.subr.bf16.mxu1 %v6173_v47  ;;  %v6252_v29 = vld [vmem:[#allocation11 + $0x50] ss:$8 sps:$4 sm:$0xff]   ;;  %v6257_v47 = vld [vmem:[#allocation11 + $0x44] ss:$8 sps:$4 sm:$0xff]  }
 0x21e   :  { %2412 = vmatpush1.bf16.msra.mxu0 %v6168_v28  ;;  %2451 = vmatpush1.bf16.msra.mxu1 %v6171_v30  ;;  %v6255_v28 = vld [vmem:[#allocation11 + $0x40] ss:$8 sps:$4 sm:$0xff]   ;;  %v6260_v30 = vld [vmem:[#allocation11 + $0x34] ss:$8 sps:$4 sm:$0xff]  }
 0x21f   :  { %2413 = vmatprep.subr.bf16.mxu0 %v6176_v31  ;;  %2452 = vmatprep.subr.bf16.mxu1 %v6179_v32  ;;  %v6263_v31 = vld [vmem:[#allocation11 + $0x24] ss:$8 sps:$4 sm:$0xff]   ;;  %v6294_v32 = vld [vmem:[#allocation11 + $0x170] ss:$8 sps:$4 sm:$0xff]  }
 0x222   :  { %2414 = vmatpush1.bf16.msra.mxu0 %v6174_v49  ;;  %2453 = vmatpush1.bf16.msra.mxu1 %v6177_v33  ;;  %v6296_v49 = vld [vmem:[#allocation11 + $0x174] ss:$8 sps:$4 sm:$0xff]   ;;  %v6299_v33 = vld [vmem:[#allocation11 + $0x164] ss:$8 sps:$4 sm:$0xff]  }
 0x223   :  { %2415 = vmatprep.subr.bf16.mxu0 %v6182_v35  ;;  %2454 = vmatprep.subr.bf16.mxu1 %v6185_v63  ;;  %v6261_v35 = vld [vmem:[#allocation11 + $0x20] ss:$8 sps:$4 sm:$0xff]   ;;  %v6266_v63 = vld [vmem:[#allocation11 + $0x14] ss:$8 sps:$4 sm:$0xff]  }
 0x226   :  { %2416 = vmatpush1.bf16.msra.mxu0 %v6180_v36  ;;  %2455 = vmatpush1.bf16.msra.mxu1 %v6183_v37  ;;  %v6297_v36 = vld [vmem:[#allocation11 + $0x160] ss:$8 sps:$4 sm:$0xff]   ;;  %v6264_v37 = vld [vmem:[#allocation11 + $0x10] ss:$8 sps:$4 sm:$0xff]  }
 0x227   :  { %2417 = vmatprep.subr.bf16.mxu0 %v6188_v38  ;;  %2456 = vmatprep.subr.bf16.mxu1 %v6191_v39  ;;  %v6269_v38 = vld [vmem:[#allocation11 + $0x4] ss:$8 sps:$4 sm:$0xff]   ;;  %v6300_v39 = vld [vmem:[#allocation11 + $0x150] ss:$8 sps:$4 sm:$0xff]  }
 0x22a   :  { %2418 = vmatpush1.bf16.msra.mxu0 %v6186_v41  ;;  %2457 = vmatpush1.bf16.msra.mxu1 %v6189_v44  ;;  %v6305_v41 = vld [vmem:[#allocation11 + $0x144] ss:$8 sps:$4 sm:$0xff]   ;;  %v6267_v44 = vld [vmem:[#allocation11] ss:$8 sps:$4 sm:$0xff]  }
 0x22b   :  { %2419 = vmatprep.subr.bf16.mxu0 %v6194_v46  ;;  %2458 = vmatprep.subr.bf16.mxu1 %v6197_v48  ;;  %v6272_v46 = vld [vmem:[#allocation11 + $0xf4] ss:$8 sps:$4 sm:$0xff]   ;;  %v6303_v48 = vld [vmem:[#allocation11 + $0x140] ss:$8 sps:$4 sm:$0xff]  }
 0x22e   :  { %2420 = vmatpush2.bf16.msra.mxu0 %v6192_v51  ;;  %2459 = vmatpush1.bf16.msra.mxu1 %v6195_v52  ;;  %v6308_v51 = vld [vmem:[#allocation11 + $0x134] ss:$8 sps:$4 sm:$0xff]   ;;  %v6270_v52 = vld [vmem:[#allocation11 + $0xf0] ss:$8 sps:$4 sm:$0xff]  }
 0x22f   :  { %2421 = vmatprep.subr.bf16.mxu0 %v6200_v53  ;;  %2460 = vmatprep.subr.bf16.mxu1 %v6203_v54  ;;  %v6275_v53 = vld [vmem:[#allocation11 + $0xe4] ss:$8 sps:$4 sm:$0xff]   ;;  %v6306_v54 = vld [vmem:[#allocation11 + $0x130] ss:$8 sps:$4 sm:$0xff]  }
 0x232   :  { %2422 = vmatpush2.bf16.msra.mxu0 %v6198_v55  ;;  %2461 = vmatpush1.bf16.msra.mxu1 %v6201_v56  ;;  %v6311_v55 = vld [vmem:[#allocation11 + $0x124] ss:$8 sps:$4 sm:$0xff]   ;;  %v6273_v56 = vld [vmem:[#allocation11 + $0xe0] ss:$8 sps:$4 sm:$0xff]  }
 0x233   :  { %2423 = vmatprep.subr.bf16.mxu0 %v6206_v59  ;;  %2462 = vmatprep.subr.bf16.mxu1 %v6209_v60  ;;  %v6278_v59 = vld [vmem:[#allocation11 + $0xd4] ss:$8 sps:$4 sm:$0xff]   ;;  %v6309_v60 = vld [vmem:[#allocation11 + $0x120] ss:$8 sps:$4 sm:$0xff]  }
 0x236   :  { %2424 = vmatpush2.bf16.msra.mxu0 %v6204_v61  ;;  %2463 = vmatpush2.bf16.msra.mxu1 %v6207_v62  ;;  %v6314_v61 = vld [vmem:[#allocation11 + $0x114] ss:$8 sps:$4 sm:$0xff]   ;;  %v6276_v62 = vld [vmem:[#allocation11 + $0xd0] ss:$8 sps:$4 sm:$0xff]  }
 0x237   :  { %2425 = vmatprep.subr.bf16.mxu0 %v6212_v1  ;;  %2464 = vmatprep.subr.bf16.mxu1 %v6215_v40  ;;  %v6281_v1 = vld [vmem:[#allocation11 + $0xc4] ss:$8 sps:$4 sm:$0xff]   ;;  %v6312_v40 = vld [vmem:[#allocation11 + $0x110] ss:$8 sps:$4 sm:$0xff]  }
 0x23a   :  { %2426 = vmatpush2.bf16.msra.mxu0 %v6210_v2  ;;  %2465 = vmatpush2.bf16.msra.mxu1 %v6213_v3  ;;  %v6317_v2 = vld [vmem:[#allocation11 + $0x104] ss:$8 sps:$4 sm:$0xff]   ;;  %v6279_v3 = vld [vmem:[#allocation11 + $0xc0] ss:$8 sps:$4 sm:$0xff]  }
 0x23b   :  { %2427 = vmatprep.subr.bf16.mxu0 %v6218_v4  ;;  %2466 = vmatprep.subr.bf16.mxu1 %v6221_v45  ;;  %v6284_v4 = vld [vmem:[#allocation11 + $0xb4] ss:$8 sps:$4 sm:$0xff]   ;;  %v6315_v45 = vld [vmem:[#allocation11 + $0x100] ss:$8 sps:$4 sm:$0xff]  }
 0x23e   :  { %2428 = vmatpush2.bf16.msra.mxu0 %v6216_v5  ;;  %2467 = vmatpush2.bf16.msra.mxu1 %v6219_v6  ;;  %v6320_v5 = vld [vmem:[#allocation11 + $0x1f4] ss:$8 sps:$4 sm:$0xff]   ;;  %v6282_v6 = vld [vmem:[#allocation11 + $0xb0] ss:$8 sps:$4 sm:$0xff]  }
 0x23f   :  { %2429 = vmatprep.subr.bf16.mxu0 %v6224_v7  ;;  %2468 = vmatprep.subr.bf16.mxu1 %v6227_v8  ;;  %v6287_v7 = vld [vmem:[#allocation11 + $0xa4] ss:$8 sps:$4 sm:$0xff]   ;;  %v6318_v8 = vld [vmem:[#allocation11 + $0x1f0] ss:$8 sps:$4 sm:$0xff]  }
 0x242   :  { %2430 = vmatpush2.bf16.msra.mxu0 %v6222_v9  ;;  %2469 = vmatpush2.bf16.msra.mxu1 %v6225_v10  ;;  %v6323_v9 = vld [vmem:[#allocation11 + $0x1e4] ss:$8 sps:$4 sm:$0xff]   ;;  %v6285_v10 = vld [vmem:[#allocation11 + $0xa0] ss:$8 sps:$4 sm:$0xff]  }
 0x243   :  { %2431 = vmatprep.subr.bf16.mxu0 %v6230_v34  ;;  %2470 = vmatprep.subr.bf16.mxu1 %v6233_v50  ;;  %v6290_v50 = vld [vmem:[#allocation11 + $0x94] ss:$8 sps:$4 sm:$0xff]  }
 0x246   :  { %2432 = vmatpush2.bf16.msra.mxu0 %v6228_v11  ;;  %2471 = vmatpush2.bf16.msra.mxu1 %v6231_v12  ;;  %v6321_v11 = vld [vmem:[#allocation11 + $0x1e0] ss:$8 sps:$4 sm:$0xff]   ;;  %v6326_v12 = vld [vmem:[#allocation11 + $0x1d4] ss:$8 sps:$4 sm:$0xff]  }
 0x247   :  { %2433 = vmatprep.subr.bf16.mxu0 %v6236_v14  ;;  %2472 = vmatprep.subr.bf16.mxu1 %v6239_v15  ;;  %v6288_v14 = vld [vmem:[#allocation11 + $0x90] ss:$8 sps:$4 sm:$0xff]  }
 0x24a   :  { %2434 = vmatpush2.bf16.msra.mxu0 %v6234_v16  ;;  %2473 = vmatpush2.bf16.msra.mxu1 %v6237_v17  ;;  %v6293_v16 = vld [vmem:[#allocation11 + $0x84] ss:$8 sps:$4 sm:$0xff]   ;;  %v6324_v17 = vld [vmem:[#allocation11 + $0x1d0] ss:$8 sps:$4 sm:$0xff]  }
 0x24b   :  { %2474 = vmatprep.subr.bf16.mxu1 %v6242_v18  ;;  %2897 = vmatprep.subr.bf16.mxu0 %v6248_v19  ;;  %v6291_v18 = vld [vmem:[#allocation11 + $0x80] ss:$8 sps:$4 sm:$0xff]  }
 0x24d   :  { %2436 = vmatmul.mubr.bf16.vlgmr.msra.gmra.mxu0 %v7233_v22  ;;  %v6258_v22 = vld [vmem:[#allocation11 + $0x30] ss:$8 sps:$4 sm:$0xff]   ;;  %v2179_v34 = vpop.f32.mrf.mxu0 }
 0x24e   :  { %2475 = vmatpush2.bf16.msra.mxu1 %v6240_v21  ;;  %2898 = vmatpush1.bf16.msra.mxu0 %v6246_v23 }
 0x24f   :  { %2476 = vmatprep.subr.bf16.mxu1 %v6245_v24  ;;  %2899 = vmatprep.subr.bf16.mxu0 %v6251_v25  ;;  %v2181_v15 = vpop.f32.mrf.mxu0 }
 0x251   :  { %v2183_v19 = vpop.f32.mrf.mxu0 }
 0x252   :  { %2477 = vmatpush2.bf16.msra.mxu1 %v6243_v26  ;;  %2900 = vmatpush1.bf16.msra.mxu0 %v6249_v20  ;;  %v7273_v26 = vld [vmem:[%s7330_s5] sm:$0xf]  ;;  %v6329_v20 = vld [vmem:[#allocation11 + $0x1c4] ss:$8 sps:$4 sm:$0xff]  }
 0x253   :  { %2901 = vmatprep.subr.bf16.mxu0 %v6254_v27  ;;  %2940 = vmatprep.subr.bf16.mxu1 %v6296_v49  ;;  %v2185_v23 = vpop.f32.mrf.mxu0  ;;  %v6330_v49 = vld [vmem:[#allocation11 + $0x1b0] ss:$8 sps:$4 sm:$0xff]  }
 0x255   :  { %2479 = vmatmul.mubr.bf16.vlgmr.msra.gmra.mxu1 %v7260_v13  ;;  %v6302_v13 = vld [vmem:[#allocation11 + $0x154] ss:$8 sps:$4 sm:$0xff]   ;;  %v2222_v21 = vpop.f32.mrf.mxu1 }
 0x256   :  { %2902 = vmatpush1.bf16.msra.mxu0 %v6252_v29  ;;  %2941 = vmatpush1.bf16.msra.mxu1 %v6294_v32 }
 0x257   :  { %2903 = vmatprep.subr.bf16.mxu0 %v6257_v47  ;;  %2942 = vmatprep.subr.bf16.mxu1 %v6299_v33  ;;  %v2224_v24 = vpop.f32.mrf.mxu1  ;;  %v6327_v47 = vld [vmem:[#allocation11 + $0x1c0] ss:$8 sps:$4 sm:$0xff]  }
 0x259   :  { %v2226_v27 = vpop.f32.mrf.mxu1 }
 0x25a   :  { %2904 = vmatpush1.bf16.msra.mxu0 %v6255_v28  ;;  %2943 = vmatpush1.bf16.msra.mxu1 %v6297_v36  ;;  %v852_v28 = vrot.slane %v7273_v26, %v7204_v42 }
 0x25b   :  { %2905 = vmatprep.subr.bf16.mxu0 %v6260_v30  ;;  %2944 = vmatprep.subr.bf16.mxu1 %v6302_v13  ;;  %v848_v30 = vrot.slane %v7273_v26, %v7207_v43 }
 0x25c   :  { %v2182_v33 = vadd.f32 %v2181_v15, %v852_v28  ;;  %v2186_v13 = vadd.f32 %v2185_v23, %v852_v28  ;;  %v6348_v15 = vld [vmem:[#allocation14 + $0x28] sm:$0xff]  }
 0x25e   :  { %2906 = vmatpush1.bf16.msra.mxu0 %v6258_v22  ;;  %2945 = vmatpush1.bf16.msra.mxu1 %v6300_v39  ;;  %v6332_v22 = vld [vmem:[#allocation11 + $0x1b4] ss:$8 sps:$4 sm:$0xff]   ;;  %v6335_v39 = vld [vmem:[#allocation11 + $0x1a4] ss:$8 sps:$4 sm:$0xff]  }
 0x25f   :  { %2907 = vmatprep.subr.bf16.mxu0 %v6263_v31  ;;  %2946 = vmatprep.subr.bf16.mxu1 %v6305_v41  ;;  %v2228_v31 = vpop.f32.mrf.mxu1 }
 0x262   :  { %2908 = vmatpush1.bf16.msra.mxu0 %v6261_v35  ;;  %2947 = vmatpush1.bf16.msra.mxu1 %v6303_v48  ;;  %v2184_v35 = vadd.f32 %v2183_v19, %v848_v30  ;;  %v6333_v48 = vld [vmem:[#allocation11 + $0x1a0] ss:$8 sps:$4 sm:$0xff]  }
 0x263   :  { %2909 = vmatprep.subr.bf16.mxu0 %v6266_v63  ;;  %2948 = vmatprep.subr.bf16.mxu1 %v6308_v51  ;;  %v2180_v63 = vadd.f32 %v2179_v34, %v848_v30  ;;  %v2229_v51 = vadd.f32 %v2228_v31, %v2186_v13  ;;  %v6343_v34 = vld [vmem:[#allocation14 + $0x78] sm:$0xff]   ;;  %v860_v30 = vrot.slane %v7273_v26, %v7222_v58 }
 0x264   :  { %v6352_v19 = vld [vmem:[#allocation14 + $0x18] sm:$0xff]  }
 0x265   :  { %v2223_v41 = vadd.f32 %v2222_v21, %v2180_v63 }
 0x266   :  { %2910 = vmatpush1.bf16.msra.mxu0 %v6264_v37  ;;  %2949 = vmatpush1.bf16.msra.mxu1 %v6306_v54  ;;  %v2225_v37 = vadd.f32 %v2224_v24, %v2182_v33 }
 0x267   :  { %2911 = vmatprep.subr.bf16.mxu0 %v6269_v38  ;;  %2950 = vmatprep.subr.bf16.mxu1 %v6311_v55  ;;  %v2227_v38 = vadd.f32 %v2226_v27, %v2184_v35 }
 0x26a   :  { %2912 = vmatpush1.bf16.msra.mxu0 %v6267_v44  ;;  %2951 = vmatpush1.bf16.msra.mxu1 %v6309_v60 }
 0x26b   :  { %2913 = vmatprep.subr.bf16.mxu0 %v6272_v46  ;;  %2952 = vmatprep.subr.bf16.mxu1 %v6314_v61  ;;  %v6338_v61 = vld [vmem:[#allocation11 + $0x194] ss:$8 sps:$4 sm:$0xff]  }
 0x26e   :  { %2914 = vmatpush2.bf16.msra.mxu0 %v6270_v52  ;;  %2953 = vmatpush1.bf16.msra.mxu1 %v6312_v40  ;;  %v6336_v40 = vld [vmem:[#allocation11 + $0x190] ss:$8 sps:$4 sm:$0xff]  }
 0x26f   :  { %2915 = vmatprep.subr.bf16.mxu0 %v6275_v53  ;;  %2954 = vmatprep.subr.bf16.mxu1 %v6317_v2 }
 0x272   :  { %2916 = vmatpush2.bf16.msra.mxu0 %v6273_v56  ;;  %2955 = vmatpush1.bf16.msra.mxu1 %v6315_v45 }
 0x273   :  { %2917 = vmatprep.subr.bf16.mxu0 %v6278_v59  ;;  %2956 = vmatprep.subr.bf16.mxu1 %v6320_v5  ;;  %v6341_v5 = vld [vmem:[#allocation11 + $0x184] ss:$8 sps:$4 sm:$0xff]  }
 0x276   :  { %2918 = vmatpush2.bf16.msra.mxu0 %v6276_v62  ;;  %2957 = vmatpush2.bf16.msra.mxu1 %v6318_v8 }
 0x277   :  { %2919 = vmatprep.subr.bf16.mxu0 %v6281_v1  ;;  %2958 = vmatprep.subr.bf16.mxu1 %v6323_v9 }
 0x27a   :  { %2920 = vmatpush2.bf16.msra.mxu0 %v6279_v3  ;;  %2959 = vmatpush2.bf16.msra.mxu1 %v6321_v11  ;;  %v6345_v11 = vld [vmem:[#allocation14 + $0x70] sm:$0xff]  }
 0x27b   :  { %2921 = vmatprep.subr.bf16.mxu0 %v6284_v4  ;;  %2960 = vmatprep.subr.bf16.mxu1 %v6326_v12  ;;  %v6346_v12 = vld [vmem:[#allocation14 + $0x30] sm:$0xff]  }
 0x27e   :  { %2922 = vmatpush2.bf16.msra.mxu0 %v6282_v6  ;;  %2961 = vmatpush2.bf16.msra.mxu1 %v6324_v17  ;;  %v6350_v17 = vld [vmem:[#allocation14 + $0x20] sm:$0xff]  }
 0x27f   :  { %2923 = vmatprep.subr.bf16.mxu0 %v6287_v7  ;;  %2962 = vmatprep.subr.bf16.mxu1 %v6329_v20  ;;  %v6339_v7 = vld [vmem:[#allocation11 + $0x180] ss:$8 sps:$4 sm:$0xff]  }
 0x282   :  { %2924 = vmatpush2.bf16.msra.mxu0 %v6285_v10  ;;  %2963 = vmatpush2.bf16.msra.mxu1 %v6327_v47  ;;  %v7020_v10 = vmov 0.0  }
 0x283   :  { %2925 = vmatprep.subr.bf16.mxu0 %v6290_v50  ;;  %2964 = vmatprep.subr.bf16.mxu1 %v6332_v22  ;;  %v6344_v50 = vld [vmem:[#allocation14 + $0x38] sm:$0xff]   ;;  %v856_v22 = vrot.slane %v7273_v26, %v7219_v57 }
 0x286   :  { %2926 = vmatpush2.bf16.msra.mxu0 %v6288_v14  ;;  %2965 = vmatpush2.bf16.msra.mxu1 %v6330_v49  ;;  %v6347_v14 = vld [vmem:[#allocation14 + $0x68] sm:$0xff]  }
 0x287   :  { %2927 = vmatprep.subr.bf16.mxu0 %v6293_v16  ;;  %2966 = vmatprep.subr.bf16.mxu1 %v6335_v39  ;;  %v6349_v16 = vld [vmem:[#allocation14 + $0x60] sm:$0xff]  }
 0x28a   :  { %2928 = vmatpush2.bf16.msra.mxu0 %v6291_v18  ;;  %2967 = vmatpush2.bf16.msra.mxu1 %v6333_v48  ;;  %v6351_v18 = vld [vmem:[#allocation14 + $0x58] sm:$0xff]  }
 0x28b   :  { %2968 = vmatprep.subr.bf16.mxu1 %v6338_v61  ;;  %5762 = vmatprep.subr.bf16.mxu0 %v6343_v34  ;;  %v6357_v34 = vld [vmem:[#allocation14 + $0x40] sm:$0xff]  }
 0x28d   :  { %v2265_v25 = vpop.f32.mrf.mxu0 }
 0x28e   :  { %v2266_v54 = vadd.f32 %v2265_v25, %v2223_v41  ;;  %2969 = vmatpush2.bf16.msra.mxu1 %v6336_v40 }
 0x28f   :  { %v2267_v29 = vpop.f32.mrf.mxu0  ;;  %2970 = vmatprep.subr.bf16.mxu1 %v6341_v5 }
 0x290   :  { %v2268_v52 = vadd.f32 %v2267_v29, %v2225_v37 }
 0x291   :  { %v2269_v32 = vpop.f32.mrf.mxu0 }
 0x292   :  { %v2270_v53 = vadd.f32 %v2269_v32, %v2227_v38  ;;  %2971 = vmatpush2.bf16.msra.mxu1 %v6339_v7  ;;  %v6354_v7 = vld [vmem:[#allocation14 + $0x10] sm:$0xff]  }
 0x293   :  { %v2271_v44 = vpop.f32.mrf.mxu0  ;;  %5830 = vmatprep.subr.bf16.mxu1 %v7020_v10 }
 0x294   :  { %v2272_v56 = vadd.f32 %v2271_v44, %v2229_v51 }
 0x295   :  { %v2308_v36 = vpop.f32.mrf.mxu1 }
 0x296   :  { %v2309_v62 = vadd.f32 %v2308_v36, %v2266_v54 }
 0x297   :  { %v2310_v46 = vpop.f32.mrf.mxu1 }
 0x298   :  { %v2311_v59 = vadd.f32 %v2310_v46, %v2268_v52  ;;  %v2489_v6 = vmax.f32 %v2309_v62, 0.0 }
 0x299   :  { %v2312_v55 = vpop.f32.mrf.mxu1 }
 0x29a   :  { %v2313_v60 = vadd.f32 %v2312_v55, %v2270_v53  ;;  %v2490_v4 = vmax.f32 %v2311_v59, 0.0 }
 0x29b   :  { %v2314_v1 = vpop.f32.mrf.mxu1 }
 0x29c   :  { %v2315_v2 = vadd.f32 %v2314_v1, %v2272_v56  ;;  %v2493_v3 = vmax.f32 %v2313_v60, 0.0 }
 0x29e   :  { %v2494_v45 = vmax.f32 %v2315_v2, 0.0  ;;  %v2497_v9 = vpack.c.bf16 %v2493_v3, %v2489_v6  ;;  %v6342_v2 = vld [vmem:[%s7335_s10] sm:$0xff]  }
 0x29f   :  { %v6353_v6 = vld [vmem:[#allocation14 + $0x50] sm:$0xff]  }
 0x2a0   :  { %v2498_v8 = vpack.c.bf16 %v2494_v45, %v2490_v4  ;;  %v3167_v4 = vld [vmem:[#allocation5] sm:$0xff]  ;;  %v3168_v45 = vld [vmem:[#allocation5 + $0x8] sm:$0xff] }
 0x2a1   :  { %v3169_v5 = vpack.c.bf16 %v3168_v45, %v3167_v4 }
 0x2a2   :  { %2929 = vmatprep.mubr.bf16.mxu0 %v2498_v8  ;;  %v6355_v8 = vld [vmem:[#allocation14 + $0x48] sm:$0xff]  }
 0x2a3   :  { %2930 = vmatmul.mubr.bf16.vlgmr.msra.gmra.mxu0 %v2497_v9  ;;  %v6356_v9 = vld [vmem:[#allocation14 + $0x8] sm:$0xff]  }
 0x2a4   :  { %5763 = vmatpush3.bf16.msra.mxu0 %v6344_v50  ;;  %v6358_v50 = vld [vmem:[#allocation14] sm:$0xff]  }
 0x2a5   :  { %5764 = vmatprep.subr.bf16.mxu0 %v6345_v11  ;;  %v6361_v11 = vld [vmem:[#allocation20 + $0xe4] ss:$16 sps:$4 sm:$0xff]  }
 0x2a8   :  { %5765 = vmatpush3.bf16.msra.mxu0 %v6346_v12  ;;  %v6364_v12 = vld [vmem:[#allocation20 + $0xec] ss:$16 sps:$4 sm:$0xff]  }
 0x2a9   :  { %5766 = vmatprep.subr.bf16.mxu0 %v6347_v14  ;;  %v6367_v14 = vld [vmem:[#allocation20 + $0xc4] ss:$16 sps:$4 sm:$0xff]  }
 0x2ac   :  { %5767 = vmatpush3.bf16.msra.mxu0 %v6348_v15  ;;  %v6365_v15 = vld [vmem:[#allocation20 + $0xc0] ss:$16 sps:$4 sm:$0xff]  }
 0x2ad   :  { %5768 = vmatprep.subr.bf16.mxu0 %v6349_v16  ;;  %v6373_v16 = vld [vmem:[#allocation20 + $0xa4] ss:$16 sps:$4 sm:$0xff]  }
 0x2b0   :  { %5769 = vmatpush3.bf16.msra.mxu0 %v6350_v17  ;;  %v6371_v17 = vld [vmem:[#allocation20 + $0xa0] ss:$16 sps:$4 sm:$0xff]  }
 0x2b1   :  { %5770 = vmatprep.subr.bf16.mxu0 %v6351_v18  ;;  %v6379_v18 = vld [vmem:[#allocation20 + $0x84] ss:$16 sps:$4 sm:$0xff]  }
 0x2b4   :  { %5771 = vmatpush3.bf16.msra.mxu0 %v6352_v19  ;;  %v6377_v19 = vld [vmem:[#allocation20 + $0x80] ss:$16 sps:$4 sm:$0xff]  }
 0x2b5   :  { %5772 = vmatprep.subr.bf16.mxu0 %v6353_v6  ;;  %v6368_v6 = vld [vmem:[#allocation20 + $0xc8] ss:$16 sps:$4 sm:$0xff]  }
 0x2b8   :  { %5773 = vmatpush3.bf16.msra.mxu0 %v6354_v7 }
 0x2b9   :  { %5774 = vmatprep.subr.bf16.mxu0 %v6355_v8  ;;  %v6376_v8 = vld [vmem:[#allocation20 + $0xac] ss:$16 sps:$4 sm:$0xff]  }
 0x2bc   :  { %5775 = vmatpush3.bf16.msra.mxu0 %v6356_v9  ;;  %v6407_v9 = vld [vmem:[#allocation19 + $0xe0] ss:$16 sps:$4 sm:$0xff]  }
 0x2bd   :  { %5776 = vmatprep.subr.bf16.mxu0 %v6357_v34 }
 0x2c0   :  { %5777 = vmatpush3.bf16.msra.mxu0 %v6358_v50  ;;  %v6415_v50 = vld [vmem:[#allocation19 + $0xc4] ss:$16 sps:$4 sm:$0xff]  }
 0x2c1   :  { %3501 = vmatprep.subr.bf16.mxu0 %v6364_v12  ;;  %v6413_v12 = vld [vmem:[#allocation19 + $0xc0] ss:$16 sps:$4 sm:$0xff]  }
 0x2cd   :  { %v2351_v21 = vpop.f32.mrf.mxu0 }
 0x2ce   :  { %v2352_v35 = vadd.f32 %v2351_v21, %v856_v22  ;;  %v6385_v21 = vld [vmem:[#allocation20 + $0x64] ss:$16 sps:$4 sm:$0xff]  }
 0x2cf   :  { %v2353_v23 = vpop.f32.mrf.mxu0 }
 0x2d0   :  { %v2354_v49 = vadd.f32 %v2353_v23, %v860_v30  ;;  %v6383_v23 = vld [vmem:[#allocation20 + $0x60] ss:$16 sps:$4 sm:$0xff]  }
 0x2d1   :  { %v2355_v24 = vpop.f32.mrf.mxu0 }
 0x2d2   :  { %v2356_v33 = vadd.f32 %v2355_v24, %v856_v22  ;;  %v6391_v24 = vld [vmem:[#allocation20 + $0x44] ss:$16 sps:$4 sm:$0xff]  }
 0x2d3   :  { %v2357_v20 = vpop.f32.mrf.mxu0 }
 0x2d4   :  { %v2358_v36 = vadd.f32 %v2357_v20, %v860_v30  ;;  %v6397_v20 = vld [vmem:[#allocation20 + $0x24] ss:$16 sps:$4 sm:$0xff]  }
 0x2d5   :  { %v2394_v25 = vpop.f32.mrf.mxu1 }
 0x2d6   :  { %v2395_v38 = vadd.f32 %v2394_v25, %v2352_v35  ;;  %v6389_v25 = vld [vmem:[#allocation20 + $0x40] ss:$16 sps:$4 sm:$0xff]  }
 0x2d7   :  { %v2396_v27 = vpop.f32.mrf.mxu1 }
 0x2d8   :  { %v2397_v13 = vadd.f32 %v2396_v27, %v2354_v49  ;;  %v6395_v27 = vld [vmem:[#allocation20 + $0x20] ss:$16 sps:$4 sm:$0xff]  }
 0x2d9   :  { %v2398_v47 = vpop.f32.mrf.mxu1 }
 0x2da   :  { %v2399_v37 = vadd.f32 %v2398_v47, %v2356_v33  ;;  %v6401_v47 = vld [vmem:[#allocation20] ss:$16 sps:$4 sm:$0xff]  }
 0x2db   :  { %v2400_v31 = vpop.f32.mrf.mxu1 }
 0x2dc   :  { %v2401_v44 = vadd.f32 %v2400_v31, %v2358_v36  ;;  %v2565_v31 = vld [vmem:[#allocation13] sm:$0x3] }
 0x2dd   :  { %v2574_v49 = vrot.slane %v2565_v31, %v7204_v42  ;;  %v2570_v33 = vrot.slane %v2565_v31, %v7207_v43  ;;  %v6418_v31 = vld [vmem:[#allocation19 + $0xcc] ss:$16 sps:$4 sm:$0xff]  }
 0x30d   :  { %v2437_v29 = vpop.f32.mrf.mxu0 }
 0x30e   :  { %v2438_v51 = vadd.f32 %v2437_v29, %v2395_v38  ;;  %v6403_v29 = vld [vmem:[#allocation20 + $0x4] ss:$16 sps:$4 sm:$0xff]  }
 0x30f   :  { %v2439_v28 = vpop.f32.mrf.mxu0 }
 0x310   :  { %v2440_v46 = vadd.f32 %v2439_v28, %v2397_v13  ;;  %v6409_v28 = vld [vmem:[#allocation19 + $0xe4] ss:$16 sps:$4 sm:$0xff]  }
 0x311   :  { %v2441_v32 = vpop.f32.mrf.mxu0 }
 0x312   :  { %v2442_v48 = vadd.f32 %v2441_v32, %v2399_v37 }
 0x313   :  { %v2443_v39 = vpop.f32.mrf.mxu0 }
 0x314   :  { %v2444_v53 = vadd.f32 %v2443_v39, %v2401_v44 }
 0x315   :  { %v2480_v63 = vpop.f32.mrf.mxu1 }
 0x316   :  { %v2481_v55 = vadd.f32 %v2480_v63, %v2438_v51 }
 0x317   :  { %v2482_v41 = vpop.f32.mrf.mxu1 }
 0x318   :  { %v2483_v54 = vadd.f32 %v2482_v41, %v2440_v46  ;;  %v2491_v1 = vmax.f32 %v2481_v55, 0.0 }
 0x319   :  { %v2484_v52 = vpop.f32.mrf.mxu1 }
 0x31a   :  { %v2485_v26 = vadd.f32 %v2484_v52, %v2442_v48  ;;  %v2492_v61 = vmax.f32 %v2483_v54, 0.0  ;;  %v5534_v52 = vld [vmem:[#allocation17] ss:$0 sm:$0xff] }
 0x31b   :  { %v2486_v56 = vpop.f32.mrf.mxu1 }
 0x31c   :  { %v2487_v59 = vadd.f32 %v2486_v56, %v2444_v53  ;;  %v2495_v60 = vmax.f32 %v2485_v26, 0.0 }
 0x31e   :  { %v2496_v62 = vmax.f32 %v2487_v59, 0.0  ;;  %v2499_v3 = vpack.c.bf16 %v2495_v60, %v2491_v1  ;;  %v6362_v1 = vld [vmem:[#allocation20 + $0xe8] ss:$16 sps:$4 sm:$0xff]  }
 0x320   :  { %v2500_v40 = vpack.c.bf16 %v2496_v62, %v2492_v61 }
 0x322   :  { %2972 = vmatprep.mubr.bf16.mxu1 %v2500_v40 }
 0x323   :  { %2973 = vmatmul.mubr.bf16.vlgmr.msra.gmra.mxu1 %v2499_v3 }
 0x324   :  { %5831 = vmatpush3.bf16.msra.mxu1 %v6342_v2  ;;  %5832 = vmatprep.mubr.msk.bf16.mxu1 %vm7021_vm1, %v7020_v10  ;;  %v6359_v10 = vld [vmem:[#allocation20 + $0xe0] ss:$16 sps:$4 sm:$0xff]   ;;  %v6370_v2 = vld [vmem:[#allocation20 + $0xcc] ss:$16 sps:$4 sm:$0xff]  }
 0x325   :  { %3458 = vmatprep.subr.bf16.mxu1 %v6361_v11  ;;  %v6382_v11 = vld [vmem:[#allocation20 + $0x8c] ss:$16 sps:$4 sm:$0xff]  }
 0x32b   :  { %5833 = vmatmul.mubr.msk.bf16.vlgmr.msra.gmra.mxu1 %vm3185_vm2, %v3169_v5 }
 0x32c   :  { %3490 = vmatprep.mubr.bf16.mxu1 %v7019_v0  ;;  %3459 = vmatpush1.bf16.msra.mxu1 %v6359_v10  ;;  %v6374_v10 = vld [vmem:[#allocation20 + $0xa8] ss:$16 sps:$4 sm:$0xff]  }
 0x32d   :  { %3460 = vmatprep.subr.bf16.mxu1 %v6367_v14  ;;  %v6421_v14 = vld [vmem:[#allocation19 + $0xa4] ss:$16 sps:$4 sm:$0xff]  }
 0x330   :  { %3461 = vmatpush1.bf16.msra.mxu1 %v6365_v15  ;;  %v6380_v15 = vld [vmem:[#allocation20 + $0x88] ss:$16 sps:$4 sm:$0xff]  }
 0x331   :  { %3462 = vmatprep.subr.bf16.mxu1 %v6373_v16  ;;  %v6388_v16 = vld [vmem:[#allocation20 + $0x6c] ss:$16 sps:$4 sm:$0xff]  }
 0x334   :  { %3463 = vmatpush1.bf16.msra.mxu1 %v6371_v17  ;;  %v6419_v17 = vld [vmem:[#allocation19 + $0xa0] ss:$16 sps:$4 sm:$0xff]  }
 0x335   :  { %3464 = vmatprep.subr.bf16.mxu1 %v6379_v18  ;;  %v6427_v18 = vld [vmem:[#allocation19 + $0x84] ss:$16 sps:$4 sm:$0xff]  }
 0x338   :  { %3465 = vmatpush1.bf16.msra.mxu1 %v6377_v19  ;;  %v6386_v19 = vld [vmem:[#allocation20 + $0x68] ss:$16 sps:$4 sm:$0xff]  }
 0x339   :  { %3466 = vmatprep.subr.bf16.mxu1 %v6385_v21  ;;  %v6394_v21 = vld [vmem:[#allocation20 + $0x4c] ss:$16 sps:$4 sm:$0xff]  }
 0x33c   :  { %3467 = vmatpush1.bf16.msra.mxu1 %v6383_v23  ;;  %v6425_v23 = vld [vmem:[#allocation19 + $0x80] ss:$16 sps:$4 sm:$0xff]  }
 0x33d   :  { %3468 = vmatprep.subr.bf16.mxu1 %v6391_v24  ;;  %v6433_v24 = vld [vmem:[#allocation19 + $0x64] ss:$16 sps:$4 sm:$0xff]  }
 0x340   :  { %3469 = vmatpush1.bf16.msra.mxu1 %v6389_v25  ;;  %v6392_v25 = vld [vmem:[#allocation20 + $0x48] ss:$16 sps:$4 sm:$0xff]  }
 0x341   :  { %3470 = vmatprep.subr.bf16.mxu1 %v6397_v20  ;;  %v6400_v20 = vld [vmem:[#allocation20 + $0x2c] ss:$16 sps:$4 sm:$0xff]  }
 0x344   :  { %3471 = vmatpush1.bf16.msra.mxu1 %v6395_v27  ;;  %v6431_v27 = vld [vmem:[#allocation19 + $0x60] ss:$16 sps:$4 sm:$0xff]  }
 0x345   :  { %3472 = vmatprep.subr.bf16.mxu1 %v6403_v29  ;;  %v6398_v29 = vld [vmem:[#allocation20 + $0x28] ss:$16 sps:$4 sm:$0xff]  }
 0x348   :  { %3473 = vmatpush1.bf16.msra.mxu1 %v6401_v47  ;;  %v6406_v47 = vld [vmem:[#allocation20 + $0xc] ss:$16 sps:$4 sm:$0xff]  }
 0x349   :  { %3704 = vmatprep.subr.bf16.mxu1 %v6409_v28  ;;  %v6404_v28 = vld [vmem:[#allocation20 + $0x8] ss:$16 sps:$4 sm:$0xff]  }
 0x363   :  { %v2931_v30 = vpop.f32.mrf.mxu0 }
 0x364   :  { %v2932_v38 = vadd.f32 %v2931_v30, %v2570_v33  ;;  %v6412_v30 = vld [vmem:[#allocation19 + $0xec] ss:$16 sps:$4 sm:$0xff]  }
 0x365   :  { %v2933_v22 = vpop.f32.mrf.mxu0 }
 0x366   :  { %v2934_v13 = vadd.f32 %v2933_v22, %v2574_v49  ;;  %v6410_v22 = vld [vmem:[#allocation19 + $0xe8] ss:$16 sps:$4 sm:$0xff]  }
 0x367   :  { %v2935_v32 = vpop.f32.mrf.mxu0 }
 0x368   :  { %v2936_v37 = vadd.f32 %v2935_v32, %v2570_v33  ;;  %v6416_v32 = vld [vmem:[#allocation19 + $0xc8] ss:$16 sps:$4 sm:$0xff]  }
 0x369   :  { %v2937_v63 = vpop.f32.mrf.mxu0  ;;  %v6422_v33 = vld [vmem:[#allocation19 + $0xa8] ss:$16 sps:$4 sm:$0xff]  }
 0x36a   :  { %v2938_v41 = vadd.f32 %v2937_v63, %v2574_v49  ;;  %v6424_v49 = vld [vmem:[#allocation19 + $0xac] ss:$16 sps:$4 sm:$0xff]   ;;  %v6428_v63 = vld [vmem:[#allocation19 + $0x88] ss:$16 sps:$4 sm:$0xff]  }
 0x3e3   :  { %v2974_v35 = vpop.f32.mrf.mxu1 }
 0x3e4   :  { %v2975_v48 = vadd.f32 %v2974_v35, %v2932_v38  ;;  %v6430_v35 = vld [vmem:[#allocation19 + $0x8c] ss:$16 sps:$4 sm:$0xff]  }
 0x3e5   :  { %v2976_v36 = vpop.f32.mrf.mxu1  ;;  %v6442_v38 = vld [vmem:[#allocation19 + $0x4c] ss:$16 sps:$4 sm:$0xff]  }
 0x3e6   :  { %v2977_v44 = vadd.f32 %v2976_v36, %v2934_v13  ;;  %v2983_v60 = vmax.f32 %v2975_v48, 0.0  ;;  %v6436_v36 = vld [vmem:[#allocation19 + $0x6c] ss:$16 sps:$4 sm:$0xff]   ;;  %v6434_v13 = vld [vmem:[#allocation19 + $0x68] ss:$16 sps:$4 sm:$0xff]  }
 0x3e7   :  { %v2978_v39 = vpop.f32.mrf.mxu1  ;;  %v6446_v48 = vld [vmem:[#allocation19 + $0x28] ss:$16 sps:$4 sm:$0xff]  }
 0x3e8   :  { %v2979_v46 = vadd.f32 %v2978_v39, %v2936_v37  ;;  %v2984_v55 = vmax.f32 %v2977_v44, 0.0  ;;  %v6439_v37 = vld [vmem:[#allocation19 + $0x44] ss:$16 sps:$4 sm:$0xff]   ;;  %v6437_v39 = vld [vmem:[#allocation19 + $0x40] ss:$16 sps:$4 sm:$0xff]  }
 0x3e9   :  { %v2980_v51 = vpop.f32.mrf.mxu1  ;;  %v6448_v44 = vld [vmem:[#allocation19 + $0x2c] ss:$16 sps:$4 sm:$0xff]  }
 0x3ea   :  { %v2981_v53 = vadd.f32 %v2980_v51, %v2938_v41  ;;  %v2985_v54 = vmax.f32 %v2979_v46, 0.0  ;;  %v6440_v41 = vld [vmem:[#allocation19 + $0x48] ss:$16 sps:$4 sm:$0xff]   ;;  %v6443_v46 = vld [vmem:[#allocation19 + $0x20] ss:$16 sps:$4 sm:$0xff]  }
 0x3eb   :  { %v3223_v26 = vpop.f32.mrf.mxu1  ;;  %v6451_v51 = vld [vmem:[#allocation19 + $0x4] ss:$16 sps:$4 sm:$0xff]  }
 0x3ec   :  { %v2986_v56 = vmax.f32 %v2981_v53, 0.0  ;;  %v3224_v59 = vadd.f32 %v5534_v52, %v3223_v26  ;;  %v2987_v40 = vpack.c.bf16 %v2985_v54, %v2983_v60  ;;  %v6449_v53 = vld [vmem:[#allocation19] ss:$16 sps:$4 sm:$0xff]   ;;  %v6452_v54 = vld [vmem:[#allocation19 + $0x8] ss:$16 sps:$4 sm:$0xff]  }
 0x3ed   :  { %v5834_v61 = vpop.f32.mrf.mxu1  ;;  %v6457_v26 = vld [vmem:[#allocation22 + $0xe4] ss:$16 sps:$4 sm:$0xff]  }
 0x3ee   :  { %v2988_v62 = vpack.c.bf16 %v2986_v56, %v2984_v55  ;;  %v3230_v4 = vmax.f32 %v3224_v59, 0.0  ;;  %v6460_v55 = vld [vmem:[#allocation22 + $0x2e4] ss:$16 sps:$4 sm:$0xff]   ;;  %v5517_v61 = vld [vmem:[#allocation16] ss:$0 sm:$0xff] }
 0x3ef   :  { %v3226_v3 = vpop.f32.mrf.mxu1 }
 0x3f0   :  { %3156 = vmatprep.mubr.bf16.mxu0 %v2988_v62  ;;  %v3227_v45 = vadd.f32 %v5534_v52, %v3226_v3  ;;  %v6454_v52 = vld [vmem:[#allocation19 + $0xc] ss:$16 sps:$4 sm:$0xff]  }
 0x3f1   :  { %3157 = vmatmul.mubr.bf16.vlgmr.msra.gmra.mxu0 %v2987_v40  ;;  %v5835_v5 = vpop.f32.mrf.mxu1 }
 0x3f2   :  { %3502 = vmatpush1.bf16.msra.mxu0 %v6362_v1  ;;  %v3231_v7 = vmax.f32 %v3227_v45, 0.0  ;;  %3533 = vmatprep.mubr.bf16.mxu0 %v7019_v0  ;;  %v6455_v5 = vld [vmem:[#allocation22 + $0xe0] ss:$16 sps:$4 sm:$0xff]  }
 0x3f3   :  { %3503 = vmatprep.subr.bf16.mxu0 %v6370_v2 }
 0x3f4   :  { %v3265_v34 = vpack.c.bf16 %v3231_v7, %v3230_v4 }
 0x3f6   :  { %3504 = vmatpush1.bf16.msra.mxu0 %v6368_v6  ;;  %3491 = vmatmul.mubr.bf16.vlgmr.msra.gmra.mxu1 %v3265_v34  ;;  %v6458_v6 = vld [vmem:[#allocation22 + $0x2e0] ss:$16 sps:$4 sm:$0xff]  }
 0x3f7   :  { %3505 = vmatprep.subr.bf16.mxu0 %v6376_v8  ;;  %3705 = vmatpush1.bf16.msra.mxu1 %v6407_v9  ;;  %v6463_v8 = vld [vmem:[#allocation22 + $0xc4] ss:$16 sps:$4 sm:$0xff]  }
 0x3f8   :  { %3706 = vmatprep.subr.bf16.mxu1 %v6415_v50  ;;  %3736 = vmatprep.mubr.bf16.mxu1 %v7019_v0  ;;  %v6466_v9 = vld [vmem:[#allocation22 + $0x2c4] ss:$16 sps:$4 sm:$0xff]   ;;  %v6464_v50 = vld [vmem:[#allocation22 + $0x2c0] ss:$16 sps:$4 sm:$0xff]  }
 0x3fa   :  { %3506 = vmatpush1.bf16.msra.mxu0 %v6374_v10  ;;  %v6469_v10 = vld [vmem:[#allocation22 + $0xa4] ss:$16 sps:$4 sm:$0xff]  }
 0x3fb   :  { %3507 = vmatprep.subr.bf16.mxu0 %v6382_v11  ;;  %3707 = vmatpush1.bf16.msra.mxu1 %v6413_v12  ;;  %v6472_v11 = vld [vmem:[#allocation22 + $0x2a4] ss:$16 sps:$4 sm:$0xff]   ;;  %v6467_v12 = vld [vmem:[#allocation22 + $0xa0] ss:$16 sps:$4 sm:$0xff]  }
 0x3fc   :  { %3708 = vmatprep.subr.bf16.mxu1 %v6421_v14  ;;  %v6470_v14 = vld [vmem:[#allocation22 + $0x2a0] ss:$16 sps:$4 sm:$0xff]  }
 0x3fe   :  { %3508 = vmatpush1.bf16.msra.mxu0 %v6380_v15  ;;  %v6475_v15 = vld [vmem:[#allocation22 + $0x84] ss:$16 sps:$4 sm:$0xff]  }
 0x3ff   :  { %3509 = vmatprep.subr.bf16.mxu0 %v6388_v16  ;;  %3709 = vmatpush1.bf16.msra.mxu1 %v6419_v17  ;;  %v6478_v16 = vld [vmem:[#allocation22 + $0x284] ss:$16 sps:$4 sm:$0xff]   ;;  %v6473_v17 = vld [vmem:[#allocation22 + $0x80] ss:$16 sps:$4 sm:$0xff]  }
 0x400   :  { %3710 = vmatprep.subr.bf16.mxu1 %v6427_v18  ;;  %v6476_v18 = vld [vmem:[#allocation22 + $0x280] ss:$16 sps:$4 sm:$0xff]  }
 0x402   :  { %3510 = vmatpush1.bf16.msra.mxu0 %v6386_v19  ;;  %v6481_v19 = vld [vmem:[#allocation22 + $0x64] ss:$16 sps:$4 sm:$0xff]  }
 0x403   :  { %3511 = vmatprep.subr.bf16.mxu0 %v6394_v21  ;;  %3711 = vmatpush1.bf16.msra.mxu1 %v6425_v23  ;;  %v6484_v21 = vld [vmem:[#allocation22 + $0x264] ss:$16 sps:$4 sm:$0xff]   ;;  %v6479_v23 = vld [vmem:[#allocation22 + $0x60] ss:$16 sps:$4 sm:$0xff]  }
 0x404   :  { %3712 = vmatprep.subr.bf16.mxu1 %v6433_v24  ;;  %v6482_v24 = vld [vmem:[#allocation22 + $0x260] ss:$16 sps:$4 sm:$0xff]  }
 0x406   :  { %3512 = vmatpush1.bf16.msra.mxu0 %v6392_v25  ;;  %v6487_v25 = vld [vmem:[#allocation22 + $0x44] ss:$16 sps:$4 sm:$0xff]  }
 0x407   :  { %3513 = vmatprep.subr.bf16.mxu0 %v6400_v20  ;;  %3713 = vmatpush1.bf16.msra.mxu1 %v6431_v27  ;;  %v6490_v20 = vld [vmem:[#allocation22 + $0x244] ss:$16 sps:$4 sm:$0xff]   ;;  %v6485_v27 = vld [vmem:[#allocation22 + $0x40] ss:$16 sps:$4 sm:$0xff]  }
 0x408   :  { %3714 = vmatprep.subr.bf16.mxu1 %v6439_v37  ;;  %v6511_v37 = vld [vmem:[#allocation22 + $0x1c4] ss:$16 sps:$4 sm:$0xff]  }
 0x40a   :  { %3514 = vmatpush1.bf16.msra.mxu0 %v6398_v29  ;;  %v6488_v29 = vld [vmem:[#allocation22 + $0x240] ss:$16 sps:$4 sm:$0xff]  }
 0x40b   :  { %3515 = vmatprep.subr.bf16.mxu0 %v6406_v47  ;;  %3715 = vmatpush1.bf16.msra.mxu1 %v6437_v39  ;;  %v6493_v47 = vld [vmem:[#allocation22 + $0x24] ss:$16 sps:$4 sm:$0xff]   ;;  %v6509_v39 = vld [vmem:[#allocation22 + $0x1c0] ss:$16 sps:$4 sm:$0xff]  }
 0x40e   :  { %3516 = vmatpush1.bf16.msra.mxu0 %v6404_v28  ;;  %v6496_v28 = vld [vmem:[#allocation22 + $0x224] ss:$16 sps:$4 sm:$0xff]  }
 0x40f   :  { %3747 = vmatprep.subr.bf16.mxu0 %v6412_v30  ;;  %v6491_v30 = vld [vmem:[#allocation22 + $0x20] ss:$16 sps:$4 sm:$0xff]  }
 0x411   :  { %3534 = vmatmul.mubr.bf16.vlgmr.msra.gmra.mxu0 %v3265_v34  ;;  %v6461_v34 = vld [vmem:[#allocation22 + $0xc0] ss:$16 sps:$4 sm:$0xff]  }
 0x412   :  { %3748 = vmatpush1.bf16.msra.mxu0 %v6410_v22  ;;  %3779 = vmatprep.mubr.bf16.mxu0 %v7019_v0  ;;  %v6445_v0 = vld [vmem:[#allocation19 + $0x24] ss:$16 sps:$4 sm:$0xff]   ;;  %v6494_v22 = vld [vmem:[#allocation22 + $0x220] ss:$16 sps:$4 sm:$0xff]  }
 0x413   :  { %3749 = vmatprep.subr.bf16.mxu0 %v6418_v31  ;;  %3716 = vmatprep.subr.bf16.mxu1 %v6445_v0  ;;  %v6499_v31 = vld [vmem:[#allocation22 + $0x4] ss:$16 sps:$4 sm:$0xff]  }
 0x414   :  { %3717 = vmatpush1.bf16.msra.mxu1 %v6443_v46  ;;  %v6517_v0 = vld [vmem:[#allocation22 + $0x1a4] ss:$16 sps:$4 sm:$0xff]   ;;  %v6515_v46 = vld [vmem:[#allocation22 + $0x1a0] ss:$16 sps:$4 sm:$0xff]  }
 0x415   :  { %3718 = vmatprep.subr.bf16.mxu1 %v6451_v51  ;;  %v6523_v51 = vld [vmem:[#allocation22 + $0x184] ss:$16 sps:$4 sm:$0xff]  }
 0x416   :  { %3750 = vmatpush1.bf16.msra.mxu0 %v6416_v32  ;;  %v6502_v32 = vld [vmem:[#allocation22 + $0x204] ss:$16 sps:$4 sm:$0xff]  }
 0x417   :  { %3751 = vmatprep.subr.bf16.mxu0 %v6424_v49  ;;  %v6497_v49 = vld [vmem:[#allocation22] ss:$16 sps:$4 sm:$0xff]  }
 0x418   :  { %3719 = vmatpush1.bf16.msra.mxu1 %v6449_v53  ;;  %v6521_v53 = vld [vmem:[#allocation22 + $0x180] ss:$16 sps:$4 sm:$0xff]  }
 0x419   :  { %4622 = vmatprep.subr.bf16.mxu1 %v6457_v26  ;;  %v6529_v26 = vld [vmem:[#allocation22 + $0x164] ss:$16 sps:$4 sm:$0xff]  }
 0x41a   :  { %3752 = vmatpush1.bf16.msra.mxu0 %v6422_v33  ;;  %v6500_v33 = vld [vmem:[#allocation22 + $0x200] ss:$16 sps:$4 sm:$0xff]  }
 0x41b   :  { %3753 = vmatprep.subr.bf16.mxu0 %v6430_v35  ;;  %v6505_v35 = vld [vmem:[#allocation22 + $0x1e4] ss:$16 sps:$4 sm:$0xff]  }
 0x41e   :  { %3754 = vmatpush1.bf16.msra.mxu0 %v6428_v63  ;;  %v6508_v63 = vld [vmem:[#allocation22 + $0x3e4] ss:$16 sps:$4 sm:$0xff]  }
 0x41f   :  { %3755 = vmatprep.subr.bf16.mxu0 %v6436_v36  ;;  %v6503_v36 = vld [vmem:[#allocation22 + $0x1e0] ss:$16 sps:$4 sm:$0xff]  }
 0x422   :  { %3756 = vmatpush1.bf16.msra.mxu0 %v6434_v13  ;;  %v6506_v13 = vld [vmem:[#allocation22 + $0x3e0] ss:$16 sps:$4 sm:$0xff]  }
 0x423   :  { %3757 = vmatprep.subr.bf16.mxu0 %v6442_v38  ;;  %v6514_v38 = vld [vmem:[#allocation22 + $0x3c4] ss:$16 sps:$4 sm:$0xff]  }
 0x426   :  { %3758 = vmatpush1.bf16.msra.mxu0 %v6440_v41  ;;  %v6512_v41 = vld [vmem:[#allocation22 + $0x3c0] ss:$16 sps:$4 sm:$0xff]  }
 0x427   :  { %3759 = vmatprep.subr.bf16.mxu0 %v6448_v44  ;;  %v6520_v44 = vld [vmem:[#allocation22 + $0x3a4] ss:$16 sps:$4 sm:$0xff]  }
 0x42a   :  { %3760 = vmatpush1.bf16.msra.mxu0 %v6446_v48  ;;  %v6518_v48 = vld [vmem:[#allocation22 + $0x3a0] ss:$16 sps:$4 sm:$0xff]  }
 0x42b   :  { %3761 = vmatprep.subr.bf16.mxu0 %v6454_v52  ;;  %v6526_v52 = vld [vmem:[#allocation22 + $0x384] ss:$16 sps:$4 sm:$0xff]  }
 0x42e   :  { %3762 = vmatpush1.bf16.msra.mxu0 %v6452_v54  ;;  %v6524_v54 = vld [vmem:[#allocation22 + $0x380] ss:$16 sps:$4 sm:$0xff]  }
 0x42f   :  { %4665 = vmatprep.subr.bf16.mxu0 %v6460_v55  ;;  %v6532_v55 = vld [vmem:[#allocation22 + $0x364] ss:$16 sps:$4 sm:$0xff]  }
 0x4b1   :  { %v5778_v56 = vpop.f32.mrf.mxu0 }
 0x4b3   :  { %v5779_v59 = vpop.f32.mrf.mxu0 }
 0x4b4   :  { %v5780_v60 = vadd.f32 %v5779_v59, %v5778_v56  ;;  %v6527_v56 = vld [vmem:[#allocation22 + $0x160] ss:$16 sps:$4 sm:$0xff]  }
 0x4b5   :  { %v5781_v62 = vpop.f32.mrf.mxu0  ;;  %v6530_v59 = vld [vmem:[#allocation22 + $0x360] ss:$16 sps:$4 sm:$0xff]  }
 0x4b6   :  { %v3159_v40 = vadd.f32 %v5780_v60, %v5517_v61  ;;  %v6535_v60 = vld [vmem:[#allocation22 + $0x144] ss:$16 sps:$4 sm:$0xff]  }
 0x4b7   :  { %v5782_v1 = vpop.f32.mrf.mxu0 }
 0x4b8   :  { %v5783_v2 = vadd.f32 %v5782_v1, %v5781_v62  ;;  %v3165_v4 = vmax.f32 %v3159_v40, 0.0  ;;  %v6533_v62 = vld [vmem:[#allocation22 + $0x140] ss:$16 sps:$4 sm:$0xff]   ;;  %v6541_v40 = vld [vmem:[#allocation22 + $0x124] ss:$16 sps:$4 sm:$0xff]  }
 0x4b9   :  { %v6536_v1 = vld [vmem:[#allocation22 + $0x340] ss:$16 sps:$4 sm:$0xff]  }
 0x4ba   :  { %v3162_v3 = vadd.f32 %v5783_v2, %v5517_v61  ;;  %v6538_v61 = vld [vmem:[#allocation22 + $0x344] ss:$16 sps:$4 sm:$0xff]  }
 0x4bb   :  { %v6544_v2 = vld [vmem:[#allocation22 + $0x324] ss:$16 sps:$4 sm:$0xff]  }
 0x4bc   :  { %v3166_v45 = vmax.f32 %v3162_v3, 0.0  ;;  %v6539_v3 = vld [vmem:[#allocation22 + $0x120] ss:$16 sps:$4 sm:$0xff]  }
 0x4be   :  { %v3232_v7 = vpack.c.bf16 %v3166_v45, %v3165_v4  ;;  %v6542_v4 = vld [vmem:[#allocation22 + $0x320] ss:$16 sps:$4 sm:$0xff]   ;;  %v6547_v45 = vld [vmem:[#allocation22 + $0x104] ss:$16 sps:$4 sm:$0xff]  }
 0x4c0   :  { %3737 = vmatmul.mubr.bf16.vlgmr.msra.gmra.mxu1 %v3232_v7  ;;  %3780 = vmatmul.mubr.bf16.vlgmr.msra.gmra.mxu0 %v3232_v7  ;;  %v6548_v7 = vld [vmem:[#allocation22 + $0x300] ss:$16 sps:$4 sm:$0xff]  }
 0x4c1   :  { %4623 = vmatpush1.bf16.msra.mxu1 %v6455_v5  ;;  %4666 = vmatpush1.bf16.msra.mxu0 %v6458_v6  ;;  %v6550_v5 = vld [vmem:[#allocation22 + $0x304] ss:$16 sps:$4 sm:$0xff]   ;;  %v6545_v6 = vld [vmem:[#allocation22 + $0x100] ss:$16 sps:$4 sm:$0xff]  }
 0x4c2   :  { %4624 = vmatprep.subr.bf16.mxu1 %v6463_v8  ;;  %4667 = vmatprep.subr.bf16.mxu0 %v6466_v9  ;;  %v6553_v8 = vld [vmem:[#allocation22 + $0xec] ss:$16 sps:$4 sm:$0xff]  }
 0x4c3   :  { %v6556_v9 = vld [vmem:[#allocation22 + $0x2ec] ss:$16 sps:$4 sm:$0xff]  }
 0x4c5   :  { %4625 = vmatpush1.bf16.msra.mxu1 %v6461_v34  ;;  %4668 = vmatpush1.bf16.msra.mxu0 %v6464_v50  ;;  %v3492_v34 = vpop.f32.mrf.mxu1 }
 0x4c6   :  { %4626 = vmatprep.subr.bf16.mxu1 %v6469_v10  ;;  %4669 = vmatprep.subr.bf16.mxu0 %v6472_v11 }
 0x4c7   :  { %v3494_v10 = vpop.f32.mrf.mxu1 }
 0x4c9   :  { %4627 = vmatpush1.bf16.msra.mxu1 %v6467_v12  ;;  %4670 = vmatpush1.bf16.msra.mxu0 %v6470_v14  ;;  %v3496_v12 = vpop.f32.mrf.mxu1 }
 0x4ca   :  { %4628 = vmatprep.subr.bf16.mxu1 %v6475_v15  ;;  %4671 = vmatprep.subr.bf16.mxu0 %v6478_v16 }
 0x4cb   :  { %v3498_v15 = vpop.f32.mrf.mxu1 }
 0x4cd   :  { %4629 = vmatpush1.bf16.msra.mxu1 %v6473_v17  ;;  %4672 = vmatpush1.bf16.msra.mxu0 %v6476_v18 }
 0x4ce   :  { %4630 = vmatprep.subr.bf16.mxu1 %v6481_v19  ;;  %4673 = vmatprep.subr.bf16.mxu0 %v6484_v21  ;;  %v3790_v19 = vld [vmem:[%s7339_s14] sm:$0xf] }
 0x4d1   :  { %4631 = vmatpush1.bf16.msra.mxu1 %v6479_v23  ;;  %4674 = vmatpush1.bf16.msra.mxu0 %v6482_v24  ;;  %v3535_v50 = vpop.f32.mrf.mxu0 }
 0x4d2   :  { %4632 = vmatprep.subr.bf16.mxu1 %v6487_v25  ;;  %4675 = vmatprep.subr.bf16.mxu0 %v6490_v20  ;;  %v3799_v25 = vrot.slane %v3790_v19, %v7204_v42 }
 0x4d3   :  { %v3537_v11 = vpop.f32.mrf.mxu0 }
 0x4d5   :  { %4633 = vmatpush1.bf16.msra.mxu1 %v6485_v27  ;;  %4676 = vmatpush1.bf16.msra.mxu0 %v6488_v29  ;;  %v3539_v14 = vpop.f32.mrf.mxu0  ;;  %v3807_v27 = vrot.slane %v3790_v19, %v7222_v58 }
 0x4d6   :  { %4634 = vmatprep.subr.bf16.mxu1 %v6493_v47  ;;  %4677 = vmatprep.subr.bf16.mxu0 %v6496_v28  ;;  %v3795_v47 = vrot.slane %v3790_v19, %v7207_v43 }
 0x4d7   :  { %v3541_v16 = vpop.f32.mrf.mxu0 }
 0x4d9   :  { %4635 = vmatpush1.bf16.msra.mxu1 %v6491_v30  ;;  %4678 = vmatpush1.bf16.msra.mxu0 %v6494_v22  ;;  %v3803_v30 = vrot.slane %v3790_v19, %v7219_v57  ;;  %v6584_v19 = vld [vmem:[#allocation22 + $0x248] ss:$16 sps:$4 sm:$0xff]  }
 0x4da   :  { %4636 = vmatprep.subr.bf16.mxu1 %v6499_v31  ;;  %4679 = vmatprep.subr.bf16.mxu0 %v6502_v32 }
 0x4dd   :  { %4637 = vmatpush1.bf16.msra.mxu1 %v6497_v49  ;;  %4680 = vmatpush1.bf16.msra.mxu0 %v6500_v33 }
 0x4de   :  { %4638 = vmatprep.subr.bf16.mxu1 %v6505_v35  ;;  %4681 = vmatprep.subr.bf16.mxu0 %v6508_v63 }
 0x4e1   :  { %4639 = vmatpush2.bf16.msra.mxu1 %v6503_v36  ;;  %4682 = vmatpush2.bf16.msra.mxu0 %v6506_v13 }
 0x4e2   :  { %4640 = vmatprep.subr.bf16.mxu1 %v6511_v37  ;;  %4683 = vmatprep.subr.bf16.mxu0 %v6514_v38 }
 0x4e5   :  { %4641 = vmatpush2.bf16.msra.mxu1 %v6509_v39  ;;  %4684 = vmatpush2.bf16.msra.mxu0 %v6512_v41 }
 0x4e6   :  { %4642 = vmatprep.subr.bf16.mxu1 %v6517_v0  ;;  %4685 = vmatprep.subr.bf16.mxu0 %v6520_v44 }
 0x4e9   :  { %4643 = vmatpush2.bf16.msra.mxu1 %v6515_v46  ;;  %4686 = vmatpush2.bf16.msra.mxu0 %v6518_v48 }
 0x4ea   :  { %4644 = vmatprep.subr.bf16.mxu1 %v6523_v51  ;;  %4687 = vmatprep.subr.bf16.mxu0 %v6526_v52 }
 0x4ed   :  { %4645 = vmatpush2.bf16.msra.mxu1 %v6521_v53  ;;  %4688 = vmatpush2.bf16.msra.mxu0 %v6524_v54 }
 0x4ee   :  { %4646 = vmatprep.subr.bf16.mxu1 %v6529_v26  ;;  %4689 = vmatprep.subr.bf16.mxu0 %v6532_v55 }
 0x4f1   :  { %4647 = vmatpush2.bf16.msra.mxu1 %v6527_v56  ;;  %4690 = vmatpush2.bf16.msra.mxu0 %v6530_v59 }
 0x4f2   :  { %4648 = vmatprep.subr.bf16.mxu1 %v6535_v60  ;;  %4691 = vmatprep.subr.bf16.mxu0 %v6538_v61  ;;  %v6551_v61 = vld [vmem:[#allocation22 + $0xe8] ss:$16 sps:$4 sm:$0xff]  }
 0x4f5   :  { %4649 = vmatpush2.bf16.msra.mxu1 %v6533_v62  ;;  %4692 = vmatpush2.bf16.msra.mxu0 %v6536_v1  ;;  %v6554_v62 = vld [vmem:[#allocation22 + $0x2e8] ss:$16 sps:$4 sm:$0xff]  }
 0x4f6   :  { %4650 = vmatprep.subr.bf16.mxu1 %v6541_v40  ;;  %4693 = vmatprep.subr.bf16.mxu0 %v6544_v2  ;;  %v6559_v2 = vld [vmem:[#allocation22 + $0xcc] ss:$16 sps:$4 sm:$0xff]  }
 0x4f9   :  { %4651 = vmatpush2.bf16.msra.mxu1 %v6539_v3  ;;  %4694 = vmatpush2.bf16.msra.mxu0 %v6542_v4  ;;  %v6562_v3 = vld [vmem:[#allocation22 + $0x2cc] ss:$16 sps:$4 sm:$0xff]   ;;  %v6557_v4 = vld [vmem:[#allocation22 + $0xc8] ss:$16 sps:$4 sm:$0xff]  }
 0x4fa   :  { %4652 = vmatprep.subr.bf16.mxu1 %v6547_v45  ;;  %4695 = vmatprep.subr.bf16.mxu0 %v6550_v5  ;;  %v6560_v45 = vld [vmem:[#allocation22 + $0x2c8] ss:$16 sps:$4 sm:$0xff]   ;;  %v6565_v5 = vld [vmem:[#allocation22 + $0xac] ss:$16 sps:$4 sm:$0xff]  }
 0x4fd   :  { %4653 = vmatpush2.bf16.msra.mxu1 %v6545_v6  ;;  %4696 = vmatpush2.bf16.msra.mxu0 %v6548_v7  ;;  %v6568_v6 = vld [vmem:[#allocation22 + $0x2ac] ss:$16 sps:$4 sm:$0xff]   ;;  %v6563_v7 = vld [vmem:[#allocation22 + $0xa8] ss:$16 sps:$4 sm:$0xff]  }
 0x4fe   :  { %4708 = vmatprep.subr.bf16.mxu1 %v6553_v8  ;;  %4751 = vmatprep.subr.bf16.mxu0 %v6556_v9  ;;  %v6566_v8 = vld [vmem:[#allocation22 + $0x2a8] ss:$16 sps:$4 sm:$0xff]   ;;  %v6571_v9 = vld [vmem:[#allocation22 + $0x8c] ss:$16 sps:$4 sm:$0xff]  }
 0x580   :  { %v3738_v17 = vpop.f32.mrf.mxu1  ;;  %v3781_v18 = vpop.f32.mrf.mxu0 }
 0x581   :  { %v3739_v29 = vadd.f32 %v3738_v17, %v3492_v34  ;;  %v3782_v28 = vadd.f32 %v3781_v18, %v3535_v50  ;;  %v6574_v34 = vld [vmem:[#allocation22 + $0x28c] ss:$16 sps:$4 sm:$0xff]   ;;  %v6569_v50 = vld [vmem:[#allocation22 + $0x88] ss:$16 sps:$4 sm:$0xff]  }
 0x582   :  { %v3740_v21 = vpop.f32.mrf.mxu1  ;;  %v3783_v23 = vpop.f32.mrf.mxu0  ;;  %v6586_v17 = vld [vmem:[#allocation22 + $0x24c] ss:$16 sps:$4 sm:$0xff]   ;;  %v6581_v18 = vld [vmem:[#allocation22 + $0x48] ss:$16 sps:$4 sm:$0xff]  }
 0x583   :  { %v3741_v24 = vadd.f32 %v3740_v21, %v3494_v10  ;;  %v3784_v20 = vadd.f32 %v3783_v23, %v3537_v11  ;;  %v3812_v38 = vadd.f32 %v3795_v47, %v3739_v29  ;;  %v3814_v39 = vadd.f32 %v3803_v30, %v3782_v28  ;;  %v6572_v10 = vld [vmem:[#allocation22 + $0x288] ss:$16 sps:$4 sm:$0xff]   ;;  %v6577_v11 = vld [vmem:[#allocation22 + $0x6c] ss:$16 sps:$4 sm:$0xff]  }
 0x584   :  { %v3742_v22 = vpop.f32.mrf.mxu1  ;;  %v3785_v31 = vpop.f32.mrf.mxu0  ;;  %v6589_v21 = vld [vmem:[#allocation22 + $0x2c] ss:$16 sps:$4 sm:$0xff]   ;;  %v6593_v29 = vld [vmem:[#allocation22 + $0x8] ss:$16 sps:$4 sm:$0xff]  }
 0x585   :  { %v3743_v32 = vadd.f32 %v3742_v22, %v3496_v12  ;;  %v3786_v49 = vadd.f32 %v3785_v31, %v3539_v14  ;;  %v3813_v63 = vadd.f32 %v3799_v25, %v3741_v24  ;;  %v3815_v36 = vadd.f32 %v3807_v27, %v3784_v20  ;;  %v6580_v12 = vld [vmem:[#allocation22 + $0x26c] ss:$16 sps:$4 sm:$0xff]   ;;  %v6575_v14 = vld [vmem:[#allocation22 + $0x68] ss:$16 sps:$4 sm:$0xff]  }
 0x586   :  { %v3744_v33 = vpop.f32.mrf.mxu1  ;;  %v3787_v35 = vpop.f32.mrf.mxu0  ;;  %v3820_v55 = vmax.f32 %v3812_v38, 0.0  ;;  %v3822_v56 = vmax.f32 %v3814_v39, 0.0  ;;  %v6592_v23 = vld [vmem:[#allocation22 + $0x22c] ss:$16 sps:$4 sm:$0xff]   ;;  %v6587_v24 = vld [vmem:[#allocation22 + $0x28] ss:$16 sps:$4 sm:$0xff]  }
 0x587   :  { %v3745_v13 = vadd.f32 %v3744_v33, %v3498_v15  ;;  %v3788_v37 = vadd.f32 %v3787_v35, %v3541_v16  ;;  %v3816_v41 = vadd.f32 %v3795_v47, %v3743_v32  ;;  %v3818_v0 = vadd.f32 %v3803_v30, %v3786_v49  ;;  %v6578_v15 = vld [vmem:[#allocation22 + $0x268] ss:$16 sps:$4 sm:$0xff]   ;;  %v6583_v16 = vld [vmem:[#allocation22 + $0x4c] ss:$16 sps:$4 sm:$0xff]  }
 0x588   :  { %v3821_v52 = vmax.f32 %v3813_v63, 0.0  ;;  %v3823_v53 = vmax.f32 %v3815_v36, 0.0  ;;  %v6595_v20 = vld [vmem:[#allocation22 + $0xc] ss:$16 sps:$4 sm:$0xff]   ;;  %v6596_v47 = vld [vmem:[#allocation22 + $0x208] ss:$16 sps:$4 sm:$0xff]  }
 0x589   :  { %v3817_v44 = vadd.f32 %v3799_v25, %v3745_v13  ;;  %v3819_v46 = vadd.f32 %v3807_v27, %v3788_v37  ;;  %v3824_v48 = vmax.f32 %v3816_v41, 0.0  ;;  %v3826_v51 = vmax.f32 %v3818_v0, 0.0  ;;  %v6590_v25 = vld [vmem:[#allocation22 + $0x228] ss:$16 sps:$4 sm:$0xff]   ;;  %v6598_v27 = vld [vmem:[#allocation22 + $0x20c] ss:$16 sps:$4 sm:$0xff]  }
 0x58a   :  { %v6601_v28 = vld [vmem:[#allocation22 + $0x1ec] ss:$16 sps:$4 sm:$0xff]   ;;  %v6599_v22 = vld [vmem:[#allocation22 + $0x1e8] ss:$16 sps:$4 sm:$0xff]  }
 0x58b   :  { %v3825_v54 = vmax.f32 %v3817_v44, 0.0  ;;  %v3827_v26 = vmax.f32 %v3819_v46, 0.0  ;;  %v7301_v1 = vpack.c.bf16 %v3824_v48, %v3820_v55  ;;  %v7303_v40 = vpack.c.bf16 %v3826_v51, %v3822_v56  ;;  %v6604_v30 = vld [vmem:[#allocation22 + $0x3ec] ss:$16 sps:$4 sm:$0xff]   ;;  %v6602_v31 = vld [vmem:[#allocation22 + $0x3e8] ss:$16 sps:$4 sm:$0xff]  }
 0x58c   :  { %v6607_v32 = vld [vmem:[#allocation22 + $0x1cc] ss:$16 sps:$4 sm:$0xff]   ;;  %v6605_v33 = vld [vmem:[#allocation22 + $0x1c8] ss:$16 sps:$4 sm:$0xff]  }
 0x58d   :  { %v3829_v59 = vpack.c.bf16 %v3825_v54, %v3821_v52  ;;  %v3831_v60 = vpack.c.bf16 %v3827_v26, %v3823_v53  ;;  %v6610_v49 = vld [vmem:[#allocation22 + $0x3cc] ss:$16 sps:$4 sm:$0xff]   ;;  %v6608_v35 = vld [vmem:[#allocation22 + $0x3c8] ss:$16 sps:$4 sm:$0xff]  }
 0x58e   :  { %v6613_v63 = vld [vmem:[#allocation22 + $0x1ac] ss:$16 sps:$4 sm:$0xff]   ;;  %v6611_v13 = vld [vmem:[#allocation22 + $0x1a8] ss:$16 sps:$4 sm:$0xff]  }
 0x58f   :  { %4654 = vmatprep.mubr.bf16.mxu1 %v3829_v59  ;;  %4697 = vmatprep.mubr.bf16.mxu0 %v3831_v60  ;;  %v6616_v36 = vld [vmem:[#allocation22 + $0x3ac] ss:$16 sps:$4 sm:$0xff]   ;;  %v6614_v37 = vld [vmem:[#allocation22 + $0x3a8] ss:$16 sps:$4 sm:$0xff]  }
 0x590   :  { %4655 = vmatmul.mubr.bf16.vlgmr.msra.gmra.mxu1 %v7301_v1  ;;  %4698 = vmatmul.mubr.bf16.vlgmr.msra.gmra.mxu0 %v7303_v40  ;;  %v6619_v38 = vld [vmem:[#allocation22 + $0x18c] ss:$16 sps:$4 sm:$0xff]   ;;  %v6617_v41 = vld [vmem:[#allocation22 + $0x188] ss:$16 sps:$4 sm:$0xff]  }
 0x591   :  { %4709 = vmatpush1.bf16.msra.mxu1 %v6551_v61  ;;  %4752 = vmatpush1.bf16.msra.mxu0 %v6554_v62  ;;  %v6622_v39 = vld [vmem:[#allocation22 + $0x38c] ss:$16 sps:$4 sm:$0xff]   ;;  %v6620_v0 = vld [vmem:[#allocation22 + $0x388] ss:$16 sps:$4 sm:$0xff]  }
 0x592   :  { %4740 = vmatprep.mubr.bf16.mxu1 %v3829_v59  ;;  %4783 = vmatprep.mubr.bf16.mxu0 %v3831_v60  ;;  %v6625_v44 = vld [vmem:[#allocation22 + $0x16c] ss:$16 sps:$4 sm:$0xff]   ;;  %v6623_v48 = vld [vmem:[#allocation22 + $0x168] ss:$16 sps:$4 sm:$0xff]  }
 0x593   :  { %4710 = vmatprep.subr.bf16.mxu1 %v6559_v2  ;;  %4753 = vmatprep.subr.bf16.mxu0 %v6562_v3  ;;  %v6628_v46 = vld [vmem:[#allocation22 + $0x36c] ss:$16 sps:$4 sm:$0xff]   ;;  %v6626_v51 = vld [vmem:[#allocation22 + $0x368] ss:$16 sps:$4 sm:$0xff]  }
 0x594   :  { %v6631_v52 = vld [vmem:[#allocation22 + $0x14c] ss:$16 sps:$4 sm:$0xff]   ;;  %v6629_v54 = vld [vmem:[#allocation22 + $0x148] ss:$16 sps:$4 sm:$0xff]  }
 0x595   :  { %4711 = vmatpush1.bf16.msra.mxu1 %v6557_v4  ;;  %4754 = vmatpush1.bf16.msra.mxu0 %v6560_v45  ;;  %v6634_v53 = vld [vmem:[#allocation22 + $0x34c] ss:$16 sps:$4 sm:$0xff]   ;;  %v6632_v26 = vld [vmem:[#allocation22 + $0x348] ss:$16 sps:$4 sm:$0xff]  }
 0x596   :  { %4712 = vmatprep.subr.bf16.mxu1 %v6565_v5  ;;  %4755 = vmatprep.subr.bf16.mxu0 %v6568_v6  ;;  %v6637_v55 = vld [vmem:[#allocation22 + $0x12c] ss:$16 sps:$4 sm:$0xff]   ;;  %v6635_v59 = vld [vmem:[#allocation22 + $0x128] ss:$16 sps:$4 sm:$0xff]   ;;  %v6649_v5 = vld [vmem:[#allocation23 + $0x70] sm:$0xff]  }
 0x597   :  { %v6640_v56 = vld [vmem:[#allocation22 + $0x32c] ss:$16 sps:$4 sm:$0xff]   ;;  %v6638_v60 = vld [vmem:[#allocation22 + $0x328] ss:$16 sps:$4 sm:$0xff]   ;;  %v6650_v6 = vld [vmem:[#allocation23 + $0x30] sm:$0xff]  }
 0x598   :  { %v6643_v61 = vld [vmem:[#allocation22 + $0x10c] ss:$16 sps:$4 sm:$0xff]   ;;  %v6641_v2 = vld [vmem:[#allocation22 + $0x108] ss:$16 sps:$4 sm:$0xff]  }
 0x599   :  { %4713 = vmatpush1.bf16.msra.mxu1 %v6563_v7  ;;  %4756 = vmatpush1.bf16.msra.mxu0 %v6566_v8  ;;  %v6646_v62 = vld [vmem:[#allocation22 + $0x30c] ss:$16 sps:$4 sm:$0xff]   ;;  %v6644_v3 = vld [vmem:[#allocation22 + $0x308] ss:$16 sps:$4 sm:$0xff]  }
 0x59a   :  { %4714 = vmatprep.subr.bf16.mxu1 %v6571_v9  ;;  %4757 = vmatprep.subr.bf16.mxu0 %v6574_v34  ;;  %v6647_v4 = vld [vmem:[#allocation23 + $0x78] sm:$0xff]   ;;  %v6651_v7 = vld [vmem:[#allocation23 + $0x68] sm:$0xff]   ;;  %v6653_v9 = vld [vmem:[#allocation23 + $0x60] sm:$0xff]  }
 0x59b   :  { %v6648_v45 = vld [vmem:[#allocation23 + $0x38] sm:$0xff]   ;;  %v6652_v8 = vld [vmem:[#allocation23 + $0x28] sm:$0xff]   ;;  %v6654_v34 = vld [vmem:[#allocation23 + $0x20] sm:$0xff]  }
 0x59d   :  { %4715 = vmatpush1.bf16.msra.mxu1 %v6569_v50  ;;  %4758 = vmatpush1.bf16.msra.mxu0 %v6572_v10  ;;  %v6655_v50 = vld [vmem:[#allocation23 + $0x58] sm:$0xff]  }
 0x59e   :  { %4716 = vmatprep.subr.bf16.mxu1 %v6577_v11  ;;  %4759 = vmatprep.subr.bf16.mxu0 %v6580_v12  ;;  %v6656_v10 = vld [vmem:[#allocation23 + $0x18] sm:$0xff]   ;;  %v6657_v11 = vld [vmem:[#allocation23 + $0x50] sm:$0xff]  }
 0x59f   :  { %v6663_v12 = vld [vmem:[#allocation23 + $0xf8] sm:$0xff]  }
 0x5a1   :  { %4717 = vmatpush1.bf16.msra.mxu1 %v6575_v14  ;;  %4760 = vmatpush1.bf16.msra.mxu0 %v6578_v15  ;;  %v6665_v14 = vld [vmem:[#allocation23 + $0xf0] sm:$0xff]   ;;  %v6659_v15 = vld [vmem:[#allocation23 + $0x48] sm:$0xff]  }
 0x5a2   :  { %4718 = vmatprep.subr.bf16.mxu1 %v6583_v16  ;;  %4761 = vmatprep.subr.bf16.mxu0 %v6586_v17  ;;  %v6666_v16 = vld [vmem:[#allocation23 + $0xb0] sm:$0xff]   ;;  %v6667_v17 = vld [vmem:[#allocation23 + $0xe8] sm:$0xff]  }
 0x5a5   :  { %4719 = vmatpush1.bf16.msra.mxu1 %v6581_v18  ;;  %4762 = vmatpush1.bf16.msra.mxu0 %v6584_v19  ;;  %v6660_v18 = vld [vmem:[#allocation23 + $0x8] sm:$0xff]   ;;  %v6661_v19 = vld [vmem:[#allocation23 + $0x40] sm:$0xff]  }
 0x5a6   :  { %4720 = vmatprep.subr.bf16.mxu1 %v6589_v21  ;;  %4763 = vmatprep.subr.bf16.mxu0 %v6592_v23  ;;  %v6668_v21 = vld [vmem:[#allocation23 + $0xa8] sm:$0xff]   ;;  %v6669_v23 = vld [vmem:[#allocation23 + $0xe0] sm:$0xff]  }
 0x5a9   :  { %4721 = vmatpush1.bf16.msra.mxu1 %v6587_v24  ;;  %4764 = vmatpush1.bf16.msra.mxu0 %v6590_v25  ;;  %v6662_v24 = vld [vmem:[#allocation23] sm:$0xff]  }
 0x5aa   :  { %4722 = vmatprep.subr.bf16.mxu1 %v6595_v20  ;;  %4765 = vmatprep.subr.bf16.mxu0 %v6598_v27  ;;  %v6670_v25 = vld [vmem:[#allocation23 + $0xa0] sm:$0xff]   ;;  %v6671_v20 = vld [vmem:[#allocation23 + $0xd8] sm:$0xff]  }
 0x5ab   :  { %v6672_v27 = vld [vmem:[#allocation23 + $0x98] sm:$0xff]  }
 0x5ad   :  { %4723 = vmatpush1.bf16.msra.mxu1 %v6593_v29  ;;  %4766 = vmatpush1.bf16.msra.mxu0 %v6596_v47  ;;  %v6673_v29 = vld [vmem:[#allocation23 + $0xd0] sm:$0xff]  }
 0x5ae   :  { %4724 = vmatprep.subr.bf16.mxu1 %v6601_v28  ;;  %4767 = vmatprep.subr.bf16.mxu0 %v6604_v30  ;;  %v6674_v47 = vld [vmem:[#allocation23 + $0x90] sm:$0xff]   ;;  %v6675_v28 = vld [vmem:[#allocation23 + $0xc8] sm:$0xff]  }
 0x5af   :  { %v6676_v30 = vld [vmem:[#allocation23 + $0x88] sm:$0xff]  }
 0x5b1   :  { %4725 = vmatpush2.bf16.msra.mxu1 %v6599_v22  ;;  %4768 = vmatpush2.bf16.msra.mxu0 %v6602_v31  ;;  %v6677_v22 = vld [vmem:[#allocation23 + $0xc0] sm:$0xff]  }
 0x5b2   :  { %4726 = vmatprep.subr.bf16.mxu1 %v6607_v32  ;;  %4769 = vmatprep.subr.bf16.mxu0 %v6610_v49  ;;  %v6678_v31 = vld [vmem:[#allocation23 + $0x80] sm:$0xff]   ;;  %v3960_v32 = vld [vmem:[%s7341_s16] sm:$0xf] }
 0x5b3   :  { %v3969_v49 = vrot.slane %v3960_v32, %v7204_v42 }
 0x5b5   :  { %4727 = vmatpush2.bf16.msra.mxu1 %v6605_v33  ;;  %4770 = vmatpush2.bf16.msra.mxu0 %v6608_v35  ;;  %v3965_v33 = vrot.slane %v3960_v32, %v7207_v43 }
 0x5b6   :  { %4728 = vmatprep.subr.bf16.mxu1 %v6613_v63  ;;  %4771 = vmatprep.subr.bf16.mxu0 %v6616_v36 }
 0x5b9   :  { %4729 = vmatpush2.bf16.msra.mxu1 %v6611_v13  ;;  %4772 = vmatpush2.bf16.msra.mxu0 %v6614_v37 }
 0x5ba   :  { %4730 = vmatprep.subr.bf16.mxu1 %v6619_v38  ;;  %4773 = vmatprep.subr.bf16.mxu0 %v6622_v39 }
 0x5bd   :  { %4731 = vmatpush2.bf16.msra.mxu1 %v6617_v41  ;;  %4774 = vmatpush2.bf16.msra.mxu0 %v6620_v0 }
 0x5be   :  { %4732 = vmatprep.subr.bf16.mxu1 %v6625_v44  ;;  %4775 = vmatprep.subr.bf16.mxu0 %v6628_v46 }
 0x5c1   :  { %4733 = vmatpush2.bf16.msra.mxu1 %v6623_v48  ;;  %4776 = vmatpush2.bf16.msra.mxu0 %v6626_v51 }
 0x5c2   :  { %4734 = vmatprep.subr.bf16.mxu1 %v6631_v52  ;;  %4777 = vmatprep.subr.bf16.mxu0 %v6634_v53 }
 0x5c5   :  { %4735 = vmatpush2.bf16.msra.mxu1 %v6629_v54  ;;  %4778 = vmatpush2.bf16.msra.mxu0 %v6632_v26 }
 0x5c6   :  { %4736 = vmatprep.subr.bf16.mxu1 %v6637_v55  ;;  %4779 = vmatprep.subr.bf16.mxu0 %v6640_v56 }
 0x5c9   :  { %4737 = vmatpush2.bf16.msra.mxu1 %v6635_v59  ;;  %4780 = vmatpush2.bf16.msra.mxu0 %v6638_v60  ;;  %v3977_v60 = vrot.slane %v3960_v32, %v7222_v58 }
 0x5ca   :  { %4738 = vmatprep.subr.bf16.mxu1 %v6643_v61  ;;  %4781 = vmatprep.subr.bf16.mxu0 %v6646_v62  ;;  %v3973_v61 = vrot.slane %v3960_v32, %v7219_v57 }
 0x5cd   :  { %4739 = vmatpush2.bf16.msra.mxu1 %v6641_v2  ;;  %4782 = vmatpush2.bf16.msra.mxu0 %v6644_v3 }
 0x5ce   :  { %5786 = vmatprep.subr.bf16.mxu1 %v6647_v4  ;;  %5808 = vmatprep.subr.bf16.mxu0 %v6663_v12 }
 0x5d0   :  { %4741 = vmatmul.mubr.bf16.vlgmr.msra.gmra.mxu1 %v7301_v1  ;;  %4784 = vmatmul.mubr.bf16.vlgmr.msra.gmra.mxu0 %v7303_v40  ;;  %v6664_v1 = vld [vmem:[#allocation23 + $0xb8] sm:$0xff]   ;;  %v6658_v40 = vld [vmem:[#allocation23 + $0x10] sm:$0xff]  }
 0x5d1   :  { %5787 = vmatpush3.bf16.msra.mxu1 %v6648_v45  ;;  %5809 = vmatpush3.bf16.msra.mxu0 %v6664_v1 }
 0x5d2   :  { %5788 = vmatprep.subr.bf16.mxu1 %v6649_v5  ;;  %5810 = vmatprep.subr.bf16.mxu0 %v6665_v14 }
 0x5d5   :  { %5789 = vmatpush3.bf16.msra.mxu1 %v6650_v6  ;;  %5811 = vmatpush3.bf16.msra.mxu0 %v6666_v16 }
 0x5d6   :  { %5790 = vmatprep.subr.bf16.mxu1 %v6651_v7  ;;  %5812 = vmatprep.subr.bf16.mxu0 %v6667_v17 }
 0x5d9   :  { %5791 = vmatpush3.bf16.msra.mxu1 %v6652_v8  ;;  %5813 = vmatpush3.bf16.msra.mxu0 %v6668_v21 }
 0x5da   :  { %5792 = vmatprep.subr.bf16.mxu1 %v6653_v9  ;;  %5814 = vmatprep.subr.bf16.mxu0 %v6669_v23  ;;  %v5729_v23 = vld [vmem:[%s7343_s18] ss:$0 sm:$0xff] }
 0x5dd   :  { %5793 = vmatpush3.bf16.msra.mxu1 %v6654_v34  ;;  %5815 = vmatpush3.bf16.msra.mxu0 %v6670_v25 }
 0x5de   :  { %5794 = vmatprep.subr.bf16.mxu1 %v6655_v50  ;;  %5816 = vmatprep.subr.bf16.mxu0 %v6671_v20 }
 0x5e1   :  { %5795 = vmatpush3.bf16.msra.mxu1 %v6656_v10  ;;  %5817 = vmatpush3.bf16.msra.mxu0 %v6672_v27 }
 0x5e2   :  { %5796 = vmatprep.subr.bf16.mxu1 %v6657_v11  ;;  %5818 = vmatprep.subr.bf16.mxu0 %v6673_v29 }
 0x5e5   :  { %5797 = vmatpush3.bf16.msra.mxu1 %v6658_v40  ;;  %5819 = vmatpush3.bf16.msra.mxu0 %v6674_v47 }
 0x5e6   :  { %5798 = vmatprep.subr.bf16.mxu1 %v6659_v15  ;;  %5820 = vmatprep.subr.bf16.mxu0 %v6675_v28 }
 0x5e9   :  { %5799 = vmatpush3.bf16.msra.mxu1 %v6660_v18  ;;  %5821 = vmatpush3.bf16.msra.mxu0 %v6676_v30 }
 0x5ea   :  { %5800 = vmatprep.subr.bf16.mxu1 %v6661_v19  ;;  %5822 = vmatprep.subr.bf16.mxu0 %v6677_v22 }
 0x5ed   :  { %5801 = vmatpush3.bf16.msra.mxu1 %v6662_v24  ;;  %5823 = vmatpush3.bf16.msra.mxu0 %v6678_v31 }
 0x650   :  { %v4656_v35 = vpop.f32.mrf.mxu1  ;;  %v4699_v63 = vpop.f32.mrf.mxu0 }
 0x651   :  { %v4657_v38 = vadd.f32 %v4656_v35, %v3965_v33 }
 0x652   :  { %v4658_v36 = vpop.f32.mrf.mxu1  ;;  %v4701_v13 = vpop.f32.mrf.mxu0 }
 0x653   :  { %v4659_v37 = vadd.f32 %v4658_v36, %v3969_v49  ;;  %v4700_v52 = vadd.f32 %v4699_v63, %v4657_v38 }
 0x654   :  { %v4660_v39 = vpop.f32.mrf.mxu1  ;;  %v4703_v41 = vpop.f32.mrf.mxu0 }
 0x655   :  { %v4661_v0 = vadd.f32 %v4660_v39, %v3965_v33  ;;  %v4702_v46 = vadd.f32 %v4701_v13, %v4659_v37  ;;  %v4794_v43 = vmax.f32 %v4700_v52, 0.0 }
 0x656   :  { %v4662_v44 = vpop.f32.mrf.mxu1  ;;  %v4705_v53 = vpop.f32.mrf.mxu0 }
 0x657   :  { %v4704_v48 = vadd.f32 %v4703_v41, %v4661_v0  ;;  %v4663_v51 = vadd.f32 %v4662_v44, %v3969_v49  ;;  %v4795_v42 = vmax.f32 %v4702_v46, 0.0 }
 0x659   :  { %v4706_v54 = vadd.f32 %v4705_v53, %v4663_v51  ;;  %v4798_v26 = vmax.f32 %v4704_v48, 0.0 }
 0x65b   :  { %v4799_v55 = vmax.f32 %v4706_v54, 0.0  ;;  %v4802_v59 = vpack.c.bf16 %v4798_v26, %v4794_v43 }
 0x65d   :  { %v4803_v56 = vpack.c.bf16 %v4799_v55, %v4795_v42 }
 0x65f   :  { %5101 = vmatprep.mubr.bf16.mxu1 %v4803_v56 }
 0x660   :  { %5102 = vmatmul.mubr.bf16.vlgmr.msra.gmra.mxu1 %v4802_v59 }
 0x690   :  { %v4742_v62 = vpop.f32.mrf.mxu1  ;;  %v4785_v2 = vpop.f32.mrf.mxu0 }
 0x691   :  { %v4743_v5 = vadd.f32 %v4742_v62, %v3973_v61 }
 0x692   :  { %v4744_v3 = vpop.f32.mrf.mxu1  ;;  %v4787_v4 = vpop.f32.mrf.mxu0 }
 0x693   :  { %v4745_v45 = vadd.f32 %v4744_v3, %v3977_v60  ;;  %v4786_v11 = vadd.f32 %v4785_v2, %v4743_v5 }
 0x694   :  { %v4746_v6 = vpop.f32.mrf.mxu1  ;;  %v4789_v7 = vpop.f32.mrf.mxu0 }
 0x695   :  { %v4747_v8 = vadd.f32 %v4746_v6, %v3973_v61  ;;  %v4788_v34 = vadd.f32 %v4787_v4, %v4745_v45  ;;  %v4796_v57 = vmax.f32 %v4786_v11, 0.0 }
 0x696   :  { %v4748_v9 = vpop.f32.mrf.mxu1  ;;  %v4791_v12 = vpop.f32.mrf.mxu0 }
 0x697   :  { %v4790_v50 = vadd.f32 %v4789_v7, %v4747_v8  ;;  %v4749_v10 = vadd.f32 %v4748_v9, %v3977_v60  ;;  %v4797_v58 = vmax.f32 %v4788_v34, 0.0 }
 0x699   :  { %v4792_v1 = vadd.f32 %v4791_v12, %v4749_v10  ;;  %v4800_v14 = vmax.f32 %v4790_v50, 0.0 }
 0x69b   :  { %v4801_v40 = vmax.f32 %v4792_v1, 0.0  ;;  %v4804_v16 = vpack.c.bf16 %v4800_v14, %v4796_v57 }
 0x69d   :  { %v4805_v15 = vpack.c.bf16 %v4801_v40, %v4797_v58 }
 0x69f   :  { %5142 = vmatprep.mubr.bf16.mxu0 %v4805_v15 }
 0x6a0   :  { %5143 = vmatmul.mubr.bf16.vlgmr.msra.gmra.mxu0 %v4804_v16 }
 0x720   :  { %v5802_v17 = vpop.f32.mrf.mxu1 }
 0x722   :  { %v5803_v18 = vpop.f32.mrf.mxu1 }
 0x723   :  { %v5804_v21 = vadd.f32 %v5803_v18, %v5802_v17 }
 0x724   :  { %v5805_v19 = vpop.f32.mrf.mxu1 }
 0x725   :  { %v5104_v27 = vadd.f32 %v5804_v21, %v5729_v23 }
 0x726   :  { %v5806_v24 = vpop.f32.mrf.mxu1 }
 0x727   :  { %v5807_v29 = vadd.f32 %v5806_v24, %v5805_v19 }
 0x729   :  { %v5107_v31 = vadd.f32 %v5807_v29, %v5729_v23 }
 0x760   :  { %v5824_v25 = vpop.f32.mrf.mxu0 }
 0x762   :  { %v5825_v20 = vpop.f32.mrf.mxu0 }
 0x763   :  { %v5826_v47 = vadd.f32 %v5825_v20, %v5824_v25 }
 0x764   :  { %v5827_v28 = vpop.f32.mrf.mxu0 }
 0x765   :  { %v5145_v30 = vadd.f32 %v5826_v47, %v5104_v27 }
 0x766   :  { %v5828_v22 = vpop.f32.mrf.mxu0 }
 0x767   :  { %5151 = vst [vmem:[#allocation25] sm:$0xff] %v5145_v30  ;;  %v5829_v32 = vadd.f32 %v5828_v22, %v5827_v28 }
 0x769   :  { %v5148_v49 = vadd.f32 %v5829_v32, %v5107_v31 }
 0x76b   :  { %5152 = vst [vmem:[#allocation25 + $0x8] sm:$0xff] %v5148_v49 }
 0x76c   :  { %6970 = shalt.err (!%p6967_p4)
}
 0x76d   :  { %s7354_s27 = sld [smem:[#allocation39_spill]] }
 0x773   :  { %5164 = dma.vmem_to_hbm [thread:$0]  %s5159_s26, 256, %s7354_s27, [#allocation4], %s6999_s22, %s6999_s22, %s7000_s2  }
 0x774   :  { %6995 = dma.done.wait [#allocation4], 256  }
 0x775   :  { %6996 = vsyncadd [#allocation4], 4294967040 }
 0x776   :  { %5168 = vsyncpa [#allocation3], 1 }
 0x777   :  { %5169 = vsyncpa [#allocation6], 1 }
 0x778   :  { %5170 = vsyncpa [#allocation9], 1 }
 0x779   :  { %5171 = vsyncpa [#allocation12], 1 }
 0x77a   :  { %5172 = vsyncpa [#allocation15], 1 }
 0x77b   :  { %5173 = vsyncpa [#allocation18], 1 }
 0x77c   :  { %5174 = vsyncpa [#allocation21], 1 }
 0x77d   :  { %5175 = vsyncpa [#allocation24], 1 }
 0x77e   :  { %5176 = vsyncpa [#allocation4], 1 }

</bundles_post_ra>
